<compile_context>
chip_gen: v6e
topology: v6e:2x2x1
jax: 0.10.0
libtpu: 0.0.40
codegen_flags: <defaults>
</compile_context>

<pallas_src>
import functools

import jax
import jax.numpy as jnp
from jax.experimental import pallas as pl
from jax.experimental.pallas import tpu as pltpu

LEAKY_SLOPE = 0.01      # nn.LeakyReLU() default negative_slope
NEG_BIG = -1e30         # bias for padded softmax lanes -> exp() underflows to 0


def _round_up(x, m):
    return (x + m - 1) // m * m


def _mlp_kernel(x_ref, w1_ref, b1_ref, w2_ref, b2_ref, w3_ref, b3_ref, o_ref):
    # fc1: cast x to bf16 in-kernel (free VPU work), bf16 MXU, f32 accumulate.
    x_bf = x_ref[...].astype(jnp.bfloat16)
    h1 = jnp.dot(x_bf, w1_ref[...], preferred_element_type=jnp.float32)
    h1 = h1 + b1_ref[...]
    h1 = jnp.maximum(h1, LEAKY_SLOPE * h1)          # LeakyReLU (slope in (0,1))

    # (dropout1: identity at inference)

    # fc2
    h2 = jnp.dot(h1.astype(jnp.bfloat16), w2_ref[...],
                 preferred_element_type=jnp.float32)
    h2 = h2 + b2_ref[...]
    h2 = jnp.maximum(h2, LEAKY_SLOPE * h2)

    # (dropout2: identity at inference)

    # fc3 (lane-dense, padded to 128 output lanes) + softmax over classes.
    # Padded lanes carry bias = -1e30, so their exp() is exactly 0 and they do
    # not contribute to the denominator.
    logits = jnp.dot(h2.astype(jnp.bfloat16), w3_ref[...],
                     preferred_element_type=jnp.float32)
    logits = logits + b3_ref[...]
    m = jnp.max(logits, axis=-1, keepdims=True)
    e = jnp.exp(logits - m)
    denom = jnp.sum(e, axis=-1, keepdims=True)
    # Exact divide (not approx reciprocal) so rows sum to 1 within f32 rounding.
    o_ref[...] = (e / denom).astype(o_ref.dtype)


def prepare_params(w1, b1, w2, b2, w3, b3):
    """One-time weight prep (hoisted out of the per-call forward):
    bf16 casts for the MXU, fc3 padded to 128 output lanes, biases as (1, N)
    f32 slabs, padded fc3 bias lanes set to -1e30."""
    in_dim, h1_dim = w1.shape
    h2_dim, out_dim = w3.shape
    out_pad = _round_up(out_dim, 128)

    w1_bf = w1.astype(jnp.bfloat16)
    w2_bf = w2.astype(jnp.bfloat16)
    w3_p = jnp.zeros((h2_dim, out_pad), jnp.bfloat16)
    w3_p = w3_p.at[:, :out_dim].set(w3.astype(jnp.bfloat16))

    b1_2d = b1.reshape(1, h1_dim).astype(jnp.float32)
    b2_2d = b2.reshape(1, h2_dim).astype(jnp.float32)
    b3_2d = jnp.full((1, out_pad), NEG_BIG, jnp.float32)
    b3_2d = b3_2d.at[0, :out_dim].set(b3.astype(jnp.float32))

    prepped = (w1_bf, b1_2d, w2_bf, b2_2d, w3_p, b3_2d)
    # Materialize once so each forward reuses ready device buffers.
    return jax.tree_util.tree_map(jnp.asarray, prepped), out_dim


@functools.partial(jax.jit, static_argnames=("out_dim", "block_b"))
def mlp_forward(x, w1_bf, b1_2d, w2_bf, b2_2d, w3_p, b3_2d, *, out_dim,
                block_b=128):
    B, in_dim = x.shape
    h1_dim = w1_bf.shape[1]
    h2_dim = w2_bf.shape[1]
    out_pad = w3_p.shape[1]

    # Don't use a tile taller than the (8-rounded) batch.
    block_b = max(8, min(block_b, _round_up(B, 8)))
    grid = (pl.cdiv(B, block_b),)

    const_idx = lambda i: (0, 0)     # grid-invariant blocks: never re-DMA'd

    out = pl.pallas_call(
        _mlp_kernel,
        out_shape=jax.ShapeDtypeStruct((B, out_pad), jnp.float32),
        grid_spec=pltpu.PrefetchScalarGridSpec(
            num_scalar_prefetch=0,
            grid=grid,
            in_specs=[
                # x: tiled over the batch axis (f32; cast to bf16 in-kernel)
                pl.BlockSpec((block_b, in_dim), lambda i: (i, 0)),
                # weights / biases: full arrays, constant block index.
                pl.BlockSpec((in_dim, h1_dim), const_idx),
                pl.BlockSpec((1, h1_dim), const_idx),
                pl.BlockSpec((h1_dim, h2_dim), const_idx),
                pl.BlockSpec((1, h2_dim), const_idx),
                pl.BlockSpec((h2_dim, out_pad), const_idx),
                pl.BlockSpec((1, out_pad), const_idx),
            ],
            out_specs=pl.BlockSpec((block_b, out_pad), lambda i: (i, 0)),
        ),
        compiler_params=pltpu.CompilerParams(
            dimension_semantics=("parallel",),
            # Live VMEM is ~4 MiB (x tile 512 KiB x2, weights ~1.2 MiB x2,
            # out 64 KiB x2, f32 temporaries) -- safe on v5e/v6e (128 MiB)
            # and v7x (64 MiB) with plenty of headroom for larger block_b.
            vmem_limit_bytes=32 * 1024 * 1024,
        ),
    )(x, w1_bf, b1_2d, w2_bf, b2_2d, w3_p, b3_2d)

    # Drop the padded softmax lanes (they are exactly 0).
    return out[:, :out_dim]


def init_params(key, input_size=1024, output_size=4):
    """Deterministic init mimicking nn.Linear's U(-1/sqrt(fan_in), +1/sqrt(fan_in))."""
    dims = [(input_size, 512), (512, 128), (128, output_size)]
    params = []
    for (fan_in, fan_out) in dims:
        key, kw, kb = jax.random.split(key, 3)
        bound = 1.0 / (fan_in ** 0.5)
        w = jax.random.uniform(kw, (fan_in, fan_out), jnp.float32, -bound, bound)
        b = jax.random.uniform(kb, (fan_out,), jnp.float32, -bound, bound)
        params += [w, b]
    return params


def _leaky(x):
    return jnp.where(x > 0, x, LEAKY_SLOPE * x)


def mlp_reference_f32(x, w1, b1, w2, b2, w3, b3):
    h1 = _leaky(x @ w1 + b1)
    h2 = _leaky(h1 @ w2 + b2)
    return jax.nn.softmax(h2 @ w3 + b3, axis=1)


def mlp_reference_bf16(x, w1, b1, w2, b2, w3, b3):
    """Same bf16-operand / f32-accumulate recipe as the kernel."""
    bf = jnp.bfloat16
    h1 = _leaky(jnp.dot(x.astype(bf), w1.astype(bf),
                        preferred_element_type=jnp.float32) + b1)
    h2 = _leaky(jnp.dot(h1.astype(bf), w2.astype(bf),
                        preferred_element_type=jnp.float32) + b2)
    logits = jnp.dot(h2.astype(bf), w3.astype(bf),
                     preferred_element_type=jnp.float32) + b3
    return jax.nn.softmax(logits, axis=1)


if __name__ == "__main__":
    key = jax.random.PRNGKey(0)
    kx, kp = jax.random.split(key)

    # input_size is fixed at 1024 by the module; batch 256 keeps the grid at
    # 2 steps of 128-row tiles (fills the MXU M dim, feeds both v7x TCs).
    B, INPUT_SIZE, OUTPUT_SIZE = 256, 1024, 4
    x = jax.random.normal(kx, (B, INPUT_SIZE), jnp.float32)
    w1, b1, w2, b2, w3, b3 = init_params(kp, INPUT_SIZE, OUTPUT_SIZE)

    # One-time weight prep (bf16 cast / lane padding) outside the forward.
    (w1_bf, b1_2d, w2_bf, b2_2d, w3_p, b3_2d), out_dim = prepare_params(
        w1, b1, w2, b2, w3, b3)

    out = mlp_forward(x, w1_bf, b1_2d, w2_bf, b2_2d, w3_p, b3_2d,
                      out_dim=out_dim, block_b=128)
    out = jax.block_until_ready(out)

    ref_bf16 = mlp_reference_bf16(x, w1, b1, w2, b2, w3, b3)
    ref_f32 = mlp_reference_f32(x, w1, b1, w2, b2, w3, b3)

    assert out.shape == (B, OUTPUT_SIZE)
    assert jnp.allclose(out, ref_bf16, atol=2e-3, rtol=1e-2), \
        "mismatch vs bf16-matched JAX reference"
    assert jnp.allclose(out, ref_f32, atol=3e-2), \
        "mismatch vs f32 JAX reference"
    assert jnp.allclose(jnp.sum(out, axis=1), 1.0, atol=1e-3), \
        "softmax rows must sum to ~1"

    print("KERNEL_OK")
</pallas_src>

<mosaic_0001>
module attributes {stable_mosaic.version = 11 : i64} {
  func.func @_mlp_kernel(%arg0: i32, %arg1: memref<128x1024xf32, #tpu.memory_space<vmem>>, %arg2: memref<1024x512xbf16, #tpu.memory_space<vmem>>, %arg3: memref<1x512xf32, #tpu.memory_space<vmem>>, %arg4: memref<512x128xbf16, #tpu.memory_space<vmem>>, %arg5: memref<1x128xf32, #tpu.memory_space<vmem>>, %arg6: memref<128x128xbf16, #tpu.memory_space<vmem>>, %arg7: memref<1x128xf32, #tpu.memory_space<vmem>>, %arg8: memref<128x128xf32, #tpu.memory_space<vmem>>) attributes {dimension_semantics = [#tpu.dimension_semantics<parallel>], iteration_bounds = array<i64: 2>, scalar_prefetch = 0 : i64, scratch_operands = 0 : i64, tpu.core_type = #tpu.core_type<tc>, window_params = [{transform_indices = @transform_0, window_bounds = array<i64: 128, 1024>}, {pipeline_mode = #tpu.pipeline_mode<synchronous>, transform_indices = @transform_1, window_bounds = array<i64: 1024, 512>}, {pipeline_mode = #tpu.pipeline_mode<synchronous>, transform_indices = @transform_2, window_bounds = array<i64: 1, 512>}, {pipeline_mode = #tpu.pipeline_mode<synchronous>, transform_indices = @transform_3, window_bounds = array<i64: 512, 128>}, {pipeline_mode = #tpu.pipeline_mode<synchronous>, transform_indices = @transform_4, window_bounds = array<i64: 1, 128>}, {pipeline_mode = #tpu.pipeline_mode<synchronous>, transform_indices = @transform_5, window_bounds = array<i64: 128, 128>}, {pipeline_mode = #tpu.pipeline_mode<synchronous>, transform_indices = @transform_6, window_bounds = array<i64: 1, 128>}, {transform_indices = @transform_7, window_bounds = array<i64: 128, 128>}]} {
    %c0 = arith.constant 0 : index
    %c0_0 = arith.constant 0 : index
    %0 = vector.load %arg1[%c0, %c0_0] : memref<128x1024xf32, #tpu.memory_space<vmem>>, vector<128x1024xf32>
    %1 = arith.truncf %0 : vector<128x1024xf32> to vector<128x1024xbf16>
    %c0_1 = arith.constant 0 : index
    %c0_2 = arith.constant 0 : index
    %2 = vector.load %arg2[%c0_1, %c0_2] : memref<1024x512xbf16, #tpu.memory_space<vmem>>, vector<1024x512xbf16>
    %cst = arith.constant dense<0.000000e+00> : vector<128x512xf32>
    %3 = tpu.matmul %1, %2, %cst {dimension_numbers = #tpu.dot_dimension_numbers<[1], [0], [0], [1], [0, 0, 1, 1], [], []>} : vector<128x1024xbf16>, vector<1024x512xbf16>, vector<128x512xf32> -> vector<128x512xf32>
    %c0_3 = arith.constant 0 : index
    %c0_4 = arith.constant 0 : index
    %4 = vector.load %arg3[%c0_3, %c0_4] : memref<1x512xf32, #tpu.memory_space<vmem>>, vector<1x512xf32>
    %5 = vector.broadcast %4 : vector<1x512xf32> to vector<128x512xf32>
    %6 = arith.addf %3, %5 : vector<128x512xf32>
    %cst_5 = arith.constant 0.00999999977 : f32
    %7 = vector.broadcast %cst_5 : f32 to vector<128x512xf32>
    %8 = arith.mulf %7, %6 : vector<128x512xf32>
    %9 = arith.maximumf %6, %8 : vector<128x512xf32>
    %10 = arith.truncf %9 : vector<128x512xf32> to vector<128x512xbf16>
    %c0_6 = arith.constant 0 : index
    %c0_7 = arith.constant 0 : index
    %11 = vector.load %arg4[%c0_6, %c0_7] : memref<512x128xbf16, #tpu.memory_space<vmem>>, vector<512x128xbf16>
    %cst_8 = arith.constant dense<0.000000e+00> : vector<128x128xf32>
    %12 = tpu.matmul %10, %11, %cst_8 {dimension_numbers = #tpu.dot_dimension_numbers<[1], [0], [0], [1], [0, 0, 1, 1], [], []>} : vector<128x512xbf16>, vector<512x128xbf16>, vector<128x128xf32> -> vector<128x128xf32>
    %c0_9 = arith.constant 0 : index
    %c0_10 = arith.constant 0 : index
    %13 = vector.load %arg5[%c0_9, %c0_10] : memref<1x128xf32, #tpu.memory_space<vmem>>, vector<1x128xf32>
    %14 = vector.broadcast %13 : vector<1x128xf32> to vector<128x128xf32>
    %15 = arith.addf %12, %14 : vector<128x128xf32>
    %cst_11 = arith.constant 0.00999999977 : f32
    %16 = vector.broadcast %cst_11 : f32 to vector<128x128xf32>
    %17 = arith.mulf %16, %15 : vector<128x128xf32>
    %18 = arith.maximumf %15, %17 : vector<128x128xf32>
    %19 = arith.truncf %18 : vector<128x128xf32> to vector<128x128xbf16>
    %c0_12 = arith.constant 0 : index
    %c0_13 = arith.constant 0 : index
    %20 = vector.load %arg6[%c0_12, %c0_13] : memref<128x128xbf16, #tpu.memory_space<vmem>>, vector<128x128xbf16>
    %cst_14 = arith.constant dense<0.000000e+00> : vector<128x128xf32>
    %21 = tpu.matmul %19, %20, %cst_14 {dimension_numbers = #tpu.dot_dimension_numbers<[1], [0], [0], [1], [0, 0, 1, 1], [], []>} : vector<128x128xbf16>, vector<128x128xbf16>, vector<128x128xf32> -> vector<128x128xf32>
    %c0_15 = arith.constant 0 : index
    %c0_16 = arith.constant 0 : index
    %22 = vector.load %arg7[%c0_15, %c0_16] : memref<1x128xf32, #tpu.memory_space<vmem>>, vector<1x128xf32>
    %23 = vector.broadcast %22 : vector<1x128xf32> to vector<128x128xf32>
    %24 = arith.addf %21, %23 : vector<128x128xf32>
    %cst_17 = arith.constant dense<0xFF800000> : vector<128xf32>
    %25 = vector.multi_reduction <maximumf>, %24, %cst_17 [1] : vector<128x128xf32> to vector<128xf32>
    %26 = vector.shape_cast %25 : vector<128xf32> to vector<128x1xf32>
    %27 = vector.broadcast %26 : vector<128x1xf32> to vector<128x128xf32>
    %28 = arith.subf %24, %27 : vector<128x128xf32>
    %29 = math.exp %28 : vector<128x128xf32>
    %cst_18 = arith.constant dense<0.000000e+00> : vector<128xf32>
    %30 = vector.multi_reduction <add>, %29, %cst_18 [1] : vector<128x128xf32> to vector<128xf32>
    %31 = vector.shape_cast %30 : vector<128xf32> to vector<128x1xf32>
    %32 = vector.broadcast %31 : vector<128x1xf32> to vector<128x128xf32>
    %33 = arith.divf %29, %32 : vector<128x128xf32>
    %c0_19 = arith.constant 0 : index
    %c0_20 = arith.constant 0 : index
    %34 = vector.load %arg8[%c0_19, %c0_20] : memref<128x128xf32, #tpu.memory_space<vmem>>, vector<128x128xf32>
    tpu.vector_store %arg8[%c0_19, %c0_20], %33 {strides = array<i32>} : memref<128x128xf32, #tpu.memory_space<vmem>>, vector<128x128xf32>,
    return
  }
  func.func @transform_0(%arg0: i32) -> (i32, i32) {
    %c0_i32 = arith.constant 0 : i32
    %c0_i32_0 = arith.constant 0 : i32
    return %arg0, %c0_i32 : i32, i32
  }
  func.func @transform_1(%arg0: i32) -> (i32, i32) {
    %c0_i32 = arith.constant 0 : i32
    %c0_i32_0 = arith.constant 0 : i32
    %c0_i32_1 = arith.constant 0 : i32
    return %c0_i32, %c0_i32_0 : i32, i32
  }
  func.func @transform_2(%arg0: i32) -> (i32, i32) {
    %c0_i32 = arith.constant 0 : i32
    %c0_i32_0 = arith.constant 0 : i32
    %c0_i32_1 = arith.constant 0 : i32
    return %c0_i32, %c0_i32_0 : i32, i32
  }
  func.func @transform_3(%arg0: i32) -> (i32, i32) {
    %c0_i32 = arith.constant 0 : i32
    %c0_i32_0 = arith.constant 0 : i32
    %c0_i32_1 = arith.constant 0 : i32
    return %c0_i32, %c0_i32_0 : i32, i32
  }
  func.func @transform_4(%arg0: i32) -> (i32, i32) {
    %c0_i32 = arith.constant 0 : i32
    %c0_i32_0 = arith.constant 0 : i32
    %c0_i32_1 = arith.constant 0 : i32
    return %c0_i32, %c0_i32_0 : i32, i32
  }
  func.func @transform_5(%arg0: i32) -> (i32, i32) {
    %c0_i32 = arith.constant 0 : i32
    %c0_i32_0 = arith.constant 0 : i32
    %c0_i32_1 = arith.constant 0 : i32
    return %c0_i32, %c0_i32_0 : i32, i32
  }
  func.func @transform_6(%arg0: i32) -> (i32, i32) {
    %c0_i32 = arith.constant 0 : i32
    %c0_i32_0 = arith.constant 0 : i32
    %c0_i32_1 = arith.constant 0 : i32
    return %c0_i32, %c0_i32_0 : i32, i32
  }
  func.func @transform_7(%arg0: i32) -> (i32, i32) {
    %c0_i32 = arith.constant 0 : i32
    %c0_i32_0 = arith.constant 0 : i32
    return %arg0, %c0_i32 : i32, i32
  }
}

</mosaic_0001>

<bundles_post_ra>
// kernel: mlp_forward.1
= control target key start
LH: loop header
LB: loop body
LE: loop exit
PB: predicated region body
PF: predicated region fallthrough
CT: control target
= control target key end

     0   :  { %12 = vsyncpa [#allocation3], 0  ;;  %s6462_s0 = inlined_call_operand.hbm [shape: f32[256,1024], index: 0, kind: input, shape index: {}]   ;;  %s6463_s1 = inlined_call_operand.hbm [shape: bf16[1024,512], index: 1, kind: input, shape index: {}]   ;;  %s6464_s2 = inlined_call_operand.hbm [shape: f32[1,512], index: 2, kind: input, shape index: {}]   ;;  %s6465_s3 = inlined_call_operand.hbm [shape: bf16[512,128], index: 3, kind: input, shape index: {}]   ;;  %s6466_s4 = inlined_call_operand.vmem [shape: f32[1,128], index: 4, kind: input, shape index: {}]   ;;  %s6467_s5 = inlined_call_operand.hbm [shape: bf16[128,128], index: 5, kind: input, shape index: {}]   ;;  %s6468_s6 = inlined_call_operand.vmem [shape: f32[1,128], index: 6, kind: input, shape index: {}]   ;;  %s6469_s7 = inlined_call_operand.vmem [shape: f32[256,128], index: 7, kind: output, shape index: {}]  }
   0x1   :  { %14 = vsyncpa [#allocation3 + $0x1], 0 }
   0x2   :  { %15 = vsyncpa [#allocation5], 0 }
   0x3   :  { %16 = vsyncpa [#allocation8], 0  ;;  %s5416_s24 = smov 0   ;;  %s5418_s25 = smov 0  }
   0x4   :  { %s5420_s26 = smov 0   ;;  %s5422_s27 = smov 0  }
   0x5 LB: > { %s4103_s28 = sadd.s32 4294967295, %s5364_s27   ;;  %p42_p0 = scmp.ne.s32.totalorder %s5356_s25, %s5352_s24  ;;  %s5364_s27 = sphi %s5422_s27, %s6541_s27   ;;  %s5360_s26 = sphi %s5420_s26, %s6540_s26   ;;  %s5356_s25 = sphi %s5418_s25, %s6539_s25   ;;  %s5352_s24 = sphi %s5416_s24, %s6538_s24  }
   0x6   : > { %p5438_p1 = scmp.eq.s32.totalorder %s4103_s28, 0  ;;  %p4105_p2 = scmp.ge.s32.totalorder %s5364_s27, 1 }
   0x7   : > { %p205_p3 = scmp.lt.s32.totalorder %s5364_s27, 3  ;;  %s5366_s9 = smov [#allocation4]  }
   0x8   : > { %s6492_s29 = scalar_select %p5438_p1, 1, 0 }
   0x9   : > { %p5446_p4 = por %p5438_p1, %p42_p0  ;;  %p5450_p5 = pnand %p4105_p2, %p205_p3 }
   0xa   : > { %s217_s10 = sshll.u32 %s5366_s9, 4  ;;  %s5367_s12 = smov [#allocation7]   ;;  %s218_s10 = int_to_ptr.vmem [resolvable:$true] %s217_s10 }
   0xb   : > { %s6493_s30 = scalar_select %p5446_p4, 1, 0 }
   0xc   : > { %s6494_s8 = scalar_select %p5450_p5, 1, 0 }
   0xd   : > { %p4635_p6 = pneg %p5450_p5  ;;  %s241_s13 = sshll.u32 %s5367_s12, 4  ;;  %s242_s13 = int_to_ptr.vmem [resolvable:$true] %s241_s13 }
   0xe   : > { %s5201_s14 = scalar_lea.vmem %s218_s10, 32768  ;;  %p5209_p12 = scmp.lt.s32.totalorder %s218_s10, %s218_s10 }
   0xf   : > { %p5458_p7 = pnand %p4635_p6, %p5438_p1  ;;  %p5202_p9 = scmp.ne.s32.totalorder %s218_s10, %s5201_s14 }
  0x10   : > { %p5210_p13 = scmp.lt.s32.totalorder %s5201_s14, %s5201_s14 }
  0x11   : > { %p5192_p8 = pneg %p5458_p7 }
  0x12   : > { %p5211_p0 = por %p5210_p13, %p5209_p12 }
  0x13   : > { %p5204_p10 = pnand %p5202_p9, %p5192_p8 }
  0x15   : > { %p5205_p11 = pneg %p5204_p10 }
  0x17   : > { %p5212_p2 = pnand %p5211_p0, %p5205_p11 }
  0x19   : > { %5215 = shalt.err (!%p5212_p2)
}
  0x1a   : > { %s5368_s15 = smov 256   ;;  %s5369_s16 = smov 16  }
  0x1b   : > { %4638 = dma.hbm_to_vmem [thread:$0]  (!%p5458_p7), %s6463_s1, 32768, %s218_s10, [#allocation5], %s5368_s15, %s5368_s15, %s5369_s16  }
  0x1c   : > { %s5227_s19 = scalar_lea.vmem %s242_s13, 4096  ;;  %p5235_p10 = scmp.lt.s32.totalorder %s242_s13, %s242_s13 }
  0x1d   : > { %p5228_p3 = scmp.ne.s32.totalorder %s242_s13, %s5227_s19  ;;  %p5236_p1 = scmp.lt.s32.totalorder %s5227_s19, %s5227_s19 }
  0x1f   : > { %p5230_p6 = pnand %p5228_p3, %p5192_p8  ;;  %p5237_p12 = por %p5236_p1, %p5235_p10 }
  0x21   : > { %p5231_p9 = pneg %p5230_p6 }
  0x23   : > { %p5238_p11 = pnand %p5237_p12, %p5231_p9 }
  0x25   : > { %5241 = shalt.err (!%p5238_p11)
}
  0x26   : > { %s5370_s20 = smov 64   ;;  %s5371_s21 = smov 4  }
  0x27   : > { %4644 = dma.hbm_to_vmem [thread:$0]  (!%p5458_p7), %s6465_s3, 4096, %s242_s13, [#allocation8], %s5370_s20, %s5370_s20, %s5371_s21  }
  0x28   : > { %s5372_s24 = smov [#allocation6]   ;;  %s5373_s10 = smov [#allocation9]  }
  0x29   : > { %s231_s9 = sshll.u32 %s5372_s24, 4  ;;  %s257_s12 = sshll.u32 %s5373_s10, 4  ;;  %s232_s9 = int_to_ptr.vmem [resolvable:$true] %s231_s9  ;;  %s258_s12 = int_to_ptr.vmem [resolvable:$true] %s257_s12 }
  0x2a   : > { %s5253_s14 = scalar_lea.vmem %s232_s9, 64  ;;  %p5261_p2 = scmp.lt.s32.totalorder %s232_s9, %s232_s9 }
  0x2b   : > { %p5254_p1 = scmp.ne.s32.totalorder %s232_s9, %s5253_s14  ;;  %p5262_p3 = scmp.lt.s32.totalorder %s5253_s14, %s5253_s14 }
  0x2d   : > { %p5256_p13 = pnand %p5254_p1, %p5192_p8  ;;  %p5263_p6 = por %p5262_p3, %p5261_p2 }
  0x2f   : > { %p5257_p0 = pneg %p5256_p13 }
  0x31   : > { %p5264_p9 = pnand %p5263_p6, %p5257_p0 }
  0x33   : > { %5267 = shalt.err (!%p5264_p9)
}
  0x34   : > { %4641 = dma.hbm_to_vmem [thread:$0]  (!%p5458_p7), %s6464_s2, 64, %s232_s9, [#allocation5]  }
  0x35   : > { %s5279_s16 = scalar_lea.vmem %s258_s12, 1024  ;;  %p5287_p1 = scmp.lt.s32.totalorder %s258_s12, %s258_s12 }
  0x36   : > { %p5280_p10 = scmp.ne.s32.totalorder %s258_s12, %s5279_s16  ;;  %p5288_p13 = scmp.lt.s32.totalorder %s5279_s16, %s5279_s16 }
  0x38   : > { %p5282_p12 = pnand %p5280_p10, %p5192_p8  ;;  %p5289_p4 = por %p5288_p13, %p5287_p1 }
  0x3a   : > { %p5283_p11 = pneg %p5282_p12 }
  0x3c   : > { %p5290_p5 = pnand %p5289_p4, %p5283_p11 }
  0x3e   : > { %5293 = shalt.err (!%p5290_p5)
}
  0x3f   : > { %4647 = dma.hbm_to_vmem [thread:$0]  (!%p5458_p7), %s6467_s5, 1024, %s258_s12, [#allocation8], %s5370_s20, %s5370_s20, %s5371_s21  }
  0x40   : > { %s5503_s19 = sadd.s32 1, %s5364_s27   ;;  %s29_s22 = sadd.s32 1, %s5360_s26 }
  0x41   : > { %s26_s11 = ssub.s32 %s5364_s27, %s5503_s19  ;;  %p36_p5 = scmp.ne.s32.totalorder %s5360_s26, %s5356_s25 }
  0x42   : > { %p27_p4 = scmp.eq.s32.totalorder %s26_s11, 0  ;;  %p37_p8 = scmp.eq.s32.totalorder %s5364_s27, 0 }
  0x43   : > { %p4656_p2 = scmp.lt.s32.totalorder %s5364_s27, 2  ;;  %s274_s24 = sand.u32 1, %s5360_s26  }
  0x44   : > { %s5512_s23 = scalar_select %p27_p4, %s5360_s26, %s29_s22  }
  0x45   : > { %p38_p0 = por %p37_p8, %p36_p5  ;;  %s4424_s9 = sshll.u32 %s5364_s27, 14 }
  0x46   : > { %s4111_s10 = sshll.u32 %s274_s24, 10  ;;  %s5520_s15 = scalar_lea.hbm %s6462_s0, %s4424_s9 }
  0x47   : > { %s278_s21 = scalar_lea.vmem [#allocation2], %s4111_s10  ;;  %p5522_p7 = pnand %p4656_p2, %p38_p0 }
  0x48   : > { %s286_s12 = sshll.u32 %s278_s21, 4  ;;  %s5528_s17 = scalar_lea.sflag [#allocation3], %s274_s24  ;;  %s5526_s12 = int_to_ptr.vmem [resolvable:$true] %s286_s12 }
  0x49   : > { %s5294_s18 = scalar_lea.hbm %s5520_s15, 16384  ;;  %p5296_p6 = pneg %p5522_p7 }
  0x4a   : > { %p5295_p3 = scmp.ne.s32.totalorder %s5520_s15, %s5294_s18  ;;  %s5299_s9 = scalar_lea.hbm %s6462_s0, 32768 }
  0x4b   : > { %p5300_p12 = scmp.lt.s32.totalorder %s5520_s15, %s6462_s0  ;;  %p5301_p11 = scmp.lt.s32.totalorder %s5299_s9, %s5294_s18 }
  0x4c   : > { %p5297_p9 = pnand %p5296_p6, %p5295_p3 }
  0x4d   : > { %p5302_p1 = por %p5301_p11, %p5300_p12 }
  0x4e   : > { %p5298_p10 = pneg %p5297_p9 }
  0x50   : > { %p5303_p13 = pnand %p5302_p1, %p5298_p10 }
  0x52   : > { %5306 = shalt.err (!%p5303_p13)
}
  0x53   : > { %s5307_s24 = scalar_lea.vmem %s5526_s12, 16384  ;;  %s5374_s13 = smov [#allocation2]  }
  0x54   : > { %p5308_p4 = scmp.ne.s32.totalorder %s5526_s12, %s5307_s24  ;;  %s5312_s21 = sshll.u32 %s5374_s13, 4  ;;  %s5313_s21 = int_to_ptr.vmem [resolvable:$false] %s5312_s21 }
  0x55   : > { %s5314_s11 = scalar_lea.vmem %s5313_s21, 32768  ;;  %p5315_p0 = scmp.lt.s32.totalorder %s5526_s12, %s5313_s21 }
  0x56   : > { %p5310_p5 = pnand %p5308_p4, %p5296_p6  ;;  %p5316_p2 = scmp.lt.s32.totalorder %s5314_s11, %s5307_s24 }
  0x58   : > { %p5311_p8 = pneg %p5310_p5  ;;  %p5317_p3 = por %p5316_p2, %p5315_p0 }
  0x5a   : > { %p5318_p9 = pnand %p5317_p3, %p5311_p8 }
  0x5c   : > { %5321 = shalt.err (!%p5318_p9)
}
  0x5d   : > { %s5375_s18 = smov 1024   ;;  %p6497_p6 = scmp.ne.s32.totalorder %s6494_s8, 0 }
  0x5e   : > { %4651 = dma.hbm_to_vmem [thread:$0]  (!%p5522_p7), %s5520_s15, 16384, %s5526_s12, %s5528_s17, %s5375_s18, %s5375_s18, %s5370_s20  }
  0x5f   : > { %298 = sbr.rel (%p6497_p6) target bundleno = 1357 (0x54d), region = 48 }
  0x64   : > { %s300_s22 = sand.u32 1, %s5356_s25   ;;  %p6498_p10 = scmp.ne.s32.totalorder %s6493_s30, 0 }
  0x65   : > { %s4116_s9 = sshll.u32 %s300_s22, 10  ;;  %s301_s10 = scalar_lea.sflag [#allocation3], %s300_s22 }
  0x66   : > { %s5553_s14 = scalar_lea.vmem [#allocation2], %s4116_s9 }
  0x67   : > { %5339 = dma.done.wait (%p6498_p10), %s301_s10, 16384  }
  0x68   : > { %5341 = vsyncadd (%p6498_p10), %s301_s10, 4294950912  ;;  %p6499_p12 = scmp.ne.s32.totalorder %s6492_s29, 0 }
  0x6a   : > { %5343 = dma.done.wait (%p6499_p12), [#allocation5], 32832  }
  0x6b   : > { %5345 = vsyncadd (%p6499_p12), [#allocation5], 4294934464 }
  0x6c   : > { %5347 = dma.done.wait (%p6499_p12), [#allocation8], 5120  }
  0x6d   : > { %5349 = vsyncadd (%p6499_p12), [#allocation8], 4294962176  ;;  %v4702_v0 = vld [vmem:[#allocation4 + $0xe4] ss:$16 sps:$4 sm:$0xff]   ;;  %v4706_v2 = vld [vmem:[#allocation4 + $0xe0] ss:$16 sps:$4 sm:$0xff]  }
  0x6e   : > { %v4704_v1 = vld [vmem:[#allocation4 + $0x2e4] ss:$16 sps:$4 sm:$0xff]   ;;  %2109 = vmatprep.subr.bf16.mxu0 %v4702_v0  ;;  %v4707_v3 = vld [vmem:[#allocation4 + $0x2e0] ss:$16 sps:$4 sm:$0xff]   ;;  %v360_v46 = vld [vmem:[%s5553_s14 + $0x8] sm:$0xff]  ;;  %s4121_s15 = sshll.u32 %s4103_s28, 4 }
  0x6f   : > { %2222 = vmatprep.subr.bf16.mxu1 %v4704_v1  ;;  %v4708_v4 = vld [vmem:[#allocation4 + $0xc4] ss:$16 sps:$4 sm:$0xff]   ;;  %2110 = vmatpush1.bf16.msra.mxu0 %v4706_v2  ;;  %v4712_v6 = vld [vmem:[#allocation4 + $0xc0] ss:$16 sps:$4 sm:$0xff]   ;;  %v368_v47 = vld [vmem:[%s5553_s14 + $0x48] sm:$0xff]  ;;  %p353_p7 = scmp.lt.s32.totalorder %s4121_s15, 31 }
  0x70   : > { %2223 = vmatpush1.bf16.msra.mxu1 %v4707_v3  ;;  %v4710_v5 = vld [vmem:[#allocation4 + $0x2c4] ss:$16 sps:$4 sm:$0xff]   ;;  %2111 = vmatprep.subr.bf16.mxu0 %v4708_v4  ;;  %v4713_v7 = vld [vmem:[#allocation4 + $0x2c0] ss:$16 sps:$4 sm:$0xff]   ;;  %v362_v48 = vld [vmem:[%s5553_s14 + $0x18] sm:$0xff]  ;;  %v5571_v53 = vpack.c.bf16 %v368_v47, %v360_v46 }
  0x71   : > { %2224 = vmatprep.subr.bf16.mxu1 %v4710_v5  ;;  %v4714_v8 = vld [vmem:[#allocation4 + $0xa4] ss:$16 sps:$4 sm:$0xff]   ;;  %v4718_v10 = vld [vmem:[#allocation4 + $0xa0] ss:$16 sps:$4 sm:$0xff]   ;;  %v370_v49 = vld [vmem:[%s5553_s14 + $0x58] sm:$0xff]  ;;  %s6543_s15 = smov (!%p353_p7, %s4121_s15), 31 }
  0x72   : > { %v4716_v9 = vld [vmem:[#allocation4 + $0x2a4] ss:$16 sps:$4 sm:$0xff]   ;;  %v4719_v11 = vld [vmem:[#allocation4 + $0x2a0] ss:$16 sps:$4 sm:$0xff]   ;;  %v5573_v54 = vpack.c.bf16 %v370_v49, %v362_v48  ;;  %2141 = vmatprep.mubr.bf16.mxu0 %v5571_v53  ;;  %s4122_s12 = sshll.u32 %s6543_s15, 3 }
  0x73   : > { %2112 = vmatpush1.bf16.msra.mxu0 %v4712_v6  ;;  %v4720_v12 = vld [vmem:[#allocation4 + $0x84] ss:$16 sps:$4 sm:$0xff]   ;;  %v4724_v14 = vld [vmem:[#allocation4 + $0x80] ss:$16 sps:$4 sm:$0xff]   ;;  %s6415_s24 = scalar_lea.vmem %s6469_s7, %s4122_s12 }
  0x74   : > { %2225 = vmatpush1.bf16.msra.mxu1 %v4713_v7  ;;  %2113 = vmatprep.subr.bf16.mxu0 %v4714_v8  ;;  %v4722_v13 = vld [vmem:[#allocation4 + $0x284] ss:$16 sps:$4 sm:$0xff]   ;;  %v4725_v15 = vld [vmem:[#allocation4 + $0x280] ss:$16 sps:$4 sm:$0xff]  }
  0x75   : > { %2226 = vmatprep.subr.bf16.mxu1 %v4716_v9  ;;  %v4726_v16 = vld [vmem:[#allocation4 + $0x64] ss:$16 sps:$4 sm:$0xff]   ;;  %v4730_v18 = vld [vmem:[#allocation4 + $0x60] ss:$16 sps:$4 sm:$0xff]   ;;  %2254 = vmatprep.mubr.bf16.mxu1 %v5573_v54 }
  0x76   : > { %v4728_v17 = vld [vmem:[#allocation4 + $0x264] ss:$16 sps:$4 sm:$0xff]   ;;  %v4731_v19 = vld [vmem:[#allocation4 + $0x260] ss:$16 sps:$4 sm:$0xff]  }
  0x77   : > { %2114 = vmatpush1.bf16.msra.mxu0 %v4718_v10  ;;  %v4732_v20 = vld [vmem:[#allocation4 + $0x44] ss:$16 sps:$4 sm:$0xff]   ;;  %v4736_v22 = vld [vmem:[#allocation4 + $0x40] ss:$16 sps:$4 sm:$0xff]  }
  0x78   : > { %2227 = vmatpush1.bf16.msra.mxu1 %v4719_v11  ;;  %2115 = vmatprep.subr.bf16.mxu0 %v4720_v12  ;;  %v4734_v21 = vld [vmem:[#allocation4 + $0x244] ss:$16 sps:$4 sm:$0xff]   ;;  %v4737_v23 = vld [vmem:[#allocation4 + $0x240] ss:$16 sps:$4 sm:$0xff]  }
  0x79   : > { %2228 = vmatprep.subr.bf16.mxu1 %v4722_v13  ;;  %v4738_v24 = vld [vmem:[#allocation4 + $0x24] ss:$16 sps:$4 sm:$0xff]   ;;  %v4742_v26 = vld [vmem:[#allocation4 + $0x20] ss:$16 sps:$4 sm:$0xff]  }
  0x7a   : > { %v4740_v25 = vld [vmem:[#allocation4 + $0x224] ss:$16 sps:$4 sm:$0xff]   ;;  %v4743_v27 = vld [vmem:[#allocation4 + $0x220] ss:$16 sps:$4 sm:$0xff]  }
  0x7b   : > { %2116 = vmatpush1.bf16.msra.mxu0 %v4724_v14  ;;  %v4744_v28 = vld [vmem:[#allocation4 + $0x4] ss:$16 sps:$4 sm:$0xff]   ;;  %v4748_v30 = vld [vmem:[#allocation4] ss:$16 sps:$4 sm:$0xff]   ;;  %v376_v14 = vld [vmem:[%s5553_s14 + $0x88] sm:$0xff] }
  0x7c   : > { %2229 = vmatpush1.bf16.msra.mxu1 %v4725_v15  ;;  %2117 = vmatprep.subr.bf16.mxu0 %v4726_v16  ;;  %v4746_v29 = vld [vmem:[#allocation4 + $0x204] ss:$16 sps:$4 sm:$0xff]   ;;  %v4749_v31 = vld [vmem:[#allocation4 + $0x200] ss:$16 sps:$4 sm:$0xff]   ;;  %v384_v15 = vld [vmem:[%s5553_s14 + $0xc8] sm:$0xff] }
  0x7d   : > { %2230 = vmatprep.subr.bf16.mxu1 %v4728_v17  ;;  %v4750_v32 = vld [vmem:[#allocation4 + $0x1e4] ss:$16 sps:$4 sm:$0xff]   ;;  %v4754_v34 = vld [vmem:[#allocation4 + $0x1e0] ss:$16 sps:$4 sm:$0xff]  }
  0x7e   : > { %v4752_v33 = vld [vmem:[#allocation4 + $0x3e4] ss:$16 sps:$4 sm:$0xff]   ;;  %v4755_v35 = vld [vmem:[#allocation4 + $0x3e0] ss:$16 sps:$4 sm:$0xff]  }
  0x7f   : > { %2118 = vmatpush1.bf16.msra.mxu0 %v4730_v18  ;;  %v4756_v36 = vld [vmem:[#allocation4 + $0x1c4] ss:$16 sps:$4 sm:$0xff]   ;;  %v4760_v38 = vld [vmem:[#allocation4 + $0x1c0] ss:$16 sps:$4 sm:$0xff]   ;;  %v378_v18 = vld [vmem:[%s5553_s14 + $0x98] sm:$0xff] }
  0x80   : > { %2231 = vmatpush1.bf16.msra.mxu1 %v4731_v19  ;;  %2119 = vmatprep.subr.bf16.mxu0 %v4732_v20  ;;  %v4758_v37 = vld [vmem:[#allocation4 + $0x3c4] ss:$16 sps:$4 sm:$0xff]   ;;  %v4761_v39 = vld [vmem:[#allocation4 + $0x3c0] ss:$16 sps:$4 sm:$0xff]   ;;  %v386_v19 = vld [vmem:[%s5553_s14 + $0xd8] sm:$0xff] }
  0x81   : > { %2232 = vmatprep.subr.bf16.mxu1 %v4734_v21  ;;  %v4762_v40 = vld [vmem:[#allocation4 + $0x1a4] ss:$16 sps:$4 sm:$0xff]   ;;  %v4766_v42 = vld [vmem:[#allocation4 + $0x1a0] ss:$16 sps:$4 sm:$0xff]  }
  0x82   : > { %v4764_v41 = vld [vmem:[#allocation4 + $0x3a4] ss:$16 sps:$4 sm:$0xff]   ;;  %v4767_v43 = vld [vmem:[#allocation4 + $0x3a0] ss:$16 sps:$4 sm:$0xff]  }
  0x83   : > { %2120 = vmatpush1.bf16.msra.mxu0 %v4736_v22  ;;  %v4768_v44 = vld [vmem:[#allocation4 + $0x184] ss:$16 sps:$4 sm:$0xff]   ;;  %v4772_v50 = vld [vmem:[#allocation4 + $0x180] ss:$16 sps:$4 sm:$0xff]  }
  0x84   : > { %2233 = vmatpush1.bf16.msra.mxu1 %v4737_v23  ;;  %2121 = vmatprep.subr.bf16.mxu0 %v4738_v24  ;;  %v4770_v45 = vld [vmem:[#allocation4 + $0x384] ss:$16 sps:$4 sm:$0xff]   ;;  %v4773_v51 = vld [vmem:[#allocation4 + $0x380] ss:$16 sps:$4 sm:$0xff]   ;;  %v5589_v23 = vpack.c.bf16 %v384_v15, %v376_v14  ;;  %v5591_v24 = vpack.c.bf16 %v386_v19, %v378_v18  ;;  %v426_v18 = vld [vmem:[%s5553_s14 + $0x218] sm:$0xff] }
  0x85   : > { %2234 = vmatprep.subr.bf16.mxu1 %v4740_v25  ;;  %v4774_v52 = vld [vmem:[#allocation4 + $0x164] ss:$16 sps:$4 sm:$0xff]   ;;  %v4778_v56 = vld [vmem:[#allocation4 + $0x160] ss:$16 sps:$4 sm:$0xff]   ;;  %v434_v19 = vld [vmem:[%s5553_s14 + $0x258] sm:$0xff] }
  0x86   : > { %v4776_v55 = vld [vmem:[#allocation4 + $0x364] ss:$16 sps:$4 sm:$0xff]   ;;  %v4779_v57 = vld [vmem:[#allocation4 + $0x360] ss:$16 sps:$4 sm:$0xff]  }
  0x87   : > { %2122 = vmatpush1.bf16.msra.mxu0 %v4742_v26  ;;  %v4780_v58 = vld [vmem:[#allocation4 + $0x144] ss:$16 sps:$4 sm:$0xff]   ;;  %v4784_v60 = vld [vmem:[#allocation4 + $0x140] ss:$16 sps:$4 sm:$0xff]  }
  0x88   : > { %2235 = vmatpush1.bf16.msra.mxu1 %v4743_v27  ;;  %2123 = vmatprep.subr.bf16.mxu0 %v4744_v28  ;;  %v4782_v59 = vld [vmem:[#allocation4 + $0x344] ss:$16 sps:$4 sm:$0xff]   ;;  %v4785_v61 = vld [vmem:[#allocation4 + $0x340] ss:$16 sps:$4 sm:$0xff]  }
  0x89   : > { %2236 = vmatprep.subr.bf16.mxu1 %v4746_v29  ;;  %v4786_v62 = vld [vmem:[#allocation4 + $0x124] ss:$16 sps:$4 sm:$0xff]   ;;  %v4790_v0 = vld [vmem:[#allocation4 + $0x120] ss:$16 sps:$4 sm:$0xff]  }
  0x8a   : > { %v4788_v63 = vld [vmem:[#allocation4 + $0x324] ss:$16 sps:$4 sm:$0xff]   ;;  %v4791_v1 = vld [vmem:[#allocation4 + $0x320] ss:$16 sps:$4 sm:$0xff]  }
  0x8b   : > { %2124 = vmatpush1.bf16.msra.mxu0 %v4748_v30  ;;  %v4792_v2 = vld [vmem:[#allocation4 + $0x104] ss:$16 sps:$4 sm:$0xff]   ;;  %v4796_v4 = vld [vmem:[#allocation4 + $0x100] ss:$16 sps:$4 sm:$0xff]  }
  0x8c   : > { %2237 = vmatpush1.bf16.msra.mxu1 %v4749_v31  ;;  %2125 = vmatprep.subr.bf16.mxu0 %v4750_v32  ;;  %v4794_v3 = vld [vmem:[#allocation4 + $0x304] ss:$16 sps:$4 sm:$0xff]   ;;  %v4797_v5 = vld [vmem:[#allocation4 + $0x300] ss:$16 sps:$4 sm:$0xff]  }
  0x8d   : > { %2238 = vmatprep.subr.bf16.mxu1 %v4752_v33  ;;  %v359_v6 = vld [vmem:[%s5553_s14] sm:$0xff]  ;;  %v361_v8 = vld [vmem:[%s5553_s14 + $0x10] sm:$0xff] }
  0x8e   : > { %v367_v7 = vld [vmem:[%s5553_s14 + $0x40] sm:$0xff]  ;;  %v369_v9 = vld [vmem:[%s5553_s14 + $0x50] sm:$0xff] }
  0x8f   : > { %2126 = vmatpush2.bf16.msra.mxu0 %v4754_v34  ;;  %v4800_v10 = vld [vmem:[#allocation4 + $0x4e4] ss:$16 sps:$4 sm:$0xff]   ;;  %v4798_v12 = vld [vmem:[#allocation4 + $0x4e0] ss:$16 sps:$4 sm:$0xff]   ;;  %v5583_v16 = vpack.c.bf16 %v367_v7, %v359_v6  ;;  %v5585_v17 = vpack.c.bf16 %v369_v9, %v361_v8  ;;  %v392_v34 = vld [vmem:[%s5553_s14 + $0x108] sm:$0xff] }
  0x90   : > { %2239 = vmatpush2.bf16.msra.mxu1 %v4755_v35  ;;  %2127 = vmatprep.subr.bf16.mxu0 %v4756_v36  ;;  %v4803_v11 = vld [vmem:[#allocation4 + $0x6e4] ss:$16 sps:$4 sm:$0xff]   ;;  %v4801_v13 = vld [vmem:[#allocation4 + $0x6e0] ss:$16 sps:$4 sm:$0xff]   ;;  %v400_v35 = vld [vmem:[%s5553_s14 + $0x148] sm:$0xff] }
  0x91   : > { %2240 = vmatprep.subr.bf16.mxu1 %v4758_v37  ;;  %v4806_v20 = vld [vmem:[#allocation4 + $0x4c4] ss:$16 sps:$4 sm:$0xff]   ;;  %v4804_v22 = vld [vmem:[#allocation4 + $0x4c0] ss:$16 sps:$4 sm:$0xff]  }
  0x92   : > { %v4809_v21 = vld [vmem:[#allocation4 + $0x6c4] ss:$16 sps:$4 sm:$0xff]   ;;  %v4807_v25 = vld [vmem:[#allocation4 + $0x6c0] ss:$16 sps:$4 sm:$0xff]  }
  0x93   : > { %2128 = vmatpush2.bf16.msra.mxu0 %v4760_v38  ;;  %v375_v26 = vld [vmem:[%s5553_s14 + $0x80] sm:$0xff]  ;;  %v377_v28 = vld [vmem:[%s5553_s14 + $0x90] sm:$0xff]  ;;  %v394_v38 = vld [vmem:[%s5553_s14 + $0x118] sm:$0xff] }
  0x94   : > { %2241 = vmatpush2.bf16.msra.mxu1 %v4761_v39  ;;  %2129 = vmatprep.subr.bf16.mxu0 %v4762_v40  ;;  %v383_v27 = vld [vmem:[%s5553_s14 + $0xc0] sm:$0xff]  ;;  %v385_v29 = vld [vmem:[%s5553_s14 + $0xd0] sm:$0xff]  ;;  %v402_v39 = vld [vmem:[%s5553_s14 + $0x158] sm:$0xff] }
  0x95   : > { %2242 = vmatprep.subr.bf16.mxu1 %v4764_v41  ;;  %v4812_v30 = vld [vmem:[#allocation4 + $0x4a4] ss:$16 sps:$4 sm:$0xff]   ;;  %v4810_v32 = vld [vmem:[#allocation4 + $0x4a0] ss:$16 sps:$4 sm:$0xff]   ;;  %v5603_v36 = vpack.c.bf16 %v383_v27, %v375_v26  ;;  %v5605_v37 = vpack.c.bf16 %v385_v29, %v377_v28  ;;  %v5651_v26 = vpack.c.bf16 %v434_v19, %v426_v18 }
  0x96   : > { %v4815_v31 = vld [vmem:[#allocation4 + $0x6a4] ss:$16 sps:$4 sm:$0xff]   ;;  %v4813_v33 = vld [vmem:[#allocation4 + $0x6a0] ss:$16 sps:$4 sm:$0xff]  }
  0x97   : > { %2130 = vmatpush2.bf16.msra.mxu0 %v4766_v42  ;;  %v4818_v40 = vld [vmem:[#allocation4 + $0x484] ss:$16 sps:$4 sm:$0xff]   ;;  %v4816_v42 = vld [vmem:[#allocation4 + $0x480] ss:$16 sps:$4 sm:$0xff]  }
  0x98   : > { %2243 = vmatpush2.bf16.msra.mxu1 %v4767_v43  ;;  %2131 = vmatprep.subr.bf16.mxu0 %v4768_v44  ;;  %v4821_v41 = vld [vmem:[#allocation4 + $0x684] ss:$16 sps:$4 sm:$0xff]   ;;  %v5609_v43 = vpack.c.bf16 %v400_v35, %v392_v34  ;;  %v5611_v44 = vpack.c.bf16 %v402_v39, %v394_v38  ;;  %v4843_v27 = vld [vmem:[#allocation4 + $0x600] ss:$16 sps:$4 sm:$0xff]   ;;  %v440_v38 = vld [vmem:[%s5553_s14 + $0x288] sm:$0xff] }
  0x99   : > { %2244 = vmatprep.subr.bf16.mxu1 %v4770_v45  ;;  %v4819_v45 = vld [vmem:[#allocation4 + $0x680] ss:$16 sps:$4 sm:$0xff]   ;;  %v4836_v8 = vld [vmem:[#allocation4 + $0x424] ss:$16 sps:$4 sm:$0xff]   ;;  %v448_v39 = vld [vmem:[%s5553_s14 + $0x2c8] sm:$0xff] }
  0x9a   : > { %v391_v46 = vld [vmem:[%s5553_s14 + $0x100] sm:$0xff]  ;;  %v393_v48 = vld [vmem:[%s5553_s14 + $0x110] sm:$0xff] }
  0x9b   : > { %2132 = vmatpush2.bf16.msra.mxu0 %v4772_v50  ;;  %v399_v47 = vld [vmem:[%s5553_s14 + $0x140] sm:$0xff]  ;;  %v401_v49 = vld [vmem:[%s5553_s14 + $0x150] sm:$0xff] }
  0x9c   : > { %2245 = vmatpush2.bf16.msra.mxu1 %v4773_v51  ;;  %2133 = vmatprep.subr.bf16.mxu0 %v4774_v52  ;;  %v4824_v50 = vld [vmem:[#allocation4 + $0x464] ss:$16 sps:$4 sm:$0xff]   ;;  %v4822_v52 = vld [vmem:[#allocation4 + $0x460] ss:$16 sps:$4 sm:$0xff]  }
  0x9d   : > { %2246 = vmatprep.subr.bf16.mxu1 %v4776_v55  ;;  %v4827_v51 = vld [vmem:[#allocation4 + $0x664] ss:$16 sps:$4 sm:$0xff]   ;;  %v4825_v55 = vld [vmem:[#allocation4 + $0x660] ss:$16 sps:$4 sm:$0xff]  }
  0x9e   : > { %v409_v6 = vld [vmem:[%s5553_s14 + $0x190] sm:$0xff]  ;;  %v423_v28 = vld [vmem:[%s5553_s14 + $0x200] sm:$0xff] }
  0x9f   : > { %2134 = vmatpush2.bf16.msra.mxu0 %v4778_v56  ;;  %v408_v56 = vld [vmem:[%s5553_s14 + $0x188] sm:$0xff]  ;;  %v417_v7 = vld [vmem:[%s5553_s14 + $0x1d0] sm:$0xff]  ;;  %v431_v29 = vld [vmem:[%s5553_s14 + $0x240] sm:$0xff] }
  0xa0   : > { %2247 = vmatpush2.bf16.msra.mxu1 %v4779_v57  ;;  %2135 = vmatprep.subr.bf16.mxu0 %v4780_v58  ;;  %v416_v57 = vld [vmem:[%s5553_s14 + $0x1c8] sm:$0xff]  ;;  %v5623_v58 = vpack.c.bf16 %v399_v47, %v391_v46  ;;  %v4839_v9 = vld [vmem:[#allocation4 + $0x624] ss:$16 sps:$4 sm:$0xff]   ;;  %v5645_v15 = vpack.c.bf16 %v417_v7, %v409_v6  ;;  %v4846_v34 = vld [vmem:[#allocation4 + $0x5e0] ss:$16 sps:$4 sm:$0xff]  }
  0xa1   : > { %2248 = vmatprep.subr.bf16.mxu1 %v4782_v59  ;;  %v5625_v59 = vpack.c.bf16 %v401_v49, %v393_v48  ;;  %v4849_v35 = vld [vmem:[#allocation4 + $0x7e0] ss:$16 sps:$4 sm:$0xff]   ;;  %v4854_v46 = vld [vmem:[#allocation4 + $0x5c4] ss:$16 sps:$4 sm:$0xff]   ;;  %v5669_v49 = vpack.c.bf16 %v448_v39, %v440_v38  ;;  %v458_v6 = vld [vmem:[%s5553_s14 + $0x318] sm:$0xff] }
  0xa2   : > { %v4857_v47 = vld [vmem:[#allocation4 + $0x7c4] ss:$16 sps:$4 sm:$0xff]   ;;  %v4852_v48 = vld [vmem:[#allocation4 + $0x5c0] ss:$16 sps:$4 sm:$0xff]   ;;  %v466_v7 = vld [vmem:[%s5553_s14 + $0x358] sm:$0xff] }
  0xa3   : > { %2136 = vmatpush2.bf16.msra.mxu0 %v4784_v60  ;;  %v410_v60 = vld [vmem:[%s5553_s14 + $0x198] sm:$0xff]  ;;  %v455_v18 = vld [vmem:[%s5553_s14 + $0x300] sm:$0xff] }
  0xa4   : > { %2249 = vmatpush2.bf16.msra.mxu1 %v4785_v61  ;;  %2137 = vmatprep.subr.bf16.mxu0 %v4786_v62  ;;  %v418_v61 = vld [vmem:[%s5553_s14 + $0x1d8] sm:$0xff]  ;;  %v4830_v62 = vld [vmem:[#allocation4 + $0x444] ss:$16 sps:$4 sm:$0xff]  }
  0xa5   : > { %2250 = vmatprep.subr.bf16.mxu1 %v4788_v63  ;;  %v4833_v63 = vld [vmem:[#allocation4 + $0x644] ss:$16 sps:$4 sm:$0xff]  }
  0xa6   : > { %v463_v19 = vld [vmem:[%s5553_s14 + $0x340] sm:$0xff] }
  0xa7   : > { %2138 = vmatpush2.bf16.msra.mxu0 %v4790_v0  ;;  %v4828_v0 = vld [vmem:[#allocation4 + $0x440] ss:$16 sps:$4 sm:$0xff]   ;;  %v4878_v38 = vld [vmem:[#allocation4 + $0x544] ss:$16 sps:$4 sm:$0xff]  }
  0xa8   : > { %2251 = vmatpush2.bf16.msra.mxu1 %v4791_v1  ;;  %2139 = vmatprep.subr.bf16.mxu0 %v4792_v2  ;;  %v5629_v1 = vpack.c.bf16 %v416_v57, %v408_v56  ;;  %v5631_v2 = vpack.c.bf16 %v418_v61, %v410_v60  ;;  %v441_v56 = vld [vmem:[%s5553_s14 + $0x290] sm:$0xff] }
  0xa9   : > { %2252 = vmatprep.subr.bf16.mxu1 %v4794_v3  ;;  %v4831_v3 = vld [vmem:[#allocation4 + $0x640] ss:$16 sps:$4 sm:$0xff]   ;;  %v4860_v60 = vld [vmem:[#allocation4 + $0x5a4] ss:$16 sps:$4 sm:$0xff]  }
  0xaa   : > { %v449_v57 = vld [vmem:[%s5553_s14 + $0x2d0] sm:$0xff] }
  0xab   : > { %2140 = vmatpush2.bf16.msra.mxu0 %v4796_v4  ;;  %v407_v4 = vld [vmem:[%s5553_s14 + $0x180] sm:$0xff] }
  0xac   : > { %2253 = vmatpush2.bf16.msra.mxu1 %v4797_v5  ;;  %2335 = vmatprep.subr.bf16.mxu0 %v4800_v10  ;;  %v415_v5 = vld [vmem:[%s5553_s14 + $0x1c0] sm:$0xff] }
  0xad   : > { %2448 = vmatprep.subr.bf16.mxu1 %v4803_v11  ;;  %v4834_v10 = vld [vmem:[#allocation4 + $0x420] ss:$16 sps:$4 sm:$0xff]   ;;  %v5643_v14 = vpack.c.bf16 %v415_v5, %v407_v4  ;;  %v4863_v61 = vld [vmem:[#allocation4 + $0x7a4] ss:$16 sps:$4 sm:$0xff]   ;;  %v5685_v5 = vpack.c.bf16 %v449_v57, %v441_v56 }
  0xae   : > { %2142 = vmatmul.mubr.bf16.vlgmr.msra.gmra.mxu0 %v5583_v16  ;;  %v4837_v11 = vld [vmem:[#allocation4 + $0x620] ss:$16 sps:$4 sm:$0xff]   ;;  %v4881_v39 = vld [vmem:[#allocation4 + $0x744] ss:$16 sps:$4 sm:$0xff]  }
  0xaf   : > { %2255 = vmatmul.mubr.bf16.vlgmr.msra.gmra.mxu1 %v5585_v17  ;;  %2336 = vmatpush1.bf16.msra.mxu0 %v4798_v12  ;;  %v424_v12 = vld [vmem:[%s5553_s14 + $0x208] sm:$0xff]  ;;  %v4884_v56 = vld [vmem:[#allocation4 + $0x524] ss:$16 sps:$4 sm:$0xff]  }
  0xb0   : > { %2449 = vmatpush1.bf16.msra.mxu1 %v4801_v13  ;;  %2337 = vmatprep.subr.bf16.mxu0 %v4806_v20  ;;  %v432_v13 = vld [vmem:[%s5553_s14 + $0x248] sm:$0xff]  ;;  %v4842_v20 = vld [vmem:[#allocation4 + $0x404] ss:$16 sps:$4 sm:$0xff]  }
  0xb1   : > { %2450 = vmatprep.subr.bf16.mxu1 %v4809_v21  ;;  %2151 = vmatprep.mubr.bf16.mxu0 %v5589_v23  ;;  %v4845_v21 = vld [vmem:[#allocation4 + $0x604] ss:$16 sps:$4 sm:$0xff]  }
  0xb2   : > { %2264 = vmatprep.mubr.bf16.mxu1 %v5591_v24  ;;  %v4887_v57 = vld [vmem:[#allocation4 + $0x724] ss:$16 sps:$4 sm:$0xff]  }
  0xb3   : > { %2338 = vmatpush1.bf16.msra.mxu0 %v4804_v22  ;;  %v4840_v22 = vld [vmem:[#allocation4 + $0x400] ss:$16 sps:$4 sm:$0xff]  }
  0xb4   : > { %2451 = vmatpush1.bf16.msra.mxu1 %v4807_v25  ;;  %2339 = vmatprep.subr.bf16.mxu0 %v4812_v30  ;;  %v5649_v25 = vpack.c.bf16 %v432_v13, %v424_v12  ;;  %v425_v30 = vld [vmem:[%s5553_s14 + $0x210] sm:$0xff]  ;;  %v5691_v12 = vpack.c.bf16 %v466_v7, %v458_v6  ;;  %v366_v6 = vld [vmem:[%s5553_s14 + $0x38] sm:$0xff] }
  0xb5   : > { %2452 = vmatprep.subr.bf16.mxu1 %v4815_v31  ;;  %v433_v31 = vld [vmem:[%s5553_s14 + $0x250] sm:$0xff]  ;;  %v374_v7 = vld [vmem:[%s5553_s14 + $0x78] sm:$0xff] }
  0xb6   : > { %2152 = vmatmul.mubr.bf16.gmra.mxu0 %v5603_v36  ;;  %v4867_v13 = vld [vmem:[#allocation4 + $0x780] ss:$16 sps:$4 sm:$0xff]  }
  0xb7   : > { %2265 = vmatmul.mubr.bf16.gmra.mxu1 %v5605_v37  ;;  %2340 = vmatpush1.bf16.msra.mxu0 %v4810_v32  ;;  %v4848_v32 = vld [vmem:[#allocation4 + $0x5e4] ss:$16 sps:$4 sm:$0xff]  }
  0xb8   : > { %2453 = vmatpush1.bf16.msra.mxu1 %v4813_v33  ;;  %2341 = vmatprep.subr.bf16.mxu0 %v4818_v40  ;;  %v4851_v33 = vld [vmem:[#allocation4 + $0x7e4] ss:$16 sps:$4 sm:$0xff]   ;;  %v5663_v40 = vpack.c.bf16 %v431_v29, %v423_v28  ;;  %v4870_v28 = vld [vmem:[#allocation4 + $0x560] ss:$16 sps:$4 sm:$0xff]  }
  0xb9   : > { %2454 = vmatprep.subr.bf16.mxu1 %v4821_v41  ;;  %2161 = vmatprep.mubr.bf16.mxu0 %v5609_v43  ;;  %v5665_v41 = vpack.c.bf16 %v433_v31, %v425_v30  ;;  %v4873_v29 = vld [vmem:[#allocation4 + $0x760] ss:$16 sps:$4 sm:$0xff]   ;;  %v472_v30 = vld [vmem:[%s5553_s14 + $0x388] sm:$0xff] }
  0xba   : > { %2274 = vmatprep.mubr.bf16.mxu1 %v5611_v44  ;;  %v480_v31 = vld [vmem:[%s5553_s14 + $0x3c8] sm:$0xff] }
  0xbb   : > { %2342 = vmatpush1.bf16.msra.mxu0 %v4816_v42  ;;  %v442_v42 = vld [vmem:[%s5553_s14 + $0x298] sm:$0xff] }
  0xbc   : > { %2455 = vmatpush1.bf16.msra.mxu1 %v4819_v45  ;;  %2343 = vmatprep.subr.bf16.mxu0 %v4824_v50  ;;  %v450_v45 = vld [vmem:[%s5553_s14 + $0x2d8] sm:$0xff] }
  0xbd   : > { %2456 = vmatprep.subr.bf16.mxu1 %v4827_v51  ;;  %v5671_v50 = vpack.c.bf16 %v450_v45, %v442_v42  ;;  %v4855_v51 = vld [vmem:[#allocation4 + $0x7c0] ss:$16 sps:$4 sm:$0xff]   ;;  %v5709_v45 = vpack.c.bf16 %v480_v31, %v472_v30  ;;  %v4894_v30 = vld [vmem:[#allocation4 + $0xe8] ss:$16 sps:$4 sm:$0xff]  }
  0xbe   : > { %2162 = vmatmul.mubr.bf16.gmra.mxu0 %v5623_v58  ;;  %v4876_v42 = vld [vmem:[#allocation4 + $0x540] ss:$16 sps:$4 sm:$0xff]   ;;  %v4897_v31 = vld [vmem:[#allocation4 + $0x2e8] ss:$16 sps:$4 sm:$0xff]  }
  0xbf   : > { %2275 = vmatmul.mubr.bf16.gmra.mxu1 %v5625_v59  ;;  %2344 = vmatpush1.bf16.msra.mxu0 %v4822_v52  ;;  %v439_v52 = vld [vmem:[%s5553_s14 + $0x280] sm:$0xff] }
  0xc0   : > { %2457 = vmatpush1.bf16.msra.mxu1 %v4825_v55  ;;  %2345 = vmatprep.subr.bf16.mxu0 %v4830_v62  ;;  %v447_v55 = vld [vmem:[%s5553_s14 + $0x2c0] sm:$0xff] }
  0xc1   : > { %2458 = vmatprep.subr.bf16.mxu1 %v4833_v63  ;;  %2171 = vmatprep.mubr.bf16.mxu0 %v5629_v1  ;;  %v4858_v62 = vld [vmem:[#allocation4 + $0x5a0] ss:$16 sps:$4 sm:$0xff]   ;;  %v5683_v4 = vpack.c.bf16 %v447_v55, %v439_v52 }
  0xc2   : > { %2284 = vmatprep.mubr.bf16.mxu1 %v5631_v2  ;;  %v4861_v63 = vld [vmem:[#allocation4 + $0x7a0] ss:$16 sps:$4 sm:$0xff]  }
  0xc3   : > { %2346 = vmatpush1.bf16.msra.mxu0 %v4828_v0  ;;  %v456_v0 = vld [vmem:[%s5553_s14 + $0x308] sm:$0xff]  ;;  %v473_v52 = vld [vmem:[%s5553_s14 + $0x390] sm:$0xff] }
  0xc4   : > { %2459 = vmatpush1.bf16.msra.mxu1 %v4831_v3  ;;  %2347 = vmatprep.subr.bf16.mxu0 %v4836_v8  ;;  %v464_v3 = vld [vmem:[%s5553_s14 + $0x348] sm:$0xff]  ;;  %v4866_v8 = vld [vmem:[#allocation4 + $0x584] ss:$16 sps:$4 sm:$0xff]  }
  0xc5   : > { %2460 = vmatprep.subr.bf16.mxu1 %v4839_v9  ;;  %v4869_v9 = vld [vmem:[#allocation4 + $0x784] ss:$16 sps:$4 sm:$0xff]  }
  0xc6   : > { %2172 = vmatmul.mubr.bf16.gmra.mxu0 %v5643_v14  ;;  %v481_v55 = vld [vmem:[%s5553_s14 + $0x3d0] sm:$0xff] }
  0xc7   : > { %2285 = vmatmul.mubr.bf16.gmra.mxu1 %v5645_v15  ;;  %2348 = vmatpush1.bf16.msra.mxu0 %v4834_v10  ;;  %v4864_v10 = vld [vmem:[#allocation4 + $0x580] ss:$16 sps:$4 sm:$0xff]  }
  0xc8   : > { %2461 = vmatpush1.bf16.msra.mxu1 %v4837_v11  ;;  %2349 = vmatprep.subr.bf16.mxu0 %v4842_v20  ;;  %v5689_v11 = vpack.c.bf16 %v464_v3, %v456_v0  ;;  %v457_v20 = vld [vmem:[%s5553_s14 + $0x310] sm:$0xff]  ;;  %v5725_v3 = vpack.c.bf16 %v481_v55, %v473_v52  ;;  %v4900_v52 = vld [vmem:[#allocation4 + $0xc8] ss:$16 sps:$4 sm:$0xff]  }
  0xc9   : > { %2462 = vmatprep.subr.bf16.mxu1 %v4845_v21  ;;  %2181 = vmatprep.mubr.bf16.mxu0 %v5649_v25  ;;  %v465_v21 = vld [vmem:[%s5553_s14 + $0x350] sm:$0xff] }
  0xca   : > { %2294 = vmatprep.mubr.bf16.mxu1 %v5651_v26 }
  0xcb   : > { %2350 = vmatpush1.bf16.msra.mxu0 %v4840_v22  ;;  %v4872_v22 = vld [vmem:[#allocation4 + $0x564] ss:$16 sps:$4 sm:$0xff]  }
  0xcc   : > { %2463 = vmatpush1.bf16.msra.mxu1 %v4843_v27  ;;  %2351 = vmatprep.subr.bf16.mxu0 %v4848_v32  ;;  %v4875_v27 = vld [vmem:[#allocation4 + $0x764] ss:$16 sps:$4 sm:$0xff]   ;;  %v5703_v32 = vpack.c.bf16 %v463_v19, %v455_v18  ;;  %v5731_v18 = vpack.c.bf16 %v374_v7, %v366_v6  ;;  %v4891_v19 = vld [vmem:[#allocation4 + $0x700] ss:$16 sps:$4 sm:$0xff]   ;;  %v4908_v6 = vld [vmem:[#allocation4 + $0xac] ss:$16 sps:$4 sm:$0xff]  }
  0xcd   : > { %2464 = vmatprep.subr.bf16.mxu1 %v4851_v33  ;;  %v5705_v33 = vpack.c.bf16 %v465_v21, %v457_v20  ;;  %v363_v20 = vld [vmem:[%s5553_s14 + $0x20] sm:$0xff]  ;;  %v4911_v7 = vld [vmem:[#allocation4 + $0x2ac] ss:$16 sps:$4 sm:$0xff]  }
  0xce   : > { %2182 = vmatmul.mubr.bf16.gmra.mxu0 %v5663_v40  ;;  %v371_v21 = vld [vmem:[%s5553_s14 + $0x60] sm:$0xff] }
  0xcf   : > { %2295 = vmatmul.mubr.bf16.gmra.mxu1 %v5665_v41  ;;  %2352 = vmatpush2.bf16.msra.mxu0 %v4846_v34  ;;  %v474_v34 = vld [vmem:[%s5553_s14 + $0x398] sm:$0xff] }
  0xd0   : > { %2465 = vmatpush2.bf16.msra.mxu1 %v4849_v35  ;;  %2353 = vmatprep.subr.bf16.mxu0 %v4854_v46  ;;  %v482_v35 = vld [vmem:[%s5553_s14 + $0x3d8] sm:$0xff] }
  0xd1   : > { %2466 = vmatprep.subr.bf16.mxu1 %v4857_v47  ;;  %2191 = vmatprep.mubr.bf16.mxu0 %v5669_v49  ;;  %v5711_v46 = vpack.c.bf16 %v482_v35, %v474_v34  ;;  %v4879_v47 = vld [vmem:[#allocation4 + $0x740] ss:$16 sps:$4 sm:$0xff]   ;;  %v380_v34 = vld [vmem:[%s5553_s14 + $0xa8] sm:$0xff] }
  0xd2   : > { %2304 = vmatprep.mubr.bf16.mxu1 %v5671_v50  ;;  %v388_v35 = vld [vmem:[%s5553_s14 + $0xe8] sm:$0xff] }
  0xd3   : > { %2354 = vmatpush2.bf16.msra.mxu0 %v4852_v48  ;;  %v471_v48 = vld [vmem:[%s5553_s14 + $0x380] sm:$0xff]  ;;  %v5749_v55 = vpack.c.bf16 %v388_v35, %v380_v34  ;;  %v4915_v35 = vld [vmem:[#allocation4 + $0x288] ss:$16 sps:$4 sm:$0xff]  }
  0xd4   : > { %2467 = vmatpush2.bf16.msra.mxu1 %v4855_v51  ;;  %2355 = vmatprep.subr.bf16.mxu0 %v4860_v60  ;;  %v479_v51 = vld [vmem:[%s5553_s14 + $0x3c0] sm:$0xff] }
  0xd5   : > { %2468 = vmatprep.subr.bf16.mxu1 %v4863_v61  ;;  %v4882_v60 = vld [vmem:[#allocation4 + $0x520] ss:$16 sps:$4 sm:$0xff]   ;;  %v5723_v0 = vpack.c.bf16 %v479_v51, %v471_v48  ;;  %v4902_v48 = vld [vmem:[#allocation4 + $0xcc] ss:$16 sps:$4 sm:$0xff]  }
  0xd6   : > { %2192 = vmatmul.mubr.bf16.gmra.mxu0 %v5683_v4  ;;  %v4885_v61 = vld [vmem:[#allocation4 + $0x720] ss:$16 sps:$4 sm:$0xff]   ;;  %v4905_v51 = vld [vmem:[#allocation4 + $0x2cc] ss:$16 sps:$4 sm:$0xff]  }
  0xd7   : > { %2305 = vmatmul.mubr.bf16.gmra.mxu1 %v5685_v5  ;;  %2356 = vmatpush2.bf16.msra.mxu0 %v4858_v62  ;;  %v364_v62 = vld [vmem:[%s5553_s14 + $0x28] sm:$0xff] }
  0xd8   : > { %2469 = vmatpush2.bf16.msra.mxu1 %v4861_v63  ;;  %2357 = vmatprep.subr.bf16.mxu0 %v4866_v8  ;;  %v372_v63 = vld [vmem:[%s5553_s14 + $0x68] sm:$0xff]  ;;  %v4890_v8 = vld [vmem:[#allocation4 + $0x504] ss:$16 sps:$4 sm:$0xff]  }
  0xd9   : > { %2470 = vmatprep.subr.bf16.mxu1 %v4869_v9  ;;  %2201 = vmatprep.mubr.bf16.mxu0 %v5689_v11  ;;  %v4893_v9 = vld [vmem:[#allocation4 + $0x704] ss:$16 sps:$4 sm:$0xff]  }
  0xda   : > { %2314 = vmatprep.mubr.bf16.mxu1 %v5691_v12 }
  0xdb   : > { %2358 = vmatpush2.bf16.msra.mxu0 %v4864_v10  ;;  %v4888_v10 = vld [vmem:[#allocation4 + $0x500] ss:$16 sps:$4 sm:$0xff]  }
  0xdc   : > { %2471 = vmatpush2.bf16.msra.mxu1 %v4867_v13  ;;  %2359 = vmatprep.subr.bf16.mxu0 %v4872_v22  ;;  %v5729_v13 = vpack.c.bf16 %v372_v63, %v364_v62  ;;  %v365_v22 = vld [vmem:[%s5553_s14 + $0x30] sm:$0xff] }
  0xdd   : > { %2472 = vmatprep.subr.bf16.mxu1 %v4875_v27  ;;  %v373_v27 = vld [vmem:[%s5553_s14 + $0x70] sm:$0xff] }
  0xde   : > { %2202 = vmatmul.mubr.bf16.gmra.mxu0 %v5703_v32  ;;  %v381_v62 = vld [vmem:[%s5553_s14 + $0xb0] sm:$0xff] }
  0xdf   : > { %2315 = vmatmul.mubr.bf16.gmra.mxu1 %v5705_v33  ;;  %2360 = vmatpush2.bf16.msra.mxu0 %v4870_v28  ;;  %v4896_v28 = vld [vmem:[#allocation4 + $0xec] ss:$16 sps:$4 sm:$0xff]   ;;  %v389_v63 = vld [vmem:[%s5553_s14 + $0xf0] sm:$0xff] }
  0xe0   : > { %2473 = vmatpush2.bf16.msra.mxu1 %v4873_v29  ;;  %2361 = vmatprep.subr.bf16.mxu0 %v4878_v38  ;;  %v4899_v29 = vld [vmem:[#allocation4 + $0x2ec] ss:$16 sps:$4 sm:$0xff]   ;;  %v5743_v38 = vpack.c.bf16 %v371_v21, %v363_v20  ;;  %v5765_v21 = vpack.c.bf16 %v389_v63, %v381_v62 }
  0xe1   : > { %2474 = vmatprep.subr.bf16.mxu1 %v4881_v39  ;;  %2211 = vmatprep.mubr.bf16.mxu0 %v5709_v45  ;;  %v5745_v39 = vpack.c.bf16 %v373_v27, %v365_v22  ;;  %v398_v22 = vld [vmem:[%s5553_s14 + $0x138] sm:$0xff]  ;;  %v412_v62 = vld [vmem:[%s5553_s14 + $0x1a8] sm:$0xff] }
  0xe2   : > { %2324 = vmatprep.mubr.bf16.mxu1 %v5711_v46  ;;  %v406_v27 = vld [vmem:[%s5553_s14 + $0x178] sm:$0xff]  ;;  %v420_v63 = vld [vmem:[%s5553_s14 + $0x1e8] sm:$0xff] }
  0xe3   : > { %2362 = vmatpush2.bf16.msra.mxu0 %v4876_v42  ;;  %v382_v42 = vld [vmem:[%s5553_s14 + $0xb8] sm:$0xff]  ;;  %v5771_v34 = vpack.c.bf16 %v406_v27, %v398_v22  ;;  %v5789_v27 = vpack.c.bf16 %v420_v63, %v412_v62  ;;  %v428_v62 = vld [vmem:[%s5553_s14 + $0x228] sm:$0xff] }
  0xe4   : > { %2475 = vmatpush2.bf16.msra.mxu1 %v4879_v47  ;;  %2363 = vmatprep.subr.bf16.mxu0 %v4884_v56  ;;  %v390_v47 = vld [vmem:[%s5553_s14 + $0xf8] sm:$0xff]  ;;  %v436_v63 = vld [vmem:[%s5553_s14 + $0x268] sm:$0xff] }
  0xe5   : > { %2476 = vmatprep.subr.bf16.mxu1 %v4887_v57  ;;  %v5751_v56 = vpack.c.bf16 %v390_v47, %v382_v42  ;;  %v4903_v57 = vld [vmem:[#allocation4 + $0x2c8] ss:$16 sps:$4 sm:$0xff]   ;;  %v395_v42 = vld [vmem:[%s5553_s14 + $0x120] sm:$0xff]  ;;  %6502 = vst [vmem:[#allocation15_spill] sm:$0xff] %v5789_v27 }
  0xe6   : > { %2212 = vmatmul.mubr.bf16.gmra.mxu0 %v5723_v0  ;;  %v403_v47 = vld [vmem:[%s5553_s14 + $0x160] sm:$0xff]  ;;  %v4924_v22 = vld [vmem:[#allocation4 + $0x48] ss:$16 sps:$4 sm:$0xff]  }
  0xe7   : > { %2325 = vmatmul.mubr.bf16.gmra.mxu1 %v5725_v3  ;;  %2364 = vmatpush2.bf16.msra.mxu0 %v4882_v60  ;;  %v379_v60 = vld [vmem:[%s5553_s14 + $0xa0] sm:$0xff] }
  0xe8   : > { %2477 = vmatpush2.bf16.msra.mxu1 %v4885_v61  ;;  %2365 = vmatprep.subr.bf16.mxu0 %v4890_v8  ;;  %v387_v61 = vld [vmem:[%s5553_s14 + $0xe0] sm:$0xff]  ;;  %v4906_v8 = vld [vmem:[#allocation4 + $0xa8] ss:$16 sps:$4 sm:$0xff]  }
  0xe9   : > { %2478 = vmatprep.subr.bf16.mxu1 %v4893_v9  ;;  %2367 = vmatprep.mubr.bf16.mxu0 %v5729_v13  ;;  %v4909_v9 = vld [vmem:[#allocation4 + $0x2a8] ss:$16 sps:$4 sm:$0xff]   ;;  %v5763_v20 = vpack.c.bf16 %v387_v61, %v379_v60 }
  0xea   : > { %2480 = vmatprep.mubr.bf16.mxu1 %v5731_v18  ;;  %v4918_v60 = vld [vmem:[#allocation4 + $0x68] ss:$16 sps:$4 sm:$0xff]  }
  0xeb   : > { %2366 = vmatpush2.bf16.msra.mxu0 %v4888_v10  ;;  %v396_v10 = vld [vmem:[%s5553_s14 + $0x128] sm:$0xff] }
  0xec   : > { %2479 = vmatpush2.bf16.msra.mxu1 %v4891_v19  ;;  %2561 = vmatprep.subr.bf16.mxu0 %v4896_v28  ;;  %v404_v19 = vld [vmem:[%s5553_s14 + $0x168] sm:$0xff] }
  0xed   : > { %2674 = vmatprep.subr.bf16.mxu1 %v4899_v29  ;;  %v4914_v28 = vld [vmem:[#allocation4 + $0x8c] ss:$16 sps:$4 sm:$0xff]   ;;  %v4921_v61 = vld [vmem:[#allocation4 + $0x268] ss:$16 sps:$4 sm:$0xff]  }
  0xee   : > { %2368 = vmatmul.mubr.bf16.vlgmr.msra.gmra.mxu0 %v5743_v38  ;;  %v4917_v29 = vld [vmem:[#allocation4 + $0x28c] ss:$16 sps:$4 sm:$0xff]  }
  0xef   : > { %2481 = vmatmul.mubr.bf16.vlgmr.msra.gmra.mxu1 %v5745_v39  ;;  %2562 = vmatpush1.bf16.msra.mxu0 %v4894_v30  ;;  %v4912_v30 = vld [vmem:[#allocation4 + $0x88] ss:$16 sps:$4 sm:$0xff]  }
  0xf0   : > { %2675 = vmatpush1.bf16.msra.mxu1 %v4897_v31  ;;  %2563 = vmatprep.subr.bf16.mxu0 %v4902_v48  ;;  %v5769_v31 = vpack.c.bf16 %v404_v19, %v396_v10  ;;  %v397_v48 = vld [vmem:[%s5553_s14 + $0x130] sm:$0xff]  ;;  %v4926_v10 = vld [vmem:[#allocation4 + $0x4c] ss:$16 sps:$4 sm:$0xff]  }
  0xf1   : > { %2676 = vmatprep.subr.bf16.mxu1 %v4905_v51  ;;  %2377 = vmatprep.mubr.bf16.mxu0 %v5749_v55  ;;  %v405_v51 = vld [vmem:[%s5553_s14 + $0x170] sm:$0xff]  ;;  %v4929_v19 = vld [vmem:[#allocation4 + $0x24c] ss:$16 sps:$4 sm:$0xff]  }
  0xf2   : > { %2490 = vmatprep.mubr.bf16.mxu1 %v5751_v56 }
  0xf3   : > { %2564 = vmatpush1.bf16.msra.mxu0 %v4900_v52  ;;  %v4920_v52 = vld [vmem:[#allocation4 + $0x6c] ss:$16 sps:$4 sm:$0xff]  }
  0xf4   : > { %2677 = vmatpush1.bf16.msra.mxu1 %v4903_v57  ;;  %2565 = vmatprep.subr.bf16.mxu0 %v4908_v6  ;;  %v4923_v57 = vld [vmem:[#allocation4 + $0x26c] ss:$16 sps:$4 sm:$0xff]   ;;  %v5783_v6 = vpack.c.bf16 %v403_v47, %v395_v42  ;;  %v419_v42 = vld [vmem:[%s5553_s14 + $0x1e0] sm:$0xff]  ;;  %v421_v47 = vld [vmem:[%s5553_s14 + $0x1f0] sm:$0xff] }
  0xf5   : > { %2678 = vmatprep.subr.bf16.mxu1 %v4911_v7  ;;  %v5785_v7 = vpack.c.bf16 %v405_v51, %v397_v48  ;;  %v4932_v48 = vld [vmem:[#allocation4 + $0x2c] ss:$16 sps:$4 sm:$0xff]  }
  0xf6   : > { %2378 = vmatmul.mubr.bf16.gmra.mxu0 %v5763_v20  ;;  %6500 = vst [vmem:[#allocation13_spill] sm:$0xff] %v5783_v6  ;;  %v4935_v51 = vld [vmem:[#allocation4 + $0x22c] ss:$16 sps:$4 sm:$0xff]  }
  0xf7   : > { %2491 = vmatmul.mubr.bf16.gmra.mxu1 %v5765_v21  ;;  %2566 = vmatpush1.bf16.msra.mxu0 %v4906_v8  ;;  %6501 = vst [vmem:[#allocation14_spill] sm:$0xff] %v5785_v7  ;;  %v414_v8 = vld [vmem:[%s5553_s14 + $0x1b8] sm:$0xff] }
  0xf8   : > { %2679 = vmatpush1.bf16.msra.mxu1 %v4909_v9  ;;  %2567 = vmatprep.subr.bf16.mxu0 %v4914_v28  ;;  %v422_v9 = vld [vmem:[%s5553_s14 + $0x1f8] sm:$0xff] }
  0xf9   : > { %2680 = vmatprep.subr.bf16.mxu1 %v4917_v29  ;;  %2387 = vmatprep.mubr.bf16.mxu0 %v5769_v31  ;;  %v5791_v28 = vpack.c.bf16 %v422_v9, %v414_v8  ;;  %v4927_v29 = vld [vmem:[#allocation4 + $0x248] ss:$16 sps:$4 sm:$0xff]  }
  0xfa   : > { %2500 = vmatprep.mubr.bf16.mxu1 %v5771_v34  ;;  %v438_v9 = vld [vmem:[%s5553_s14 + $0x278] sm:$0xff] }
  0xfb   : > { %2568 = vmatpush1.bf16.msra.mxu0 %v4912_v30  ;;  %6503 = vst [vmem:[#allocation16_spill] sm:$0xff] %v5791_v28  ;;  %v411_v30 = vld [vmem:[%s5553_s14 + $0x1a0] sm:$0xff] }
  0xfc   : > { %2681 = vmatpush1.bf16.msra.mxu1 %v4915_v35  ;;  %2569 = vmatprep.subr.bf16.mxu0 %v4920_v52  ;;  %v413_v35 = vld [vmem:[%s5553_s14 + $0x1b0] sm:$0xff]  ;;  %v4930_v52 = vld [vmem:[#allocation4 + $0x28] ss:$16 sps:$4 sm:$0xff]   ;;  %v5803_v8 = vpack.c.bf16 %v419_v42, %v411_v30  ;;  %v435_v42 = vld [vmem:[%s5553_s14 + $0x260] sm:$0xff] }
  0xfd   : > { %2682 = vmatprep.subr.bf16.mxu1 %v4923_v57  ;;  %v4933_v57 = vld [vmem:[#allocation4 + $0x228] ss:$16 sps:$4 sm:$0xff]  }
  0xfe   : > { %2388 = vmatmul.mubr.bf16.gmra.mxu0 %v5783_v6  ;;  %6504 = vst [vmem:[#allocation17_spill] sm:$0xff] %v5803_v8  ;;  %v4939_v30 = vld [vmem:[#allocation4 + $0x208] ss:$16 sps:$4 sm:$0xff]  }
  0xff   : > { %2501 = vmatmul.mubr.bf16.gmra.mxu1 %v5785_v7  ;;  %2570 = vmatpush1.bf16.msra.mxu0 %v4918_v60  ;;  %v5805_v60 = vpack.c.bf16 %v421_v47, %v413_v35  ;;  %v437_v35 = vld [vmem:[%s5553_s14 + $0x270] sm:$0xff]  ;;  %v4944_v47 = vld [vmem:[#allocation4 + $0x1ec] ss:$16 sps:$4 sm:$0xff]  }
 0x100   : > { %2683 = vmatpush1.bf16.msra.mxu1 %v4921_v61  ;;  %2571 = vmatprep.subr.bf16.mxu0 %v4926_v10  ;;  %v430_v61 = vld [vmem:[%s5553_s14 + $0x238] sm:$0xff] }
 0x101   : > { %2684 = vmatprep.subr.bf16.mxu1 %v4929_v19  ;;  %2397 = vmatprep.mubr.bf16.mxu0 %v5789_v27  ;;  %6505 = vst [vmem:[#allocation18_spill] sm:$0xff] %v5805_v60  ;;  %v4938_v10 = vld [vmem:[#allocation4 + $0xc] ss:$16 sps:$4 sm:$0xff]   ;;  %v5809_v27 = vpack.c.bf16 %v436_v63, %v428_v62  ;;  %v5811_v7 = vpack.c.bf16 %v438_v9, %v430_v61  ;;  %v4945_v62 = vld [vmem:[#allocation4 + $0x3e8] ss:$16 sps:$4 sm:$0xff]  }
 0x102   : > { %2510 = vmatprep.mubr.bf16.mxu1 %v5791_v28  ;;  %v4941_v19 = vld [vmem:[#allocation4 + $0x20c] ss:$16 sps:$4 sm:$0xff]   ;;  %v4936_v28 = vld [vmem:[#allocation4 + $0x8] ss:$16 sps:$4 sm:$0xff]  }
 0x103   : > { %2572 = vmatpush1.bf16.msra.mxu0 %v4924_v22  ;;  %6506 = vst [vmem:[#allocation19_spill] sm:$0xff] %v5809_v27  ;;  %6507 = vst [vmem:[#allocation20_spill] sm:$0xff] %v5811_v7  ;;  %v427_v22 = vld [vmem:[%s5553_s14 + $0x220] sm:$0xff]  ;;  %v444_v63 = vld [vmem:[%s5553_s14 + $0x2a8] sm:$0xff] }
 0x104   : > { %2685 = vmatpush1.bf16.msra.mxu1 %v4927_v29  ;;  %2573 = vmatprep.subr.bf16.mxu0 %v4932_v48  ;;  %v429_v29 = vld [vmem:[%s5553_s14 + $0x230] sm:$0xff]  ;;  %v4947_v48 = vld [vmem:[#allocation4 + $0x3ec] ss:$16 sps:$4 sm:$0xff]   ;;  %v5823_v9 = vpack.c.bf16 %v435_v42, %v427_v22  ;;  %v4951_v22 = vld [vmem:[#allocation4 + $0x3c8] ss:$16 sps:$4 sm:$0xff]  }
 0x105   : > { %2686 = vmatprep.subr.bf16.mxu1 %v4935_v51  ;;  %v4942_v51 = vld [vmem:[#allocation4 + $0x1e8] ss:$16 sps:$4 sm:$0xff]   ;;  %v451_v42 = vld [vmem:[%s5553_s14 + $0x2e0] sm:$0xff] }
 0x106   : > { %2398 = vmatmul.mubr.bf16.gmra.mxu0 %v5803_v8  ;;  %v452_v61 = vld [vmem:[%s5553_s14 + $0x2e8] sm:$0xff]  ;;  %6508 = vst [vmem:[#allocation21_spill] sm:$0xff] %v5823_v9 }
 0x107   : > { %2511 = vmatmul.mubr.bf16.gmra.mxu1 %v5805_v60  ;;  %2574 = vmatpush1.bf16.msra.mxu0 %v4930_v52  ;;  %v5825_v52 = vpack.c.bf16 %v437_v35, %v429_v29  ;;  %v454_v60 = vld [vmem:[%s5553_s14 + $0x2f8] sm:$0xff]  ;;  %v453_v29 = vld [vmem:[%s5553_s14 + $0x2f0] sm:$0xff] }
 0x108   : > { %2687 = vmatpush1.bf16.msra.mxu1 %v4933_v57  ;;  %2575 = vmatprep.subr.bf16.mxu0 %v4938_v10  ;;  %v446_v57 = vld [vmem:[%s5553_s14 + $0x2b8] sm:$0xff] }
 0x109   : > { %2688 = vmatprep.subr.bf16.mxu1 %v4941_v19  ;;  %2407 = vmatprep.mubr.bf16.mxu0 %v5809_v27  ;;  %6509 = vst [vmem:[#allocation22_spill] sm:$0xff] %v5825_v52  ;;  %v4950_v10 = vld [vmem:[#allocation4 + $0x1cc] ss:$16 sps:$4 sm:$0xff]   ;;  %v5829_v27 = vpack.c.bf16 %v452_v61, %v444_v63  ;;  %v5831_v8 = vpack.c.bf16 %v454_v60, %v446_v57 }
 0x10a   : > { %2520 = vmatprep.mubr.bf16.mxu1 %v5811_v7  ;;  %v4953_v19 = vld [vmem:[#allocation4 + $0x3cc] ss:$16 sps:$4 sm:$0xff]   ;;  %v4948_v7 = vld [vmem:[#allocation4 + $0x1c8] ss:$16 sps:$4 sm:$0xff]  }
 0x10b   : > { %2576 = vmatpush1.bf16.msra.mxu0 %v4936_v28  ;;  %6510 = vst [vmem:[#allocation23_spill] sm:$0xff] %v5829_v27  ;;  %6511 = vst [vmem:[#allocation24_spill] sm:$0xff] %v5831_v8  ;;  %v443_v28 = vld [vmem:[%s5553_s14 + $0x2a0] sm:$0xff]  ;;  %v4956_v35 = vld [vmem:[#allocation4 + $0x1ac] ss:$16 sps:$4 sm:$0xff]  }
 0x10c   : > { %2689 = vmatpush1.bf16.msra.mxu1 %v4939_v30  ;;  %2577 = vmatprep.subr.bf16.mxu0 %v4944_v47  ;;  %v445_v30 = vld [vmem:[%s5553_s14 + $0x2b0] sm:$0xff]  ;;  %v4959_v60 = vld [vmem:[#allocation4 + $0x3ac] ss:$16 sps:$4 sm:$0xff]   ;;  %v4954_v47 = vld [vmem:[#allocation4 + $0x1a8] ss:$16 sps:$4 sm:$0xff]  }
 0x10d   : > { %2690 = vmatprep.subr.bf16.mxu1 %v4947_v48  ;;  %v4957_v48 = vld [vmem:[#allocation4 + $0x3a8] ss:$16 sps:$4 sm:$0xff]  }
 0x10e   : > { %2408 = vmatmul.mubr.bf16.gmra.mxu0 %v5823_v9  ;;  %v460_v63 = vld [vmem:[%s5553_s14 + $0x328] sm:$0xff]  ;;  %v462_v57 = vld [vmem:[%s5553_s14 + $0x338] sm:$0xff] }
 0x10f   : > { %2521 = vmatmul.mubr.bf16.gmra.mxu1 %v5825_v52  ;;  %2578 = vmatpush2.bf16.msra.mxu0 %v4942_v51  ;;  %v468_v61 = vld [vmem:[%s5553_s14 + $0x368] sm:$0xff]  ;;  %v5843_v51 = vpack.c.bf16 %v451_v42, %v443_v28  ;;  %v470_v52 = vld [vmem:[%s5553_s14 + $0x378] sm:$0xff]  ;;  %v459_v28 = vld [vmem:[%s5553_s14 + $0x320] sm:$0xff] }
 0x110   : > { %2691 = vmatpush2.bf16.msra.mxu1 %v4945_v62  ;;  %2579 = vmatprep.subr.bf16.mxu0 %v4950_v10  ;;  %v5845_v62 = vpack.c.bf16 %v453_v29, %v445_v30  ;;  %v4962_v10 = vld [vmem:[#allocation4 + $0x18c] ss:$16 sps:$4 sm:$0xff]   ;;  %v5849_v9 = vpack.c.bf16 %v468_v61, %v460_v63  ;;  %v5851_v6 = vpack.c.bf16 %v470_v52, %v462_v57  ;;  %v467_v42 = vld [vmem:[%s5553_s14 + $0x360] sm:$0xff]  ;;  %v4966_v52 = vld [vmem:[#allocation4 + $0x168] ss:$16 sps:$4 sm:$0xff]  }
 0x111   : > { %2692 = vmatprep.subr.bf16.mxu1 %v4953_v19  ;;  %2417 = vmatprep.mubr.bf16.mxu0 %v5829_v27  ;;  %6512 = vst [vmem:[#allocation25_spill] sm:$0xff] %v5843_v51  ;;  %v4965_v19 = vld [vmem:[#allocation4 + $0x38c] ss:$16 sps:$4 sm:$0xff]   ;;  %v4963_v27 = vld [vmem:[#allocation4 + $0x388] ss:$16 sps:$4 sm:$0xff]   ;;  %v5863_v61 = vpack.c.bf16 %v467_v42, %v459_v28  ;;  %v475_v28 = vld [vmem:[%s5553_s14 + $0x3a0] sm:$0xff] }
 0x112   : > { %2530 = vmatprep.mubr.bf16.mxu1 %v5831_v8  ;;  %6513 = vst [vmem:[#allocation26_spill] sm:$0xff] %v5845_v62  ;;  %v4960_v8 = vld [vmem:[#allocation4 + $0x188] ss:$16 sps:$4 sm:$0xff]   ;;  %6514 = vst [vmem:[#allocation27_spill] sm:$0xff] %v5849_v9  ;;  %v4968_v30 = vld [vmem:[#allocation4 + $0x16c] ss:$16 sps:$4 sm:$0xff]  }
 0x113   : > { %2580 = vmatpush2.bf16.msra.mxu0 %v4948_v7  ;;  %6515 = vst [vmem:[#allocation28_spill] sm:$0xff] %v5851_v6  ;;  %v461_v7 = vld [vmem:[%s5553_s14 + $0x330] sm:$0xff]  ;;  %v4971_v29 = vld [vmem:[#allocation4 + $0x36c] ss:$16 sps:$4 sm:$0xff]   ;;  %v483_v42 = vld [vmem:[%s5553_s14 + $0x3e0] sm:$0xff] }
 0x114   : > { %2693 = vmatpush2.bf16.msra.mxu1 %v4951_v22  ;;  %2581 = vmatprep.subr.bf16.mxu0 %v4956_v35  ;;  %v469_v22 = vld [vmem:[%s5553_s14 + $0x370] sm:$0xff]  ;;  %v4969_v35 = vld [vmem:[#allocation4 + $0x368] ss:$16 sps:$4 sm:$0xff]  }
 0x115   : > { %2694 = vmatprep.subr.bf16.mxu1 %v4959_v60  ;;  %v476_v60 = vld [vmem:[%s5553_s14 + $0x3a8] sm:$0xff]  ;;  %v5865_v57 = vpack.c.bf16 %v469_v22, %v461_v7  ;;  %v477_v7 = vld [vmem:[%s5553_s14 + $0x3b0] sm:$0xff] }
 0x116   : > { %2418 = vmatmul.mubr.bf16.gmra.mxu0 %v5843_v51  ;;  %v484_v63 = vld [vmem:[%s5553_s14 + $0x3e8] sm:$0xff]  ;;  %v485_v22 = vld [vmem:[%s5553_s14 + $0x3f0] sm:$0xff] }
 0x117   : > { %2531 = vmatmul.mubr.bf16.gmra.mxu1 %v5845_v62  ;;  %2582 = vmatpush2.bf16.msra.mxu0 %v4954_v47  ;;  %v478_v47 = vld [vmem:[%s5553_s14 + $0x3b8] sm:$0xff]  ;;  %v5869_v62 = vpack.c.bf16 %v484_v63, %v476_v60 }
 0x118   : > { %2695 = vmatpush2.bf16.msra.mxu1 %v4957_v48  ;;  %2583 = vmatprep.subr.bf16.mxu0 %v4962_v10  ;;  %v486_v48 = vld [vmem:[%s5553_s14 + $0x3f8] sm:$0xff] }
 0x119   : > { %2696 = vmatprep.subr.bf16.mxu1 %v4965_v19  ;;  %2427 = vmatprep.mubr.bf16.mxu0 %v5849_v9  ;;  %v4974_v10 = vld [vmem:[#allocation4 + $0x14c] ss:$16 sps:$4 sm:$0xff]   ;;  %v4975_v9 = vld [vmem:[#allocation4 + $0x348] ss:$16 sps:$4 sm:$0xff]   ;;  %v5871_v51 = vpack.c.bf16 %v486_v48, %v478_v47 }
 0x11a   : > { %2540 = vmatprep.mubr.bf16.mxu1 %v5851_v6  ;;  %v4977_v19 = vld [vmem:[#allocation4 + $0x34c] ss:$16 sps:$4 sm:$0xff]   ;;  %v4972_v6 = vld [vmem:[#allocation4 + $0x148] ss:$16 sps:$4 sm:$0xff]  }
 0x11b   : > { %2584 = vmatpush2.bf16.msra.mxu0 %v4960_v8  ;;  %v4983_v8 = vld [vmem:[#allocation4 + $0x32c] ss:$16 sps:$4 sm:$0xff]   ;;  %v4978_v60 = vld [vmem:[#allocation4 + $0x128] ss:$16 sps:$4 sm:$0xff]  }
 0x11c   : > { %2697 = vmatpush2.bf16.msra.mxu1 %v4963_v27  ;;  %2585 = vmatprep.subr.bf16.mxu0 %v4968_v30  ;;  %v4980_v27 = vld [vmem:[#allocation4 + $0x12c] ss:$16 sps:$4 sm:$0xff]   ;;  %v5881_v30 = vpack.c.bf16 %v483_v42, %v475_v28  ;;  %v4981_v63 = vld [vmem:[#allocation4 + $0x328] ss:$16 sps:$4 sm:$0xff]  }
 0x11d   : > { %2698 = vmatprep.subr.bf16.mxu1 %v4971_v29  ;;  %v5883_v29 = vpack.c.bf16 %v485_v22, %v477_v7  ;;  %v4986_v47 = vld [vmem:[#allocation4 + $0x10c] ss:$16 sps:$4 sm:$0xff]   ;;  %v4987_v48 = vld [vmem:[#allocation4 + $0x308] ss:$16 sps:$4 sm:$0xff]  }
 0x11e   : > { %2428 = vmatmul.mubr.bf16.gmra.mxu0 %v5863_v61  ;;  %v4998_v28 = vld [vmem:[#allocation4 + $0x4cc] ss:$16 sps:$4 sm:$0xff]   ;;  %v4996_v7 = vld [vmem:[#allocation4 + $0x4c8] ss:$16 sps:$4 sm:$0xff]  }
 0x11f   : > { %2541 = vmatmul.mubr.bf16.gmra.mxu1 %v5865_v57  ;;  %2586 = vmatpush2.bf16.msra.mxu0 %v4966_v52  ;;  %v4989_v52 = vld [vmem:[#allocation4 + $0x30c] ss:$16 sps:$4 sm:$0xff]   ;;  %v4999_v22 = vld [vmem:[#allocation4 + $0x6c8] ss:$16 sps:$4 sm:$0xff]  }
 0x120   : > { %2699 = vmatpush2.bf16.msra.mxu1 %v4969_v35  ;;  %2587 = vmatprep.subr.bf16.mxu0 %v4974_v10  ;;  %v4984_v35 = vld [vmem:[#allocation4 + $0x108] ss:$16 sps:$4 sm:$0xff]   ;;  %v4992_v10 = vld [vmem:[#allocation4 + $0x4ec] ss:$16 sps:$4 sm:$0xff]  }
 0x121   : > { %2700 = vmatprep.subr.bf16.mxu1 %v4977_v19  ;;  %2437 = vmatprep.mubr.bf16.mxu0 %v5869_v62  ;;  %v4995_v19 = vld [vmem:[#allocation4 + $0x6ec] ss:$16 sps:$4 sm:$0xff]  }
 0x122   : > { %2550 = vmatprep.mubr.bf16.mxu1 %v5871_v51  ;;  %v5001_v42 = vld [vmem:[#allocation4 + $0x6cc] ss:$16 sps:$4 sm:$0xff]  }
 0x123   : > { %2588 = vmatpush2.bf16.msra.mxu0 %v4972_v6  ;;  %v4990_v6 = vld [vmem:[#allocation4 + $0x4e8] ss:$16 sps:$4 sm:$0xff]  }
 0x124   : > { %2701 = vmatpush2.bf16.msra.mxu1 %v4975_v9  ;;  %2589 = vmatprep.subr.bf16.mxu0 %v4980_v27  ;;  %v4993_v9 = vld [vmem:[#allocation4 + $0x6e8] ss:$16 sps:$4 sm:$0xff]   ;;  %v5004_v27 = vld [vmem:[#allocation4 + $0x4ac] ss:$16 sps:$4 sm:$0xff]  }
 0x125   : > { %2702 = vmatprep.subr.bf16.mxu1 %v4983_v8  ;;  %v5005_v8 = vld [vmem:[#allocation4 + $0x6a8] ss:$16 sps:$4 sm:$0xff]  }
 0x126   : > { %2438 = vmatmul.mubr.bf16.gmra.mxu0 %v5881_v30 }
 0x127   : > { %2551 = vmatmul.mubr.bf16.gmra.mxu1 %v5883_v29  ;;  %2590 = vmatpush2.bf16.msra.mxu0 %v4978_v60  ;;  %v5010_v60 = vld [vmem:[#allocation4 + $0x48c] ss:$16 sps:$4 sm:$0xff]  }
 0x128   : > { %2703 = vmatpush2.bf16.msra.mxu1 %v4981_v63  ;;  %2591 = vmatprep.subr.bf16.mxu0 %v4986_v47  ;;  %v5011_v63 = vld [vmem:[#allocation4 + $0x688] ss:$16 sps:$4 sm:$0xff]   ;;  %v5016_v47 = vld [vmem:[#allocation4 + $0x46c] ss:$16 sps:$4 sm:$0xff]  }
 0x129   : > { %2704 = vmatprep.subr.bf16.mxu1 %v4989_v52  ;;  %2593 = vmatprep.mubr.bf16.mxu0 %v5571_v53  ;;  %v5007_v53 = vld [vmem:[#allocation4 + $0x6ac] ss:$16 sps:$4 sm:$0xff]   ;;  %v5017_v52 = vld [vmem:[#allocation4 + $0x668] ss:$16 sps:$4 sm:$0xff]  }
 0x12a   : > { %2706 = vmatprep.mubr.bf16.mxu1 %v5573_v54  ;;  %v5002_v54 = vld [vmem:[#allocation4 + $0x4a8] ss:$16 sps:$4 sm:$0xff]  }
 0x12b   : > { %2592 = vmatpush2.bf16.msra.mxu0 %v4984_v35  ;;  %v5022_v35 = vld [vmem:[#allocation4 + $0x44c] ss:$16 sps:$4 sm:$0xff]  }
 0x12c   : > { %2705 = vmatpush2.bf16.msra.mxu1 %v4987_v48  ;;  %2787 = vmatprep.subr.bf16.mxu0 %v4992_v10  ;;  %v5023_v48 = vld [vmem:[#allocation4 + $0x648] ss:$16 sps:$4 sm:$0xff]  }
 0x12d   : > { %2900 = vmatprep.subr.bf16.mxu1 %v4995_v19  ;;  %v5026_v10 = vld [vmem:[#allocation4 + $0x428] ss:$16 sps:$4 sm:$0xff]  }
 0x12e   : > { %2594 = vmatmul.mubr.bf16.vlgmr.msra.gmra.mxu0 %v5583_v16  ;;  %v5013_v16 = vld [vmem:[#allocation4 + $0x68c] ss:$16 sps:$4 sm:$0xff]   ;;  %v5029_v19 = vld [vmem:[#allocation4 + $0x628] ss:$16 sps:$4 sm:$0xff]  }
 0x12f   : > { %2707 = vmatmul.mubr.bf16.vlgmr.msra.gmra.mxu1 %v5585_v17  ;;  %2788 = vmatpush1.bf16.msra.mxu0 %v4990_v6  ;;  %v5008_v17 = vld [vmem:[#allocation4 + $0x488] ss:$16 sps:$4 sm:$0xff]   ;;  %v5034_v6 = vld [vmem:[#allocation4 + $0x40c] ss:$16 sps:$4 sm:$0xff]  }
 0x130   : > { %2901 = vmatpush1.bf16.msra.mxu1 %v4993_v9  ;;  %2789 = vmatprep.subr.bf16.mxu0 %v4998_v28  ;;  %v5035_v9 = vld [vmem:[#allocation4 + $0x608] ss:$16 sps:$4 sm:$0xff]   ;;  %v5040_v28 = vld [vmem:[#allocation4 + $0x5ec] ss:$16 sps:$4 sm:$0xff]  }
 0x131   : > { %2902 = vmatprep.subr.bf16.mxu1 %v5001_v42  ;;  %2603 = vmatprep.mubr.bf16.mxu0 %v5589_v23  ;;  %v5019_v23 = vld [vmem:[#allocation4 + $0x66c] ss:$16 sps:$4 sm:$0xff]   ;;  %v5041_v42 = vld [vmem:[#allocation4 + $0x7e8] ss:$16 sps:$4 sm:$0xff]  }
 0x132   : > { %2716 = vmatprep.mubr.bf16.mxu1 %v5591_v24  ;;  %v5014_v24 = vld [vmem:[#allocation4 + $0x468] ss:$16 sps:$4 sm:$0xff]  }
 0x133   : > { %2790 = vmatpush1.bf16.msra.mxu0 %v4996_v7  ;;  %v5046_v7 = vld [vmem:[#allocation4 + $0x5cc] ss:$16 sps:$4 sm:$0xff]  }
 0x134   : > { %2903 = vmatpush1.bf16.msra.mxu1 %v4999_v22  ;;  %2791 = vmatprep.subr.bf16.mxu0 %v5004_v27  ;;  %v5047_v22 = vld [vmem:[#allocation4 + $0x7c8] ss:$16 sps:$4 sm:$0xff]   ;;  %v5052_v27 = vld [vmem:[#allocation4 + $0x5ac] ss:$16 sps:$4 sm:$0xff]  }
 0x135   : > { %2904 = vmatprep.subr.bf16.mxu1 %v5007_v53  ;;  %v5053_v53 = vld [vmem:[#allocation4 + $0x7a8] ss:$16 sps:$4 sm:$0xff]  }
 0x136   : > { %2604 = vmatmul.mubr.bf16.gmra.mxu0 %v5603_v36  ;;  %v5025_v36 = vld [vmem:[#allocation4 + $0x64c] ss:$16 sps:$4 sm:$0xff]  }
 0x137   : > { %2717 = vmatmul.mubr.bf16.gmra.mxu1 %v5605_v37  ;;  %2792 = vmatpush1.bf16.msra.mxu0 %v5002_v54  ;;  %v5020_v37 = vld [vmem:[#allocation4 + $0x448] ss:$16 sps:$4 sm:$0xff]   ;;  %v5058_v54 = vld [vmem:[#allocation4 + $0x58c] ss:$16 sps:$4 sm:$0xff]  }
 0x138   : > { %2905 = vmatpush1.bf16.msra.mxu1 %v5005_v8  ;;  %2793 = vmatprep.subr.bf16.mxu0 %v5010_v60  ;;  %v5061_v8 = vld [vmem:[#allocation4 + $0x78c] ss:$16 sps:$4 sm:$0xff]  }
 0x139   : > { %2906 = vmatprep.subr.bf16.mxu1 %v5013_v16  ;;  %2613 = vmatprep.mubr.bf16.mxu0 %v5609_v43  ;;  %v5028_v43 = vld [vmem:[#allocation4 + $0x42c] ss:$16 sps:$4 sm:$0xff]  }
 0x13a   : > { %2726 = vmatprep.mubr.bf16.mxu1 %v5611_v44  ;;  %v5031_v44 = vld [vmem:[#allocation4 + $0x62c] ss:$16 sps:$4 sm:$0xff]  }
 0x13b   : > { %2794 = vmatpush1.bf16.msra.mxu0 %v5008_v17  ;;  %v5064_v60 = vld [vmem:[#allocation4 + $0x56c] ss:$16 sps:$4 sm:$0xff]  }
 0x13c   : > { %2907 = vmatpush1.bf16.msra.mxu1 %v5011_v63  ;;  %2795 = vmatprep.subr.bf16.mxu0 %v5016_v47  ;;  %v5067_v16 = vld [vmem:[#allocation4 + $0x76c] ss:$16 sps:$4 sm:$0xff]  }
 0x13d   : > { %2908 = vmatprep.subr.bf16.mxu1 %v5019_v23  ;;  %v5070_v17 = vld [vmem:[#allocation4 + $0x54c] ss:$16 sps:$4 sm:$0xff]   ;;  %v5074_v23 = vld [vmem:[#allocation4 + $0x528] ss:$16 sps:$4 sm:$0xff]  }
 0x13e   : > { %2614 = vmatmul.mubr.bf16.gmra.mxu0 %v5623_v58  ;;  %v5037_v58 = vld [vmem:[#allocation4 + $0x60c] ss:$16 sps:$4 sm:$0xff]  }
 0x13f   : > { %2727 = vmatmul.mubr.bf16.gmra.mxu1 %v5625_v59  ;;  %2796 = vmatpush1.bf16.msra.mxu0 %v5014_v24  ;;  %v5032_v59 = vld [vmem:[#allocation4 + $0x408] ss:$16 sps:$4 sm:$0xff]   ;;  %v5073_v63 = vld [vmem:[#allocation4 + $0x74c] ss:$16 sps:$4 sm:$0xff]  }
 0x140   : > { %2909 = vmatpush1.bf16.msra.mxu1 %v5017_v52  ;;  %2797 = vmatprep.subr.bf16.mxu0 %v5022_v35  ;;  %v5076_v47 = vld [vmem:[#allocation4 + $0x52c] ss:$16 sps:$4 sm:$0xff]   ;;  %v5077_v24 = vld [vmem:[#allocation4 + $0x728] ss:$16 sps:$4 sm:$0xff]  }
 0x141   : > { %2910 = vmatprep.subr.bf16.mxu1 %v5025_v36  ;;  %2623 = vmatprep.mubr.bf16.mxu0 %v5629_v1  ;;  %v5043_v1 = vld [vmem:[#allocation4 + $0x7ec] ss:$16 sps:$4 sm:$0xff]   ;;  %v5080_v35 = vld [vmem:[#allocation4 + $0x508] ss:$16 sps:$4 sm:$0xff]   ;;  %v5922_v36 = vld [vmem:[#allocation6] sm:$0xf] }
 0x142   : > { %2736 = vmatprep.mubr.bf16.mxu1 %v5631_v2  ;;  %v5038_v2 = vld [vmem:[#allocation4 + $0x5e8] ss:$16 sps:$4 sm:$0xff]   ;;  %6516 = vst [vmem:[#allocation29_spill] sm:$0xff] %v5922_v36 }
 0x143   : > { %2798 = vmatpush1.bf16.msra.mxu0 %v5020_v37  ;;  %v5086_v37 = vld [vmem:[#allocation7 + $0x78] sm:$0xff]  }
 0x144   : > { %2911 = vmatpush1.bf16.msra.mxu1 %v5023_v48  ;;  %2799 = vmatprep.subr.bf16.mxu0 %v5028_v43 }
 0x145   : > { %2912 = vmatprep.subr.bf16.mxu1 %v5031_v44  ;;  %v5088_v44 = vld [vmem:[#allocation7 + $0x70] sm:$0xff]  }
 0x146   : > { %2624 = vmatmul.mubr.bf16.gmra.mxu0 %v5643_v14  ;;  %v5049_v14 = vld [vmem:[#allocation4 + $0x7cc] ss:$16 sps:$4 sm:$0xff]  }
 0x147   : > { %2737 = vmatmul.mubr.bf16.gmra.mxu1 %v5645_v15  ;;  %2800 = vmatpush1.bf16.msra.mxu0 %v5026_v10  ;;  %v5044_v15 = vld [vmem:[#allocation4 + $0x5c8] ss:$16 sps:$4 sm:$0xff]  }
 0x148   : > { %2913 = vmatpush1.bf16.msra.mxu1 %v5029_v19  ;;  %2801 = vmatprep.subr.bf16.mxu0 %v5034_v6 }
 0x149   : > { %2914 = vmatprep.subr.bf16.mxu1 %v5037_v58  ;;  %2633 = vmatprep.mubr.bf16.mxu0 %v5649_v25  ;;  %v5055_v25 = vld [vmem:[#allocation4 + $0x7ac] ss:$16 sps:$4 sm:$0xff]   ;;  %v5089_v58 = vld [vmem:[#allocation7 + $0x30] sm:$0xff]  }
 0x14a   : > { %2746 = vmatprep.mubr.bf16.mxu1 %v5651_v26  ;;  %v5050_v26 = vld [vmem:[#allocation4 + $0x5a8] ss:$16 sps:$4 sm:$0xff]  }
 0x14b   : > { %2802 = vmatpush1.bf16.msra.mxu0 %v5032_v59 }
 0x14c   : > { %2915 = vmatpush1.bf16.msra.mxu1 %v5035_v9  ;;  %2803 = vmatprep.subr.bf16.mxu0 %v5040_v28  ;;  %v5090_v28 = vld [vmem:[#allocation7 + $0x68] sm:$0xff]  }
 0x14d   : > { %2916 = vmatprep.subr.bf16.mxu1 %v5043_v1 }
 0x14e   : > { %2634 = vmatmul.mubr.bf16.gmra.mxu0 %v5663_v40  ;;  %v5056_v40 = vld [vmem:[#allocation4 + $0x588] ss:$16 sps:$4 sm:$0xff]  }
 0x14f   : > { %2747 = vmatmul.mubr.bf16.gmra.mxu1 %v5665_v41  ;;  %2804 = vmatpush2.bf16.msra.mxu0 %v5038_v2  ;;  %v5059_v41 = vld [vmem:[#allocation4 + $0x788] ss:$16 sps:$4 sm:$0xff]  }
 0x150   : > { %2917 = vmatpush2.bf16.msra.mxu1 %v5041_v42  ;;  %2805 = vmatprep.subr.bf16.mxu0 %v5046_v7  ;;  %v5092_v42 = vld [vmem:[#allocation7 + $0x60] sm:$0xff]  }
 0x151   : > { %2918 = vmatprep.subr.bf16.mxu1 %v5049_v14  ;;  %2643 = vmatprep.mubr.bf16.mxu0 %v5669_v49  ;;  %v5062_v49 = vld [vmem:[#allocation4 + $0x568] ss:$16 sps:$4 sm:$0xff]  }
 0x152   : > { %2756 = vmatprep.mubr.bf16.mxu1 %v5671_v50  ;;  %v5065_v50 = vld [vmem:[#allocation4 + $0x768] ss:$16 sps:$4 sm:$0xff]  }
 0x153   : > { %2806 = vmatpush2.bf16.msra.mxu0 %v5044_v15 }
 0x154   : > { %2919 = vmatpush2.bf16.msra.mxu1 %v5047_v22  ;;  %2807 = vmatprep.subr.bf16.mxu0 %v5052_v27 }
 0x155   : > { %2920 = vmatprep.subr.bf16.mxu1 %v5055_v25  ;;  %v5093_v25 = vld [vmem:[#allocation7 + $0x20] sm:$0xff]  }
 0x156   : > { %2644 = vmatmul.mubr.bf16.gmra.mxu0 %v5683_v4  ;;  %v5068_v4 = vld [vmem:[#allocation4 + $0x548] ss:$16 sps:$4 sm:$0xff]  }
 0x157   : > { %2757 = vmatmul.mubr.bf16.gmra.mxu1 %v5685_v5  ;;  %2808 = vmatpush2.bf16.msra.mxu0 %v5050_v26  ;;  %v5071_v5 = vld [vmem:[#allocation4 + $0x748] ss:$16 sps:$4 sm:$0xff]  }
 0x158   : > { %2921 = vmatpush2.bf16.msra.mxu1 %v5053_v53  ;;  %2809 = vmatprep.subr.bf16.mxu0 %v5058_v54  ;;  %v5094_v54 = vld [vmem:[#allocation7 + $0x58] sm:$0xff]  }
 0x159   : > { %2922 = vmatprep.subr.bf16.mxu1 %v5061_v8  ;;  %2653 = vmatprep.mubr.bf16.mxu0 %v5689_v11  ;;  %v809_v11 = vlaneseq }
 0x15a   : > { %2766 = vmatprep.mubr.bf16.mxu1 %v5691_v12  ;;  %v5079_v12 = vld [vmem:[#allocation4 + $0x72c] ss:$16 sps:$4 sm:$0xff]  }
 0x15b   : > { %2810 = vmatpush2.bf16.msra.mxu0 %v5056_v40  ;;  %v5917_v52 = vshrl.u32 %v809_v11, 7 }
 0x15c   : > { %2923 = vmatpush2.bf16.msra.mxu1 %v5059_v41  ;;  %2811 = vmatprep.subr.bf16.mxu0 %v5064_v60 }
 0x15d   : > { %2924 = vmatprep.subr.bf16.mxu1 %v5067_v16  ;;  %v815_v48 = vsub.s32 1, %v5917_v52  ;;  %v5096_v16 = vld [vmem:[#allocation7 + $0x50] sm:$0xff]  }
 0x15e   : > { %2654 = vmatmul.mubr.bf16.gmra.mxu0 %v5703_v32  ;;  %v5082_v32 = vld [vmem:[#allocation4 + $0x50c] ss:$16 sps:$4 sm:$0xff]  }
 0x15f   : > { %2767 = vmatmul.mubr.bf16.gmra.mxu1 %v5705_v33  ;;  %2812 = vmatpush2.bf16.msra.mxu0 %v5062_v49  ;;  %v5085_v33 = vld [vmem:[#allocation4 + $0x70c] ss:$16 sps:$4 sm:$0xff]   ;;  %v5931_v43 = vrot.slane %v5922_v36, %v815_v48 }
 0x160   : > { %2925 = vmatpush2.bf16.msra.mxu1 %v5065_v50  ;;  %2813 = vmatprep.subr.bf16.mxu0 %v5070_v17  ;;  %v6517_v17 = vld [vmem:[#allocation13_spill] sm:$0xff]  ;;  %v5102_v48 = vld [vmem:[#allocation7 + $0xf8] sm:$0xff]  }
 0x161   : > { %2926 = vmatprep.subr.bf16.mxu1 %v5073_v63  ;;  %2663 = vmatprep.mubr.bf16.mxu0 %v5709_v45  ;;  %v5083_v45 = vld [vmem:[#allocation4 + $0x708] ss:$16 sps:$4 sm:$0xff]   ;;  %v6518_v63 = vld [vmem:[#allocation14_spill] sm:$0xff] }
 0x162   : > { %2776 = vmatprep.mubr.bf16.mxu1 %v5711_v46  ;;  %v811_v46 = vsub.s32 0, %v5917_v52 }
 0x163   : > { %2814 = vmatpush2.bf16.msra.mxu0 %v5068_v4 }
 0x164   : > { %2927 = vmatpush2.bf16.msra.mxu1 %v5071_v5  ;;  %2815 = vmatprep.subr.bf16.mxu0 %v5076_v47  ;;  %v6519_v5 = vld [vmem:[#allocation15_spill] sm:$0xff]  ;;  %v6520_v47 = vld [vmem:[#allocation16_spill] sm:$0xff] }
 0x165   : > { %2928 = vmatprep.subr.bf16.mxu1 %v5079_v12 }
 0x166   : > { %2664 = vmatmul.mubr.bf16.gmra.mxu0 %v5723_v0  ;;  %v5928_v0 = vrot.slane %v5922_v36, %v811_v46  ;;  %v5117_v36 = vld [vmem:[#allocation7 + $0x80] sm:$0xff]  }
 0x167   : > { %2777 = vmatmul.mubr.bf16.gmra.mxu1 %v5725_v3  ;;  %2816 = vmatpush2.bf16.msra.mxu0 %v5074_v23  ;;  %v5087_v3 = vld [vmem:[#allocation7 + $0x38] sm:$0xff]   ;;  %v5097_v23 = vld [vmem:[#allocation7 + $0x10] sm:$0xff]  }
 0x168   : > { %2929 = vmatpush2.bf16.msra.mxu1 %v5077_v24  ;;  %2817 = vmatprep.subr.bf16.mxu0 %v5082_v32 }
 0x169   : > { %2930 = vmatprep.subr.bf16.mxu1 %v5085_v33  ;;  %2819 = vmatprep.mubr.bf16.mxu0 %v5729_v13  ;;  %v5098_v33 = vld [vmem:[#allocation7 + $0x48] sm:$0xff]  }
 0x16a   : > { %2932 = vmatprep.mubr.bf16.mxu1 %v5731_v18 }
 0x16b   : > { %2818 = vmatpush2.bf16.msra.mxu0 %v5080_v35 }
 0x16c   : > { %2931 = vmatpush2.bf16.msra.mxu1 %v5083_v45  ;;  %4425 = vmatprep.subr.bf16.mxu0 %v5086_v37 }
 0x16d   : > { %4489 = vmatprep.subr.bf16.mxu1 %v5102_v48 }
 0x16e   : > { %v2143_v10 = vpop.f32.mrf.mxu0  ;;  %2820 = vmatmul.mubr.bf16.vlgmr.msra.gmra.mxu0 %v5743_v38 }
 0x16f   : > { %v2256_v19 = vpop.f32.mrf.mxu1  ;;  %2933 = vmatmul.mubr.bf16.vlgmr.msra.gmra.mxu1 %v5745_v39  ;;  %v2144_v13 = vadd.f32 %v2143_v10, %v5928_v0  ;;  %2829 = vmatprep.mubr.bf16.mxu0 %v5749_v55  ;;  %v5099_v10 = vld [vmem:[#allocation7 + $0x8] sm:$0xff]  }
 0x170   : > { %2942 = vmatprep.mubr.bf16.mxu1 %v5751_v56  ;;  %v2145_v18 = vpop.f32.mrf.mxu0  ;;  %4426 = vmatpush3.bf16.msra.mxu0 %v5087_v3  ;;  %v5091_v56 = vld [vmem:[#allocation7 + $0x28] sm:$0xff]  }
 0x171   : > { %v2258_v6 = vpop.f32.mrf.mxu1  ;;  %v5938_v59 = vadd.f32 %v2256_v19, %v2144_v13  ;;  %v2146_v9 = vadd.f32 %v2145_v18, %v5931_v43  ;;  %4427 = vmatprep.subr.bf16.mxu0 %v5088_v44  ;;  %v5103_v19 = vld [vmem:[#allocation7 + $0xb8] sm:$0xff]   ;;  %v5100_v18 = vld [vmem:[#allocation7 + $0x40] sm:$0xff]  }
 0x172   : > { %v5941_v1 = vpop.f32.mrf.mxu0  ;;  %4490 = vmatpush3.bf16.msra.mxu1 %v5103_v19  ;;  %v5106_v19 = vld [vmem:[#allocation7 + $0xe8] sm:$0xff]  }
 0x173   : > { %v5943_v38 = vpop.f32.mrf.mxu1  ;;  %v5945_v39 = vadd.f32 %v2258_v6, %v2146_v9  ;;  %v6521_v9 = vld [vmem:[#allocation17_spill] sm:$0xff] }
 0x174   : > { %v5947_v2 = vpop.f32.mrf.mxu0  ;;  %4428 = vmatpush3.bf16.msra.mxu0 %v5089_v58 }
 0x175   : > { %v5949_v55 = vpop.f32.mrf.mxu1  ;;  %4429 = vmatprep.subr.bf16.mxu0 %v5090_v28  ;;  %v6522_v28 = vld [vmem:[#allocation18_spill] sm:$0xff] }
 0x176   : > { %v2153_v7 = vpop.f32.mrf.mxu0  ;;  %2830 = vmatmul.mubr.bf16.gmra.mxu0 %v5763_v20 }
 0x177   : > { %v2266_v14 = vpop.f32.mrf.mxu1  ;;  %2943 = vmatmul.mubr.bf16.gmra.mxu1 %v5765_v21  ;;  %v2154_v15 = vadd.f32 %v2153_v7, %v5928_v0  ;;  %2839 = vmatprep.mubr.bf16.mxu0 %v5769_v31  ;;  %v6524_v7 = vld [vmem:[#allocation20_spill] sm:$0xff] }
 0x178   : > { %2952 = vmatprep.mubr.bf16.mxu1 %v5771_v34  ;;  %v2155_v22 = vpop.f32.mrf.mxu0  ;;  %4430 = vmatpush3.bf16.msra.mxu0 %v5091_v56  ;;  %v5095_v34 = vld [vmem:[#allocation7 + $0x18] sm:$0xff]  }
 0x179   : > { %v2268_v27 = vpop.f32.mrf.mxu1  ;;  %v5956_v26 = vadd.f32 %v2266_v14, %v2154_v15  ;;  %v2156_v53 = vadd.f32 %v2155_v22, %v5931_v43  ;;  %4431 = vmatprep.subr.bf16.mxu0 %v5092_v42  ;;  %v6523_v42 = vld [vmem:[#allocation19_spill] sm:$0xff]  ;;  %v5101_v22 = vld [vmem:[#allocation7] sm:$0xff]  }
 0x17a   : > { %v2157_v8 = vpop.f32.mrf.mxu0 }
 0x17b   : > { %v2270_v20 = vpop.f32.mrf.mxu1  ;;  %v5959_v40 = vadd.f32 %v2268_v27, %v2156_v53  ;;  %v2158_v21 = vadd.f32 %v2157_v8, %v5928_v0 }
 0x17c   : > { %v5962_v41 = vpop.f32.mrf.mxu0  ;;  %4432 = vmatpush3.bf16.msra.mxu0 %v5093_v25 }
 0x17d   : > { %v5964_v31 = vpop.f32.mrf.mxu1  ;;  %v5966_v60 = vadd.f32 %v2270_v20, %v2158_v21  ;;  %4433 = vmatprep.subr.bf16.mxu0 %v5094_v54  ;;  %v5104_v21 = vld [vmem:[#allocation7 + $0xf0] sm:$0xff]  }
 0x17e   : > { %v2163_v49 = vpop.f32.mrf.mxu0  ;;  %2840 = vmatmul.mubr.bf16.gmra.mxu0 %v6517_v17  ;;  %4491 = vmatprep.subr.bf16.mxu1 %v5104_v21 }
 0x17f   : > { %v2276_v50 = vpop.f32.mrf.mxu1  ;;  %2953 = vmatmul.mubr.bf16.gmra.mxu1 %v6518_v63  ;;  %v2164_v4 = vadd.f32 %v2163_v49, %v5928_v0  ;;  %2849 = vmatprep.mubr.bf16.mxu0 %v6519_v5  ;;  %v5105_v49 = vld [vmem:[#allocation7 + $0xb0] sm:$0xff]   ;;  %v6526_v5 = vld [vmem:[#allocation22_spill] sm:$0xff] }
 0x180   : > { %2962 = vmatprep.mubr.bf16.mxu1 %v6520_v47  ;;  %v2165_v11 = vpop.f32.mrf.mxu0  ;;  %4434 = vmatpush3.bf16.msra.mxu0 %v5095_v34 }
 0x181   : > { %v2278_v12 = vpop.f32.mrf.mxu1  ;;  %v5973_v24 = vadd.f32 %v2276_v50, %v2164_v4  ;;  %v2166_v32 = vadd.f32 %v2165_v11, %v5931_v43  ;;  %4435 = vmatprep.subr.bf16.mxu0 %v5096_v16  ;;  %v6525_v4 = vld [vmem:[#allocation21_spill] sm:$0xff]  ;;  %v6527_v11 = vld [vmem:[#allocation23_spill] sm:$0xff]  ;;  %4492 = vmatpush3.bf16.msra.mxu1 %v5105_v49 }
 0x182   : > { %v2167_v35 = vpop.f32.mrf.mxu0  ;;  %4493 = vmatprep.subr.bf16.mxu1 %v5106_v19 }
 0x183   : > { %v2280_v45 = vpop.f32.mrf.mxu1  ;;  %v5976_v46 = vadd.f32 %v2278_v12, %v2166_v32  ;;  %v2168_v37 = vadd.f32 %v2167_v35, %v5928_v0  ;;  %v6528_v12 = vld [vmem:[#allocation24_spill] sm:$0xff] }
 0x184   : > { %v5979_v3 = vpop.f32.mrf.mxu0  ;;  %4436 = vmatpush3.bf16.msra.mxu0 %v5097_v23 }
 0x185   : > { %v5981_v44 = vpop.f32.mrf.mxu1  ;;  %v5983_v13 = vadd.f32 %v2280_v45, %v2168_v37  ;;  %4437 = vmatprep.subr.bf16.mxu0 %v5098_v33 }
 0x186   : > { %v2173_v6 = vpop.f32.mrf.mxu0  ;;  %2850 = vmatmul.mubr.bf16.gmra.mxu0 %v6521_v9 }
 0x187   : > { %v2286_v58 = vpop.f32.mrf.mxu1  ;;  %2963 = vmatmul.mubr.bf16.gmra.mxu1 %v6522_v28  ;;  %v2174_v56 = vadd.f32 %v2173_v6, %v5928_v0  ;;  %2859 = vmatprep.mubr.bf16.mxu0 %v6523_v42  ;;  %v6529_v42 = vld [vmem:[#allocation25_spill] sm:$0xff] }
 0x188   : > { %2972 = vmatprep.mubr.bf16.mxu1 %v6524_v7  ;;  %v2175_v14 = vpop.f32.mrf.mxu0  ;;  %4438 = vmatpush3.bf16.msra.mxu0 %v5099_v10  ;;  %v6530_v7 = vld [vmem:[#allocation26_spill] sm:$0xff] }
 0x189   : > { %v2288_v15 = vpop.f32.mrf.mxu1  ;;  %v5990_v27 = vadd.f32 %v2286_v58, %v2174_v56  ;;  %v2176_v25 = vadd.f32 %v2175_v14, %v5931_v43  ;;  %4439 = vmatprep.subr.bf16.mxu0 %v5100_v18  ;;  %v5107_v58 = vld [vmem:[#allocation7 + $0xa8] sm:$0xff]  }
 0x18a   : > { %v2177_v53 = vpop.f32.mrf.mxu0  ;;  %4494 = vmatpush3.bf16.msra.mxu1 %v5107_v58 }
 0x18b   : > { %v2290_v54 = vpop.f32.mrf.mxu1  ;;  %v5993_v8 = vadd.f32 %v2288_v15, %v2176_v25  ;;  %v2178_v20 = vadd.f32 %v2177_v53, %v5928_v0  ;;  %v6531_v15 = vld [vmem:[#allocation27_spill] sm:$0xff] }
 0x18c   : > { %v5996_v34 = vpop.f32.mrf.mxu0  ;;  %4440 = vmatpush3.bf16.msra.mxu0 %v5101_v22  ;;  %v6532_v22 = vld [vmem:[#allocation28_spill] sm:$0xff] }
 0x18d   : > { %v5998_v16 = vpop.f32.mrf.mxu1  ;;  %v6000_v50 = vadd.f32 %v2290_v54, %v2178_v20 }
 0x18e   : > { %v2183_v17 = vpop.f32.mrf.mxu0  ;;  %2860 = vmatmul.mubr.bf16.gmra.mxu0 %v6525_v4  ;;  %v5108_v4 = vld [vmem:[#allocation7 + $0xe0] sm:$0xff]  }
 0x18f   : > { %v2296_v63 = vpop.f32.mrf.mxu1  ;;  %2973 = vmatmul.mubr.bf16.gmra.mxu1 %v6526_v5  ;;  %v2184_v47 = vadd.f32 %v2183_v17, %v5928_v0  ;;  %2869 = vmatprep.mubr.bf16.mxu0 %v6527_v11  ;;  %v5109_v11 = vld [vmem:[#allocation7 + $0xa0] sm:$0xff]  }
 0x190   : > { %2982 = vmatprep.mubr.bf16.mxu1 %v6528_v12  ;;  %v2185_v23 = vpop.f32.mrf.mxu0  ;;  %4495 = vmatprep.subr.bf16.mxu1 %v5108_v4 }
 0x191   : > { %v2298_v32 = vpop.f32.mrf.mxu1  ;;  %v6007_v33 = vadd.f32 %v2296_v63, %v2184_v47  ;;  %v2186_v35 = vadd.f32 %v2185_v23, %v5931_v43  ;;  %4496 = vmatpush3.bf16.msra.mxu1 %v5109_v11 }
 0x192   : > { %v2187_v45 = vpop.f32.mrf.mxu0 }
 0x193   : > { %v2300_v37 = vpop.f32.mrf.mxu1  ;;  %v6010_v48 = vadd.f32 %v2298_v32, %v2186_v35  ;;  %v2188_v10 = vadd.f32 %v2187_v45, %v5928_v0 }
 0x194   : > { %v6013_v18 = vpop.f32.mrf.mxu0 }
 0x195   : > { %v6015_v6 = vpop.f32.mrf.mxu1  ;;  %v6017_v9 = vadd.f32 %v2300_v37, %v2188_v10 }
 0x196   : > { %v2193_v28 = vpop.f32.mrf.mxu0  ;;  %2870 = vmatmul.mubr.bf16.gmra.mxu0 %v6529_v42  ;;  %v5111_v42 = vld [vmem:[#allocation7 + $0x98] sm:$0xff]  }
 0x197   : > { %v2306_v56 = vpop.f32.mrf.mxu1  ;;  %2983 = vmatmul.mubr.bf16.gmra.mxu1 %v6530_v7  ;;  %v2194_v14 = vadd.f32 %v2193_v28, %v5928_v0  ;;  %2879 = vmatprep.mubr.bf16.mxu0 %v6531_v15 }
 0x198   : > { %2992 = vmatprep.mubr.bf16.mxu1 %v6532_v22  ;;  %v2195_v25 = vpop.f32.mrf.mxu0 }
 0x199   : > { %v2308_v53 = vpop.f32.mrf.mxu1  ;;  %v6024_v54 = vadd.f32 %v2306_v56, %v2194_v14  ;;  %v2196_v20 = vadd.f32 %v2195_v25, %v5931_v43 }
 0x19a   : > { %v2197_v21 = vpop.f32.mrf.mxu0 }
 0x19b   : > { %v2310_v49 = vpop.f32.mrf.mxu1  ;;  %v6027_v17 = vadd.f32 %v2308_v53, %v2196_v20  ;;  %v2198_v63 = vadd.f32 %v2197_v21, %v5928_v0 }
 0x19c   : > { %v6030_v5 = vpop.f32.mrf.mxu0 }
 0x19d   : > { %v6032_v47 = vpop.f32.mrf.mxu1  ;;  %v6034_v12 = vadd.f32 %v2310_v49, %v2198_v63 }
 0x19e   : > { %v2203_v23 = vpop.f32.mrf.mxu0  ;;  %2880 = vmatmul.mubr.bf16.gmra.mxu0 %v5863_v61 }
 0x19f   : > { %v2316_v32 = vpop.f32.mrf.mxu1  ;;  %2993 = vmatmul.mubr.bf16.gmra.mxu1 %v5865_v57  ;;  %v2204_v35 = vadd.f32 %v2203_v23, %v5928_v0  ;;  %2889 = vmatprep.mubr.bf16.mxu0 %v5869_v62  ;;  %v5110_v57 = vld [vmem:[#allocation7 + $0xd8] sm:$0xff]   ;;  %v5112_v23 = vld [vmem:[#allocation7 + $0xd0] sm:$0xff]  }
 0x1a0   : > { %3002 = vmatprep.mubr.bf16.mxu1 %v5871_v51  ;;  %v2205_v45 = vpop.f32.mrf.mxu0  ;;  %4497 = vmatprep.subr.bf16.mxu1 %v5110_v57 }
 0x1a1   : > { %v2318_v37 = vpop.f32.mrf.mxu1  ;;  %v6041_v10 = vadd.f32 %v2316_v32, %v2204_v35  ;;  %v2206_v19 = vadd.f32 %v2205_v45, %v5931_v43  ;;  %4498 = vmatpush3.bf16.msra.mxu1 %v5111_v42  ;;  %v5113_v32 = vld [vmem:[#allocation7 + $0x90] sm:$0xff]   ;;  %v2148_v35 = vadd.f32 %v5941_v1, %v5928_v0 }
 0x1a2   : > { %v2207_v58 = vpop.f32.mrf.mxu0  ;;  %4499 = vmatprep.subr.bf16.mxu1 %v5112_v23 }
 0x1a3   : > { %v2320_v28 = vpop.f32.mrf.mxu1  ;;  %v6044_v56 = vadd.f32 %v2318_v37, %v2206_v19  ;;  %v2208_v61 = vadd.f32 %v2207_v58, %v5928_v0  ;;  %v2150_v58 = vadd.f32 %v5947_v2, %v5931_v43  ;;  %v2261_v42 = vadd.f32 %v5943_v38, %v2148_v35 }
 0x1a4   : > { %v6047_v7 = vpop.f32.mrf.mxu0 }
 0x1a5   : > { %v6049_v62 = vpop.f32.mrf.mxu1  ;;  %v6051_v51 = vadd.f32 %v2320_v28, %v2208_v61  ;;  %4500 = vmatpush3.bf16.msra.mxu1 %v5113_v32 }
 0x1a6   : > { %v2213_v14 = vpop.f32.mrf.mxu0  ;;  %2890 = vmatmul.mubr.bf16.gmra.mxu0 %v5881_v30 }
 0x1a7   : > { %v2326_v15 = vpop.f32.mrf.mxu1  ;;  %3003 = vmatmul.mubr.bf16.gmra.mxu1 %v5883_v29  ;;  %v2214_v22 = vadd.f32 %v2213_v14, %v5928_v0 }
 0x1a8   : > { %v2215_v25 = vpop.f32.mrf.mxu0 }
 0x1a9   : > { %v2328_v53 = vpop.f32.mrf.mxu1  ;;  %v6056_v20 = vadd.f32 %v2326_v15, %v2214_v22  ;;  %v2216_v21 = vadd.f32 %v2215_v25, %v5931_v43 }
 0x1aa   : > { %v2217_v49 = vpop.f32.mrf.mxu0 }
 0x1ab   : > { %v2330_v63 = vpop.f32.mrf.mxu1  ;;  %v6059_v4 = vadd.f32 %v2328_v53, %v2216_v21  ;;  %v2218_v11 = vadd.f32 %v2217_v49, %v5928_v0  ;;  %v2263_v0 = vadd.f32 %v5949_v55, %v2150_v58 }
 0x1ac   : > { %v6062_v30 = vpop.f32.mrf.mxu0 }
 0x1ad   : > { %v6064_v29 = vpop.f32.mrf.mxu1  ;;  %v6068_v45 = vadd.f32 %v2330_v63, %v2218_v11 }
 0x1ae   : > { %6533 = vst [vmem:[#allocation13_spill] sm:$0xff] %v6064_v29  ;;  %v2369_v37 = vpop.f32.mrf.mxu0 }
 0x1af   : > { %6534 = vst [vmem:[#allocation14_spill] sm:$0xff] %v6068_v45  ;;  %v2482_v19 = vpop.f32.mrf.mxu1  ;;  %v2370_v28 = vadd.f32 %v2369_v37, %v5938_v59  ;;  %v2160_v59 = vadd.f32 %v5962_v41, %v5931_v43  ;;  %v5114_v37 = vld [vmem:[#allocation7 + $0xc8] sm:$0xff]  }
 0x1b0   : > { %v2371_v61 = vpop.f32.mrf.mxu0  ;;  %4501 = vmatprep.subr.bf16.mxu1 %v5114_v37 }
 0x1b1   : > { %v2484_v57 = vpop.f32.mrf.mxu1  ;;  %v2372_v14 = vadd.f32 %v2371_v61, %v5945_v39  ;;  %v2483_v53 = vadd.f32 %v2482_v19, %v2370_v28  ;;  %v5115_v61 = vld [vmem:[#allocation7 + $0x88] sm:$0xff]  }
 0x1b2   : > { %v2373_v15 = vpop.f32.mrf.mxu0  ;;  %4502 = vmatpush3.bf16.msra.mxu1 %v5115_v61 }
 0x1b3   : > { %v2486_v22 = vpop.f32.mrf.mxu1  ;;  %v2485_v1 = vadd.f32 %v2484_v57, %v2372_v14  ;;  %v2374_v25 = vadd.f32 %v2373_v15, %v2261_v42  ;;  %v3013_v55 = vmul.f32 0.01, %v2483_v53 }
 0x1b4   : > { %v2375_v21 = vpop.f32.mrf.mxu0 }
 0x1b5   : > { %v2488_v49 = vpop.f32.mrf.mxu1  ;;  %v2487_v63 = vadd.f32 %v2486_v22, %v2374_v25  ;;  %v2376_v11 = vadd.f32 %v2375_v21, %v2263_v0  ;;  %v3014_v32 = vmul.f32 0.01, %v2485_v1  ;;  %v2273_v22 = vadd.f32 %v5964_v31, %v2160_v59  ;;  %v5116_v21 = vld [vmem:[#allocation7 + $0xc0] sm:$0xff]  }
 0x1b6   : > { %v2379_v2 = vpop.f32.mrf.mxu0  ;;  %4503 = vmatprep.subr.bf16.mxu1 %v5116_v21  ;;  %v2170_v31 = vadd.f32 %v5979_v3, %v5931_v43 }
 0x1b7   : > { %v2492_v23 = vpop.f32.mrf.mxu1  ;;  %v3017_v38 = vmul.f32 0.01, %v2487_v63  ;;  %v2489_v35 = vadd.f32 %v2488_v49, %v2376_v11  ;;  %v2380_v39 = vadd.f32 %v2379_v2, %v5956_v26  ;;  %v3078_v0 = vmax.f32 %v2485_v1, %v3014_v32  ;;  %4504 = vmatpush3.bf16.msra.mxu1 %v5117_v36 }
 0x1b8   : > { %v2381_v58 = vpop.f32.mrf.mxu0  ;;  %v3077_v26 = vmax.f32 %v2483_v53, %v3013_v55 }
 0x1b9   : > { %v2494_v57 = vpop.f32.mrf.mxu1  ;;  %v3018_v19 = vmul.f32 0.01, %v2489_v35  ;;  %v2382_v28 = vadd.f32 %v2381_v58, %v5959_v40  ;;  %v3081_v42 = vmax.f32 %v2487_v63, %v3017_v38  ;;  %v2493_v14 = vadd.f32 %v2492_v23, %v2380_v39 }
 0x1ba   : > { %v2383_v15 = vpop.f32.mrf.mxu0 }
 0x1bb   : > { %v2496_v41 = vpop.f32.mrf.mxu1  ;;  %v3082_v25 = vmax.f32 %v2489_v35, %v3018_v19  ;;  %v2495_v49 = vadd.f32 %v2494_v57, %v2382_v28  ;;  %v2384_v11 = vadd.f32 %v2383_v15, %v5966_v60  ;;  %v3141_v63 = vpack.c.bf16 %v3081_v42, %v3077_v26 }
 0x1bc   : > { %v2385_v2 = vpop.f32.mrf.mxu0  ;;  %v3021_v23 = vmul.f32 0.01, %v2493_v14  ;;  %v2283_v42 = vadd.f32 %v5981_v44, %v2170_v31 }
 0x1bd   : > { %v2498_v45 = vpop.f32.mrf.mxu1  ;;  %v2386_v29 = vadd.f32 %v2385_v2, %v2273_v22  ;;  %v3142_v40 = vpack.c.bf16 %v3082_v25, %v3078_v0  ;;  %v2497_v38 = vadd.f32 %v2496_v41, %v2384_v11  ;;  %v3022_v60 = vmul.f32 0.01, %v2495_v49 }
 0x1be   : > { %v2389_v39 = vpop.f32.mrf.mxu0  ;;  %v3085_v57 = vmax.f32 %v2493_v14, %v3021_v23 }
 0x1bf   : > { %v2502_v37 = vpop.f32.mrf.mxu1  ;;  %v2499_v1 = vadd.f32 %v2498_v45, %v2386_v29  ;;  %v2390_v53 = vadd.f32 %v2389_v39, %v5973_v24  ;;  %3468 = vmatprep.mubr.bf16.mxu0 %v3142_v40  ;;  %v3025_v59 = vmul.f32 0.01, %v2497_v38  ;;  %v3086_v45 = vmax.f32 %v2495_v49, %v3022_v60 }
 0x1c0   : > { %v2391_v32 = vpop.f32.mrf.mxu0  ;;  %3469 = vmatmul.mubr.bf16.vlgmr.msra.gmra.mxu0 %v3141_v63 }
 0x1c1   : > { %v2504_v35 = vpop.f32.mrf.mxu1  ;;  %v3026_v61 = vmul.f32 0.01, %v2499_v1  ;;  %v2503_v55 = vadd.f32 %v2502_v37, %v2390_v53  ;;  %v2392_v58 = vadd.f32 %v2391_v32, %v5976_v46  ;;  %v3089_v19 = vmax.f32 %v2497_v38, %v3025_v59 }
 0x1c2   : > { %v2393_v28 = vpop.f32.mrf.mxu0  ;;  %v2180_v46 = vadd.f32 %v5996_v34, %v5931_v43 }
 0x1c3   : > { %v2506_v36 = vpop.f32.mrf.mxu1  ;;  %v3090_v3 = vmax.f32 %v2499_v1, %v3026_v61  ;;  %v2505_v29 = vadd.f32 %v2504_v35, %v2392_v58  ;;  %v2394_v24 = vadd.f32 %v2393_v28, %v5983_v13  ;;  %v3145_v15 = vpack.c.bf16 %v3089_v19, %v3085_v57 }
 0x1c4   : > { %v2395_v41 = vpop.f32.mrf.mxu0  ;;  %v3029_v0 = vmul.f32 0.01, %v2503_v55  ;;  %v2293_v53 = vadd.f32 %v5998_v16, %v2180_v46 }
 0x1c5   : > { %v2508_v22 = vpop.f32.mrf.mxu1  ;;  %v2507_v25 = vadd.f32 %v2506_v36, %v2394_v24  ;;  %v2396_v21 = vadd.f32 %v2395_v41, %v2283_v42  ;;  %v3146_v11 = vpack.c.bf16 %v3090_v3, %v3086_v45  ;;  %v3030_v2 = vmul.f32 0.01, %v2505_v29 }
 0x1c6   : > { %v2399_v14 = vpop.f32.mrf.mxu0  ;;  %v3093_v23 = vmax.f32 %v2503_v55, %v3029_v0  ;;  %v2190_v42 = vadd.f32 %v6013_v18, %v5931_v43 }
 0x1c7   : > { %v2512_v26 = vpop.f32.mrf.mxu1  ;;  %v3033_v40 = vmul.f32 0.01, %v2507_v25  ;;  %v2509_v44 = vadd.f32 %v2508_v22, %v2396_v21  ;;  %v2400_v63 = vadd.f32 %v2399_v14, %v5990_v27  ;;  %3476 = vmatprep.mubr.bf16.mxu0 %v3146_v11  ;;  %v3094_v60 = vmax.f32 %v2505_v29, %v3030_v2 }
 0x1c8   : > { %v2401_v13 = vpop.f32.mrf.mxu0  ;;  %3477 = vmatmul.mubr.bf16.gmra.mxu0 %v3145_v15  ;;  %v2303_v14 = vadd.f32 %v6015_v6, %v2190_v42 }
 0x1c9   : > { %v2514_v49 = vpop.f32.mrf.mxu1  ;;  %v3097_v38 = vmax.f32 %v2507_v25, %v3033_v40  ;;  %v3034_v39 = vmul.f32 0.01, %v2509_v44  ;;  %v2402_v37 = vadd.f32 %v2401_v13, %v5993_v8  ;;  %v2513_v31 = vadd.f32 %v2512_v26, %v2400_v63 }
 0x1ca   : > { %v2403_v1 = vpop.f32.mrf.mxu0 }
 0x1cb   : > { %v2516_v34 = vpop.f32.mrf.mxu1  ;;  %v3149_v59 = vpack.c.bf16 %v3097_v38, %v3093_v23  ;;  %v3098_v32 = vmax.f32 %v2509_v44, %v3034_v39  ;;  %v2515_v35 = vadd.f32 %v2514_v49, %v2402_v37  ;;  %v2404_v27 = vadd.f32 %v2403_v1, %v6000_v50 }
 0x1cc   : > { %v2405_v61 = vpop.f32.mrf.mxu0  ;;  %v3037_v19 = vmul.f32 0.01, %v2513_v31 }
 0x1cd   : > { %v2518_v58 = vpop.f32.mrf.mxu1  ;;  %v2406_v57 = vadd.f32 %v2405_v61, %v2293_v53  ;;  %v3150_v55 = vpack.c.bf16 %v3098_v32, %v3094_v60  ;;  %v2517_v28 = vadd.f32 %v2516_v34, %v2404_v27  ;;  %v3038_v29 = vmul.f32 0.01, %v2515_v35 }
 0x1ce   : > { %v2409_v36 = vpop.f32.mrf.mxu0  ;;  %v3101_v0 = vmax.f32 %v2513_v31, %v3037_v19 }
 0x1cf   : > { %v2522_v8 = vpop.f32.mrf.mxu1  ;;  %v2519_v3 = vadd.f32 %v2518_v58, %v2406_v57  ;;  %v2410_v16 = vadd.f32 %v2409_v36, %v6007_v33  ;;  %3484 = vmatprep.mubr.bf16.mxu0 %v3150_v55  ;;  %v3041_v24 = vmul.f32 0.01, %v2517_v28  ;;  %v3102_v11 = vmax.f32 %v2515_v35, %v3038_v29 }
 0x1d0   : > { %v2411_v45 = vpop.f32.mrf.mxu0  ;;  %3485 = vmatmul.mubr.bf16.gmra.mxu0 %v3149_v59 }
 0x1d1   : > { %v2524_v15 = vpop.f32.mrf.mxu1  ;;  %v3042_v50 = vmul.f32 0.01, %v2519_v3  ;;  %v2523_v41 = vadd.f32 %v2522_v8, %v2410_v16  ;;  %v2412_v22 = vadd.f32 %v2411_v45, %v6010_v48  ;;  %v3105_v25 = vmax.f32 %v2517_v28, %v3041_v24 }
 0x1d2   : > { %v2413_v21 = vpop.f32.mrf.mxu0  ;;  %v2200_v48 = vadd.f32 %v6030_v5, %v5931_v43  ;;  %v2210_v24 = vadd.f32 %v6047_v7, %v5931_v43 }
 0x1d3   : > { %v2526_v46 = vpop.f32.mrf.mxu1  ;;  %v3106_v18 = vmax.f32 %v2519_v3, %v3042_v50  ;;  %v2525_v26 = vadd.f32 %v2524_v15, %v2412_v22  ;;  %v2414_v33 = vadd.f32 %v2413_v21, %v6017_v9  ;;  %v3153_v2 = vpack.c.bf16 %v3105_v25, %v3101_v0 }
 0x1d4   : > { %v2415_v40 = vpop.f32.mrf.mxu0  ;;  %v3045_v63 = vmul.f32 0.01, %v2523_v41  ;;  %v2313_v61 = vadd.f32 %v6032_v47, %v2200_v48 }
 0x1d5   : > { %v2528_v44 = vpop.f32.mrf.mxu1  ;;  %v2527_v13 = vadd.f32 %v2526_v46, %v2414_v33  ;;  %v2416_v49 = vadd.f32 %v2415_v40, %v2303_v14  ;;  %v3154_v39 = vpack.c.bf16 %v3106_v18, %v3102_v11  ;;  %v3046_v37 = vmul.f32 0.01, %v2525_v26 }
 0x1d6   : > { %v2419_v23 = vpop.f32.mrf.mxu0  ;;  %v3109_v53 = vmax.f32 %v2523_v41, %v3045_v63 }
 0x1d7   : > { %v2532_v38 = vpop.f32.mrf.mxu1  ;;  %v3049_v31 = vmul.f32 0.01, %v2527_v13  ;;  %v2529_v6 = vadd.f32 %v2528_v44, %v2416_v49  ;;  %v2420_v1 = vadd.f32 %v2419_v23, %v6024_v54  ;;  %3492 = vmatprep.mubr.bf16.mxu0 %v3154_v39  ;;  %v3110_v58 = vmax.f32 %v2525_v26, %v3046_v37 }
 0x1d8   : > { %v2421_v9 = vpop.f32.mrf.mxu0  ;;  %3493 = vmatmul.mubr.bf16.gmra.mxu0 %v3153_v2  ;;  %v2323_v26 = vadd.f32 %v6049_v62, %v2210_v24  ;;  %v819_v39 = vsub.s32 2, %v5917_v52 }
 0x1d9   : > { %v2534_v34 = vpop.f32.mrf.mxu1  ;;  %v3113_v60 = vmax.f32 %v2527_v13, %v3049_v31  ;;  %v3050_v59 = vmul.f32 0.01, %v2529_v6  ;;  %v2422_v32 = vadd.f32 %v2421_v9, %v6027_v17  ;;  %v2533_v35 = vadd.f32 %v2532_v38, %v2420_v1 }
 0x1da   : > { %v2423_v27 = vpop.f32.mrf.mxu0  ;;  %v823_v9 = vsub.s32 3, %v5917_v52 }
 0x1db   : > { %v2536_v5 = vpop.f32.mrf.mxu1  ;;  %v3157_v57 = vpack.c.bf16 %v3113_v60, %v3109_v53  ;;  %v3114_v55 = vmax.f32 %v2529_v6, %v3050_v59  ;;  %v2535_v19 = vadd.f32 %v2534_v34, %v2422_v32  ;;  %v2424_v54 = vadd.f32 %v2423_v27, %v6034_v12 }
 0x1dc   : > { %v2425_v28 = vpop.f32.mrf.mxu0  ;;  %v3053_v3 = vmul.f32 0.01, %v2533_v35 }
 0x1dd   : > { %v2538_v36 = vpop.f32.mrf.mxu1  ;;  %v2426_v8 = vadd.f32 %v2425_v28, %v2313_v61  ;;  %v3158_v42 = vpack.c.bf16 %v3114_v55, %v3110_v58  ;;  %v2537_v16 = vadd.f32 %v2536_v5, %v2424_v54  ;;  %v3054_v15 = vmul.f32 0.01, %v2535_v19  ;;  %v6536_v5 = vld [vmem:[#allocation29_spill] sm:$0xff] }
 0x1de   : > { %v2429_v29 = vpop.f32.mrf.mxu0  ;;  %v3117_v21 = vmax.f32 %v2533_v35, %v3053_v3  ;;  %v6120_v61 = vrot.slane %v6536_v5, %v819_v39 }
 0x1df   : > { %v2542_v17 = vpop.f32.mrf.mxu1  ;;  %v2539_v45 = vadd.f32 %v2538_v36, %v2426_v8  ;;  %v2430_v47 = vadd.f32 %v2429_v29, %v6041_v10  ;;  %3500 = vmatprep.mubr.bf16.mxu0 %v3158_v42  ;;  %v3057_v50 = vmul.f32 0.01, %v2537_v16  ;;  %v3118_v11 = vmax.f32 %v2535_v19, %v3054_v15  ;;  %v6537_v19 = vld [vmem:[#allocation14_spill] sm:$0xff] }
 0x1e0   : > { %v2431_v41 = vpop.f32.mrf.mxu0  ;;  %3501 = vmatmul.mubr.bf16.gmra.mxu0 %v3157_v57 }
 0x1e1   : > { %v2544_v22 = vpop.f32.mrf.mxu1  ;;  %v3058_v12 = vmul.f32 0.01, %v2539_v45  ;;  %v2543_v0 = vadd.f32 %v2542_v17, %v2430_v47  ;;  %v2432_v25 = vadd.f32 %v2431_v41, %v6044_v56  ;;  %v3121_v46 = vmax.f32 %v2537_v16, %v3057_v50 }
 0x1e2   : > { %v2433_v14 = vpop.f32.mrf.mxu0  ;;  %v2220_v56 = vadd.f32 %v6062_v30, %v5931_v43  ;;  %v6535_v30 = vld [vmem:[#allocation13_spill] sm:$0xff] }
 0x1e3   : > { %v2546_v18 = vpop.f32.mrf.mxu1  ;;  %v3122_v7 = vmax.f32 %v2539_v45, %v3058_v12  ;;  %v2545_v33 = vadd.f32 %v2544_v22, %v2432_v25  ;;  %v2434_v10 = vadd.f32 %v2433_v14, %v6051_v51  ;;  %v3161_v2 = vpack.c.bf16 %v3121_v46, %v3117_v21 }
 0x1e4   : > { %v2435_v40 = vpop.f32.mrf.mxu0  ;;  %v3061_v63 = vmul.f32 0.01, %v2543_v0  ;;  %v2333_v59 = vadd.f32 %v6535_v30, %v2220_v56 }
 0x1e5   : > { %v2548_v44 = vpop.f32.mrf.mxu1  ;;  %v2547_v13 = vadd.f32 %v2546_v18, %v2434_v10  ;;  %v2436_v49 = vadd.f32 %v2435_v40, %v2323_v26  ;;  %v3162_v38 = vpack.c.bf16 %v3122_v7, %v3118_v11  ;;  %v3062_v62 = vmul.f32 0.01, %v2545_v33 }
 0x1e6   : > { %v2439_v48 = vpop.f32.mrf.mxu0  ;;  %v3125_v34 = vmax.f32 %v2543_v0, %v3061_v63 }
 0x1e7   : > { %v2552_v23 = vpop.f32.mrf.mxu1  ;;  %v3065_v37 = vmul.f32 0.01, %v2547_v13  ;;  %v2549_v31 = vadd.f32 %v2548_v44, %v2436_v49  ;;  %v2440_v51 = vadd.f32 %v2439_v48, %v6056_v20  ;;  %3508 = vmatprep.mubr.bf16.mxu0 %v3162_v38  ;;  %v3126_v20 = vmax.f32 %v2545_v33, %v3062_v62 }
 0x1e8   : > { %v2441_v6 = vpop.f32.mrf.mxu0  ;;  %3509 = vmatmul.mubr.bf16.gmra.mxu0 %v3161_v2 }
 0x1e9   : > { %v2554_v1 = vpop.f32.mrf.mxu1  ;;  %v3129_v53 = vmax.f32 %v2547_v13, %v3065_v37  ;;  %v3066_v60 = vmul.f32 0.01, %v2549_v31  ;;  %v2442_v43 = vadd.f32 %v2441_v6, %v6059_v4  ;;  %v2553_v32 = vadd.f32 %v2552_v23, %v2440_v51 }
 0x1ea   : > { %v2443_v35 = vpop.f32.mrf.mxu0  ;;  %v6124_v4 = vrot.slane %v6536_v5, %v823_v9 }
 0x1eb   : > { %v2556_v27 = vpop.f32.mrf.mxu1  ;;  %v3165_v58 = vpack.c.bf16 %v3129_v53, %v3125_v34  ;;  %v3130_v57 = vmax.f32 %v2549_v31, %v3066_v60  ;;  %v2555_v55 = vadd.f32 %v2554_v1, %v2442_v43  ;;  %v2444_v52 = vadd.f32 %v2443_v35, %v6537_v19 }
 0x1ec   : > { %v2445_v54 = vpop.f32.mrf.mxu0  ;;  %v3069_v42 = vmul.f32 0.01, %v2553_v32 }
 0x1ed   : > { %v2558_v28 = vpop.f32.mrf.mxu1  ;;  %v2446_v36 = vadd.f32 %v2445_v54, %v2333_v59  ;;  %v3166_v8 = vpack.c.bf16 %v3130_v57, %v3126_v20  ;;  %v2557_v3 = vadd.f32 %v2556_v27, %v2444_v52  ;;  %v3070_v17 = vmul.f32 0.01, %v2555_v55 }
 0x1ee   : > { %v2595_v16 = vpop.f32.mrf.mxu0  ;;  %v3133_v0 = vmax.f32 %v2553_v32, %v3069_v42 }
 0x1ef   : > { %v2708_v29 = vpop.f32.mrf.mxu1  ;;  %v2559_v24 = vadd.f32 %v2558_v28, %v2446_v36  ;;  %v2596_v45 = vadd.f32 %v2595_v16, %v6120_v61  ;;  %3516 = vmatprep.mubr.bf16.mxu0 %v3166_v8  ;;  %v3073_v47 = vmul.f32 0.01, %v2557_v3  ;;  %v3134_v14 = vmax.f32 %v2555_v55, %v3070_v17 }
 0x1f0   : > { %v2597_v15 = vpop.f32.mrf.mxu0  ;;  %3517 = vmatmul.mubr.bf16.gmra.mxu0 %v3165_v58 }
 0x1f1   : > { %v2710_v50 = vpop.f32.mrf.mxu1  ;;  %v3074_v41 = vmul.f32 0.01, %v2559_v24  ;;  %v6127_v22 = vadd.f32 %v2708_v29, %v2596_v45  ;;  %v2598_v12 = vadd.f32 %v2597_v15, %v6124_v4  ;;  %v3137_v25 = vmax.f32 %v2557_v3, %v3073_v47 }
 0x1f2   : > { %v6130_v21 = vpop.f32.mrf.mxu0 }
 0x1f3   : > { %v6132_v46 = vpop.f32.mrf.mxu1  ;;  %v3138_v18 = vmax.f32 %v2559_v24, %v3074_v41  ;;  %v6134_v26 = vadd.f32 %v2710_v50, %v2598_v12  ;;  %v3169_v7 = vpack.c.bf16 %v3137_v25, %v3133_v0 }
 0x1f4   : > { %v6136_v33 = vpop.f32.mrf.mxu0 }
 0x1f5   : > { %v6138_v10 = vpop.f32.mrf.mxu1  ;;  %v3170_v11 = vpack.c.bf16 %v3138_v18, %v3134_v14 }
 0x1f6   : > { %v2605_v2 = vpop.f32.mrf.mxu0 }
 0x1f7   : > { %v2718_v40 = vpop.f32.mrf.mxu1  ;;  %v2606_v44 = vadd.f32 %v2605_v2, %v6120_v61  ;;  %3524 = vmatprep.mubr.bf16.mxu0 %v3170_v11 }
 0x1f8   : > { %v2607_v63 = vpop.f32.mrf.mxu0  ;;  %3525 = vmatmul.mubr.bf16.gmra.mxu0 %v3169_v7 }
 0x1f9   : > { %v2720_v13 = vpop.f32.mrf.mxu1  ;;  %v6141_v49 = vadd.f32 %v2718_v40, %v2606_v44  ;;  %v2608_v56 = vadd.f32 %v2607_v63, %v6124_v4 }
 0x1fa   : > { %v2609_v48 = vpop.f32.mrf.mxu0 }
 0x1fb   : > { %v2722_v23 = vpop.f32.mrf.mxu1  ;;  %v6144_v38 = vadd.f32 %v2720_v13, %v2608_v56  ;;  %v2610_v39 = vadd.f32 %v2609_v48, %v6120_v61 }
 0x1fc   : > { %v6147_v62 = vpop.f32.mrf.mxu0 }
 0x1fd   : > { %v6149_v37 = vpop.f32.mrf.mxu1  ;;  %v6151_v31 = vadd.f32 %v2722_v23, %v2610_v39 }
 0x1fe   : > { %v2615_v51 = vpop.f32.mrf.mxu0 }
 0x1ff   : > { %v2728_v6 = vpop.f32.mrf.mxu1  ;;  %v2616_v1 = vadd.f32 %v2615_v51, %v6120_v61 }
 0x200   : > { %v2617_v9 = vpop.f32.mrf.mxu0 }
 0x201   : > { %v2730_v34 = vpop.f32.mrf.mxu1  ;;  %v6154_v53 = vadd.f32 %v2728_v6, %v2616_v1  ;;  %v2618_v60 = vadd.f32 %v2617_v9, %v6124_v4 }
 0x202   : > { %v2619_v43 = vpop.f32.mrf.mxu0 }
 0x203   : > { %v2732_v30 = vpop.f32.mrf.mxu1  ;;  %v6157_v59 = vadd.f32 %v2730_v34, %v2618_v60  ;;  %v2620_v32 = vadd.f32 %v2619_v43, %v6120_v61 }
 0x204   : > { %v6160_v35 = vpop.f32.mrf.mxu0 }
 0x205   : > { %v6162_v27 = vpop.f32.mrf.mxu1  ;;  %v6164_v5 = vadd.f32 %v2732_v30, %v2620_v32 }
 0x206   : > { %v2625_v20 = vpop.f32.mrf.mxu0 }
 0x207   : > { %v2738_v58 = vpop.f32.mrf.mxu1  ;;  %v2626_v57 = vadd.f32 %v2625_v20, %v6120_v61 }
 0x208   : > { %v2627_v55 = vpop.f32.mrf.mxu0 }
 0x209   : > { %v2740_v19 = vpop.f32.mrf.mxu1  ;;  %v6167_v52 = vadd.f32 %v2738_v58, %v2626_v57  ;;  %v2628_v54 = vadd.f32 %v2627_v55, %v6124_v4 }
 0x20a   : > { %v2629_v28 = vpop.f32.mrf.mxu0 }
 0x20b   : > { %v2742_v36 = vpop.f32.mrf.mxu1  ;;  %v6170_v8 = vadd.f32 %v2740_v19, %v2628_v54  ;;  %v2630_v42 = vadd.f32 %v2629_v28, %v6120_v61 }
 0x20c   : > { %v6173_v3 = vpop.f32.mrf.mxu0 }
 0x20d   : > { %v6175_v16 = vpop.f32.mrf.mxu1  ;;  %v6177_v29 = vadd.f32 %v2742_v36, %v2630_v42 }
 0x20e   : > { %v2635_v17 = vpop.f32.mrf.mxu0 }
 0x20f   : > { %v2748_v24 = vpop.f32.mrf.mxu1  ;;  %v2636_v45 = vadd.f32 %v2635_v17, %v6120_v61 }
 0x210   : > { %v2637_v47 = vpop.f32.mrf.mxu0 }
 0x211   : > { %v2750_v15 = vpop.f32.mrf.mxu1  ;;  %v6180_v50 = vadd.f32 %v2748_v24, %v2636_v45  ;;  %v2638_v41 = vadd.f32 %v2637_v47, %v6124_v4 }
 0x212   : > { %v2639_v12 = vpop.f32.mrf.mxu0 }
 0x213   : > { %v2752_v0 = vpop.f32.mrf.mxu1  ;;  %v6183_v25 = vadd.f32 %v2750_v15, %v2638_v41  ;;  %v2640_v14 = vadd.f32 %v2639_v12, %v6120_v61 }
 0x214   : > { %v6186_v18 = vpop.f32.mrf.mxu0 }
 0x215   : > { %v6188_v7 = vpop.f32.mrf.mxu1  ;;  %v6190_v11 = vadd.f32 %v2752_v0, %v2640_v14 }
 0x216   : > { %v2645_v2 = vpop.f32.mrf.mxu0 }
 0x217   : > { %v2758_v40 = vpop.f32.mrf.mxu1  ;;  %v2646_v44 = vadd.f32 %v2645_v2, %v6120_v61 }
 0x218   : > { %v2647_v63 = vpop.f32.mrf.mxu0 }
 0x219   : > { %v2760_v13 = vpop.f32.mrf.mxu1  ;;  %v6193_v56 = vadd.f32 %v2758_v40, %v2646_v44  ;;  %v2648_v48 = vadd.f32 %v2647_v63, %v6124_v4 }
 0x21a   : > { %v2649_v23 = vpop.f32.mrf.mxu0 }
 0x21b   : > { %v2762_v39 = vpop.f32.mrf.mxu1  ;;  %v6196_v51 = vadd.f32 %v2760_v13, %v2648_v48  ;;  %v2650_v6 = vadd.f32 %v2649_v23, %v6120_v61  ;;  %v2600_v48 = vadd.f32 %v6130_v21, %v6120_v61 }
 0x21c   : > { %v6199_v1 = vpop.f32.mrf.mxu0 }
 0x21d   : > { %v6201_v9 = vpop.f32.mrf.mxu1  ;;  %v6203_v34 = vadd.f32 %v2762_v39, %v2650_v6 }
 0x21e   : > { %v2655_v60 = vpop.f32.mrf.mxu0 }
 0x21f   : > { %v2768_v43 = vpop.f32.mrf.mxu1  ;;  %v2656_v30 = vadd.f32 %v2655_v60, %v6120_v61  ;;  %v2602_v60 = vadd.f32 %v6136_v33, %v6124_v4 }
 0x220   : > { %v2657_v32 = vpop.f32.mrf.mxu0 }
 0x221   : > { %v2770_v20 = vpop.f32.mrf.mxu1  ;;  %v6206_v58 = vadd.f32 %v2768_v43, %v2656_v30  ;;  %v2658_v57 = vadd.f32 %v2657_v32, %v6124_v4 }
 0x222   : > { %v2659_v55 = vpop.f32.mrf.mxu0 }
 0x223   : > { %v2772_v19 = vpop.f32.mrf.mxu1  ;;  %v6209_v54 = vadd.f32 %v2770_v20, %v2658_v57  ;;  %v2660_v28 = vadd.f32 %v2659_v55, %v6120_v61  ;;  %v2713_v20 = vadd.f32 %v6132_v46, %v2600_v48 }
 0x224   : > { %v6212_v36 = vpop.f32.mrf.mxu0 }
 0x225   : > { %v6214_v42 = vpop.f32.mrf.mxu1  ;;  %v6216_v17 = vadd.f32 %v2772_v19, %v2660_v28 }
 0x226   : > { %v2665_v24 = vpop.f32.mrf.mxu0 }
 0x227   : > { %v2778_v45 = vpop.f32.mrf.mxu1  ;;  %v2666_v47 = vadd.f32 %v2665_v24, %v6120_v61 }
 0x228   : > { %v2667_v15 = vpop.f32.mrf.mxu0 }
 0x229   : > { %v2780_v41 = vpop.f32.mrf.mxu1  ;;  %v6219_v12 = vadd.f32 %v2778_v45, %v2666_v47  ;;  %v2668_v0 = vadd.f32 %v2667_v15, %v6124_v4 }
 0x22a   : > { %v2669_v14 = vpop.f32.mrf.mxu0 }
 0x22b   : > { %v2782_v2 = vpop.f32.mrf.mxu1  ;;  %v6222_v40 = vadd.f32 %v2780_v41, %v2668_v0  ;;  %v2670_v44 = vadd.f32 %v2669_v14, %v6120_v61  ;;  %v2715_v61 = vadd.f32 %v6138_v10, %v2602_v60 }
 0x22c   : > { %v6225_v63 = vpop.f32.mrf.mxu0 }
 0x22d   : > { %v6227_v13 = vpop.f32.mrf.mxu1  ;;  %v6231_v23 = vadd.f32 %v2782_v2, %v2670_v44 }
 0x22e   : > { %v2821_v39 = vpop.f32.mrf.mxu0 }
 0x22f   : > { %v2934_v6 = vpop.f32.mrf.mxu1  ;;  %v2822_v43 = vadd.f32 %v2821_v39, %v6127_v22  ;;  %v2612_v22 = vadd.f32 %v6147_v62, %v6124_v4 }
 0x230   : > { %v2823_v30 = vpop.f32.mrf.mxu0 }
 0x231   : > { %v2936_v32 = vpop.f32.mrf.mxu1  ;;  %v2935_v57 = vadd.f32 %v2934_v6, %v2822_v43  ;;  %v2824_v55 = vadd.f32 %v2823_v30, %v6134_v26 }
 0x232   : > { %v2825_v19 = vpop.f32.mrf.mxu0 }
 0x233   : > { %v2938_v28 = vpop.f32.mrf.mxu1  ;;  %v2937_v21 = vadd.f32 %v2936_v32, %v2824_v55  ;;  %v2826_v24 = vadd.f32 %v2825_v19, %v2713_v20  ;;  %v3015_v15 = vmul.f32 0.01, %v2935_v57  ;;  %v2725_v55 = vadd.f32 %v6149_v37, %v2612_v22 }
 0x234   : > { %v2827_v45 = vpop.f32.mrf.mxu0 }
 0x235   : > { %v2940_v47 = vpop.f32.mrf.mxu1  ;;  %v2939_v41 = vadd.f32 %v2938_v28, %v2826_v24  ;;  %v2828_v33 = vadd.f32 %v2827_v45, %v2715_v61  ;;  %v3016_v46 = vmul.f32 0.01, %v2937_v21  ;;  %v3079_v10 = vmax.f32 %v2935_v57, %v3015_v15 }
 0x236   : > { %v2831_v0 = vpop.f32.mrf.mxu0 }
 0x237   : > { %v2944_v14 = vpop.f32.mrf.mxu1  ;;  %v3019_v2 = vmul.f32 0.01, %v2939_v41  ;;  %v2941_v44 = vadd.f32 %v2940_v47, %v2828_v33  ;;  %v2832_v26 = vadd.f32 %v2831_v0, %v6141_v49  ;;  %v3080_v62 = vmax.f32 %v2937_v21, %v3016_v46 }
 0x238   : > { %v2833_v48 = vpop.f32.mrf.mxu0 }
 0x239   : > { %v2946_v39 = vpop.f32.mrf.mxu1  ;;  %v3083_v6 = vmax.f32 %v2939_v41, %v3019_v2  ;;  %v3020_v60 = vmul.f32 0.01, %v2941_v44  ;;  %v2834_v43 = vadd.f32 %v2833_v48, %v6144_v38  ;;  %v2945_v30 = vadd.f32 %v2944_v14, %v2832_v26 }
 0x23a   : > { %v2835_v32 = vpop.f32.mrf.mxu0  ;;  %v2622_v38 = vadd.f32 %v6160_v35, %v6124_v4 }
 0x23b   : > { %v2948_v20 = vpop.f32.mrf.mxu1  ;;  %v3143_v19 = vpack.c.bf16 %v3083_v6, %v3079_v10  ;;  %v3084_v28 = vmax.f32 %v2941_v44, %v3020_v60  ;;  %v2947_v61 = vadd.f32 %v2946_v39, %v2834_v43  ;;  %v2836_v24 = vadd.f32 %v2835_v32, %v6151_v31  ;;  %v5118_v60 = vld [vmem:[#allocation9 + $0x38] sm:$0xff]   ;;  %v5119_v43 = vld [vmem:[#allocation9 + $0x30] sm:$0xff]  }
 0x23c   : > { %v2837_v45 = vpop.f32.mrf.mxu0  ;;  %v3023_v57 = vmul.f32 0.01, %v2945_v30  ;;  %v2735_v35 = vadd.f32 %v6162_v27, %v2622_v38  ;;  %4569 = vmatprep.subr.bf16.mxu0 %v5118_v60  ;;  %4601 = vmatprep.subr.bf16.mxu1 %v5118_v60 }
 0x23d   : > { %v2950_v49 = vpop.f32.mrf.mxu1  ;;  %v2838_v47 = vadd.f32 %v2837_v45, %v2725_v55  ;;  %v3144_v33 = vpack.c.bf16 %v3084_v28, %v3080_v62  ;;  %v2949_v15 = vadd.f32 %v2948_v20, %v2836_v24  ;;  %v3024_v21 = vmul.f32 0.01, %v2947_v61  ;;  %4570 = vmatpush3.bf16.msra.mxu0 %v5118_v60 }
 0x23e   : > { %v2841_v41 = vpop.f32.mrf.mxu0  ;;  %v3087_v48 = vmax.f32 %v2945_v30, %v3023_v57  ;;  %v2632_v45 = vadd.f32 %v6173_v3, %v6124_v4  ;;  %4571 = vmatprep.subr.bf16.mxu0 %v5119_v43 }
 0x23f   : > { %v2954_v0 = vpop.f32.mrf.mxu1  ;;  %v2951_v14 = vadd.f32 %v2950_v49, %v2838_v47  ;;  %v2842_v37 = vadd.f32 %v2841_v41, %v6154_v53  ;;  %3565 = vmatprep.mubr.bf16.mxu1 %v3144_v33  ;;  %v3027_v22 = vmul.f32 0.01, %v2949_v15  ;;  %v3088_v55 = vmax.f32 %v2947_v61, %v3024_v21 }
 0x240   : > { %v2843_v46 = vpop.f32.mrf.mxu0  ;;  %3566 = vmatmul.mubr.bf16.vlgmr.msra.gmra.mxu1 %v3143_v19 }
 0x241   : > { %v2956_v2 = vpop.f32.mrf.mxu1  ;;  %v3028_v31 = vmul.f32 0.01, %v2951_v14  ;;  %v2955_v44 = vadd.f32 %v2954_v0, %v2842_v37  ;;  %v2844_v26 = vadd.f32 %v2843_v46, %v6157_v59  ;;  %v3091_v39 = vmax.f32 %v2949_v15, %v3027_v22  ;;  %4609 = vmatpush3.bf16.msra.mxu1 %v5118_v60  ;;  %4572 = vmatpush3.bf16.msra.mxu0 %v5119_v43 }
 0x242   : > { %v2845_v10 = vpop.f32.mrf.mxu0  ;;  %4602 = vmatprep.subr.bf16.mxu1 %v5119_v43  ;;  %v2745_v46 = vadd.f32 %v6175_v16, %v2632_v45 }
 0x243   : > { %v2958_v6 = vpop.f32.mrf.mxu1  ;;  %v3092_v32 = vmax.f32 %v2951_v14, %v3028_v31  ;;  %v2957_v53 = vadd.f32 %v2956_v2, %v2844_v26  ;;  %v2846_v20 = vadd.f32 %v2845_v10, %v6164_v5  ;;  %v3147_v62 = vpack.c.bf16 %v3091_v39, %v3087_v48 }
 0x244   : > { %v2847_v28 = vpop.f32.mrf.mxu0  ;;  %v3031_v24 = vmul.f32 0.01, %v2955_v44 }
 0x245   : > { %v2960_v19 = vpop.f32.mrf.mxu1  ;;  %v2959_v59 = vadd.f32 %v2958_v6, %v2846_v20  ;;  %v2848_v30 = vadd.f32 %v2847_v28, %v2735_v35  ;;  %v3148_v47 = vpack.c.bf16 %v3092_v32, %v3088_v55  ;;  %v3032_v5 = vmul.f32 0.01, %v2957_v53  ;;  %4610 = vmatpush3.bf16.msra.mxu1 %v5119_v43 }
 0x246   : > { %v2851_v49 = vpop.f32.mrf.mxu0  ;;  %v3095_v0 = vmax.f32 %v2955_v44, %v3031_v24  ;;  %v2642_v20 = vadd.f32 %v6186_v18, %v6124_v4 }
 0x247   : > { %v2964_v27 = vpop.f32.mrf.mxu1  ;;  %v3035_v61 = vmul.f32 0.01, %v2959_v59  ;;  %v2961_v33 = vadd.f32 %v2960_v19, %v2848_v30  ;;  %v2852_v57 = vadd.f32 %v2851_v49, %v6167_v52  ;;  %3573 = vmatprep.mubr.bf16.mxu1 %v3148_v47  ;;  %v3096_v2 = vmax.f32 %v2957_v53, %v3032_v5 }
 0x248   : > { %v2853_v15 = vpop.f32.mrf.mxu0  ;;  %3574 = vmatmul.mubr.bf16.gmra.mxu1 %v3147_v62 }
 0x249   : > { %v2966_v41 = vpop.f32.mrf.mxu1  ;;  %v3099_v38 = vmax.f32 %v2959_v59, %v3035_v61  ;;  %v3036_v14 = vmul.f32 0.01, %v2961_v33  ;;  %v2854_v37 = vadd.f32 %v2853_v15, %v6170_v8  ;;  %v2965_v3 = vadd.f32 %v2964_v27, %v2852_v57 }
 0x24a   : > { %v2855_v21 = vpop.f32.mrf.mxu0  ;;  %v2755_v27 = vadd.f32 %v6188_v7, %v2642_v20 }
 0x24b   : > { %v2968_v22 = vpop.f32.mrf.mxu1  ;;  %v3151_v31 = vpack.c.bf16 %v3099_v38, %v3095_v0  ;;  %v3100_v26 = vmax.f32 %v2961_v33, %v3036_v14  ;;  %v2967_v52 = vadd.f32 %v2966_v41, %v2854_v37  ;;  %v2856_v48 = vadd.f32 %v2855_v21, %v6177_v29 }
 0x24c   : > { %v2857_v39 = vpop.f32.mrf.mxu0  ;;  %v3039_v60 = vmul.f32 0.01, %v2965_v3 }
 0x24d   : > { %v2970_v44 = vpop.f32.mrf.mxu1  ;;  %v2858_v10 = vadd.f32 %v2857_v39, %v2745_v46  ;;  %v3152_v6 = vpack.c.bf16 %v3100_v26, %v3096_v2  ;;  %v2969_v8 = vadd.f32 %v2968_v22, %v2856_v48  ;;  %v3040_v53 = vmul.f32 0.01, %v2967_v52 }
 0x24e   : > { %v2861_v35 = vpop.f32.mrf.mxu0  ;;  %v3103_v59 = vmax.f32 %v2965_v3, %v3039_v60 }
 0x24f   : > { %v2974_v32 = vpop.f32.mrf.mxu1  ;;  %v2971_v43 = vadd.f32 %v2970_v44, %v2858_v10  ;;  %v2862_v16 = vadd.f32 %v2861_v35, %v6180_v50  ;;  %3581 = vmatprep.mubr.bf16.mxu1 %v3152_v6  ;;  %v3043_v55 = vmul.f32 0.01, %v2969_v8  ;;  %v3104_v5 = vmax.f32 %v2967_v52, %v3040_v53 }
 0x250   : > { %v2863_v62 = vpop.f32.mrf.mxu0  ;;  %3582 = vmatmul.mubr.bf16.gmra.mxu1 %v3151_v31 }
 0x251   : > { %v2976_v28 = vpop.f32.mrf.mxu1  ;;  %v3044_v29 = vmul.f32 0.01, %v2971_v43  ;;  %v2975_v19 = vadd.f32 %v2974_v32, %v2862_v16  ;;  %v2864_v24 = vadd.f32 %v2863_v62, %v6183_v25  ;;  %v3107_v30 = vmax.f32 %v2969_v8, %v3043_v55 }
 0x252   : > { %v2865_v45 = vpop.f32.mrf.mxu0  ;;  %v2652_v25 = vadd.f32 %v6199_v1, %v6124_v4  ;;  %v2662_v62 = vadd.f32 %v6212_v36, %v6124_v4 }
 0x253   : > { %v2978_v49 = vpop.f32.mrf.mxu1  ;;  %v3108_v18 = vmax.f32 %v2971_v43, %v3044_v29  ;;  %v2977_v47 = vadd.f32 %v2976_v28, %v2864_v24  ;;  %v2866_v50 = vadd.f32 %v2865_v45, %v6190_v11  ;;  %v3155_v61 = vpack.c.bf16 %v3107_v30, %v3103_v59 }
 0x254   : > { %v2867_v33 = vpop.f32.mrf.mxu0  ;;  %v3047_v15 = vmul.f32 0.01, %v2975_v19  ;;  %v2765_v44 = vadd.f32 %v6201_v9, %v2652_v25 }
 0x255   : > { %v2980_v57 = vpop.f32.mrf.mxu1  ;;  %v2979_v41 = vadd.f32 %v2978_v49, %v2866_v50  ;;  %v2868_v0 = vadd.f32 %v2867_v33, %v2755_v27  ;;  %v3156_v37 = vpack.c.bf16 %v3108_v18, %v3104_v5  ;;  %v3048_v3 = vmul.f32 0.01, %v2977_v47 }
 0x256   : > { %v2871_v38 = vpop.f32.mrf.mxu0  ;;  %v3111_v2 = vmax.f32 %v2975_v19, %v3047_v15  ;;  %v2775_v50 = vadd.f32 %v6214_v42, %v2662_v62 }
 0x257   : > { %v2984_v14 = vpop.f32.mrf.mxu1  ;;  %v3051_v21 = vmul.f32 0.01, %v2979_v41  ;;  %v2981_v7 = vadd.f32 %v2980_v57, %v2868_v0  ;;  %v2872_v22 = vadd.f32 %v2871_v38, %v6193_v56  ;;  %3589 = vmatprep.mubr.bf16.mxu1 %v3156_v37  ;;  %v3112_v10 = vmax.f32 %v2977_v47, %v3048_v3 }
 0x258   : > { %v2873_v11 = vpop.f32.mrf.mxu0  ;;  %3590 = vmatmul.mubr.bf16.gmra.mxu1 %v3155_v61 }
 0x259   : > { %v2986_v46 = vpop.f32.mrf.mxu1  ;;  %v3115_v31 = vmax.f32 %v2979_v41, %v3051_v21  ;;  %v3052_v26 = vmul.f32 0.01, %v2981_v7  ;;  %v2874_v52 = vadd.f32 %v2873_v11, %v6196_v51  ;;  %v2985_v48 = vadd.f32 %v2984_v14, %v2872_v22 }
 0x25a   : > { %v2875_v39 = vpop.f32.mrf.mxu0 }
 0x25b   : > { %v2988_v1 = vpop.f32.mrf.mxu1  ;;  %v3159_v6 = vpack.c.bf16 %v3115_v31, %v3111_v2  ;;  %v3116_v60 = vmax.f32 %v2981_v7, %v3052_v26  ;;  %v2987_v8 = vadd.f32 %v2986_v46, %v2874_v52  ;;  %v2876_v56 = vadd.f32 %v2875_v39, %v6203_v34 }
 0x25c   : > { %v2877_v35 = vpop.f32.mrf.mxu0  ;;  %v3055_v16 = vmul.f32 0.01, %v2985_v48 }
 0x25d   : > { %v2990_v32 = vpop.f32.mrf.mxu1  ;;  %v2878_v20 = vadd.f32 %v2877_v35, %v2765_v44  ;;  %v3160_v43 = vpack.c.bf16 %v3116_v60, %v3112_v10  ;;  %v2989_v53 = vadd.f32 %v2988_v1, %v2876_v56  ;;  %v3056_v29 = vmul.f32 0.01, %v2987_v8 }
 0x25e   : > { %v2881_v55 = vpop.f32.mrf.mxu0  ;;  %v3119_v49 = vmax.f32 %v2985_v48, %v3055_v16 }
 0x25f   : > { %v2994_v51 = vpop.f32.mrf.mxu1  ;;  %v2991_v28 = vadd.f32 %v2990_v32, %v2878_v20  ;;  %v2882_v9 = vadd.f32 %v2881_v55, %v6206_v58  ;;  %3597 = vmatprep.mubr.bf16.mxu1 %v3160_v43  ;;  %v3059_v19 = vmul.f32 0.01, %v2989_v53  ;;  %v3120_v61 = vmax.f32 %v2987_v8, %v3056_v29  ;;  %v5123_v29 = vld [vmem:[#allocation9 + $0x10] sm:$0xff]  }
 0x260   : > { %v2883_v24 = vpop.f32.mrf.mxu0  ;;  %3598 = vmatmul.mubr.bf16.gmra.mxu1 %v3159_v6 }
 0x261   : > { %v2996_v59 = vpop.f32.mrf.mxu1  ;;  %v3060_v34 = vmul.f32 0.01, %v2991_v28  ;;  %v2995_v30 = vadd.f32 %v2994_v51, %v2882_v9  ;;  %v2884_v45 = vadd.f32 %v2883_v24, %v6209_v54  ;;  %v3123_v27 = vmax.f32 %v2989_v53, %v3059_v19  ;;  %v5122_v9 = vld [vmem:[#allocation9 + $0x18] sm:$0xff]   ;;  %v5124_v19 = vld [vmem:[#allocation9 + $0x8] sm:$0xff]   ;;  %v5125_v24 = vld [vmem:[#allocation9] sm:$0xff]  }
 0x262   : > { %v2885_v18 = vpop.f32.mrf.mxu0  ;;  %v2672_v54 = vadd.f32 %v6225_v63, %v6124_v4 }
 0x263   : > { %v2998_v47 = vpop.f32.mrf.mxu1  ;;  %v3124_v36 = vmax.f32 %v2991_v28, %v3060_v34  ;;  %v2997_v5 = vadd.f32 %v2996_v59, %v2884_v45  ;;  %v2886_v58 = vadd.f32 %v2885_v18, %v6216_v17  ;;  %v3163_v33 = vpack.c.bf16 %v3123_v27, %v3119_v49  ;;  %v5121_v28 = vld [vmem:[#allocation9 + $0x20] sm:$0xff]  }
 0x264   : > { %v2887_v57 = vpop.f32.mrf.mxu0  ;;  %v3063_v41 = vmul.f32 0.01, %v2995_v30  ;;  %v2785_v26 = vadd.f32 %v6227_v13, %v2672_v54 }
 0x265   : > { %v3000_v15 = vpop.f32.mrf.mxu1  ;;  %v2999_v0 = vadd.f32 %v2998_v47, %v2886_v58  ;;  %v2888_v25 = vadd.f32 %v2887_v57, %v2775_v50  ;;  %v3164_v37 = vpack.c.bf16 %v3124_v36, %v3120_v61  ;;  %v3064_v3 = vmul.f32 0.01, %v2997_v5 }
 0x266   : > { %v2891_v38 = vpop.f32.mrf.mxu0  ;;  %v3127_v11 = vmax.f32 %v2995_v30, %v3063_v41 }
 0x267   : > { %v3004_v14 = vpop.f32.mrf.mxu1  ;;  %v3067_v21 = vmul.f32 0.01, %v2999_v0  ;;  %v3001_v42 = vadd.f32 %v3000_v15, %v2888_v25  ;;  %v2892_v7 = vadd.f32 %v2891_v38, %v6219_v12  ;;  %3605 = vmatprep.mubr.bf16.mxu1 %v3164_v37  ;;  %v3128_v48 = vmax.f32 %v2997_v5, %v3064_v3  ;;  %v6290_v25 = vld [vmem:[%s6466_s4] ss:$0 sm:$0xff] }
 0x268   : > { %v2893_v17 = vpop.f32.mrf.mxu0  ;;  %3606 = vmatmul.mubr.bf16.gmra.mxu1 %v3163_v33 }
 0x269   : > { %v3006_v22 = vpop.f32.mrf.mxu1  ;;  %v3131_v46 = vmax.f32 %v2999_v0, %v3067_v21  ;;  %v3068_v2 = vmul.f32 0.01, %v3001_v42  ;;  %v2894_v31 = vadd.f32 %v2893_v17, %v6222_v40  ;;  %v3005_v4 = vadd.f32 %v3004_v14, %v2892_v7 }
 0x26a   : > { %v2895_v63 = vpop.f32.mrf.mxu0 }
 0x26b   : > { %v3008_v52 = vpop.f32.mrf.mxu1  ;;  %v3167_v39 = vpack.c.bf16 %v3131_v46, %v3127_v11  ;;  %v3132_v1 = vmax.f32 %v3001_v42, %v3068_v2  ;;  %v3007_v44 = vadd.f32 %v3006_v22, %v2894_v31  ;;  %v2896_v12 = vadd.f32 %v2895_v63, %v6231_v23  ;;  %v5120_v23 = vld [vmem:[#allocation9 + $0x28] sm:$0xff]  }
 0x26c   : > { %v2897_v10 = vpop.f32.mrf.mxu0  ;;  %v3071_v8 = vmul.f32 0.01, %v3005_v4  ;;  %4573 = vmatprep.subr.bf16.mxu0 %v5120_v23  ;;  %4603 = vmatprep.subr.bf16.mxu1 %v5120_v23 }
 0x26d   : > { %v2898_v6 = vadd.f32 %v2897_v10, %v2785_v26  ;;  %v3168_v60 = vpack.c.bf16 %v3132_v1, %v3128_v48  ;;  %v3009_v56 = vadd.f32 %v3008_v52, %v2896_v12  ;;  %v3010_v35 = vpop.f32.mrf.mxu1  ;;  %v3072_v32 = vmul.f32 0.01, %v3007_v44  ;;  %4574 = vmatpush3.bf16.msra.mxu0 %v5120_v23  ;;  %4611 = vmatpush3.bf16.msra.mxu1 %v5120_v23 }
 0x26e   : > { %v3135_v43 = vmax.f32 %v3005_v4, %v3071_v8  ;;  %4575 = vmatprep.subr.bf16.mxu0 %v5121_v28  ;;  %4604 = vmatprep.subr.bf16.mxu1 %v5121_v28 }
 0x26f   : > { %v3011_v40 = vadd.f32 %v3010_v35, %v2898_v6  ;;  %3613 = vmatprep.mubr.bf16.mxu1 %v3168_v60  ;;  %v3075_v20 = vmul.f32 0.01, %v3009_v56  ;;  %v3136_v53 = vmax.f32 %v3007_v44, %v3072_v32 }
 0x270   : > { %3614 = vmatmul.mubr.bf16.gmra.mxu1 %v3167_v39 }
 0x271   : > { %v3076_v13 = vmul.f32 0.01, %v3011_v40  ;;  %v3139_v16 = vmax.f32 %v3009_v56, %v3075_v20  ;;  %4576 = vmatpush3.bf16.msra.mxu0 %v5121_v28  ;;  %4612 = vmatpush3.bf16.msra.mxu1 %v5121_v28 }
 0x272   : > { %4577 = vmatprep.subr.bf16.mxu0 %v5122_v9  ;;  %4605 = vmatprep.subr.bf16.mxu1 %v5122_v9 }
 0x273   : > { %v3140_v55 = vmax.f32 %v3011_v40, %v3076_v13  ;;  %v3171_v51 = vpack.c.bf16 %v3139_v16, %v3135_v43 }
 0x275   : > { %v3172_v62 = vpack.c.bf16 %v3140_v55, %v3136_v53  ;;  %4578 = vmatpush3.bf16.msra.mxu0 %v5122_v9  ;;  %4613 = vmatpush3.bf16.msra.mxu1 %v5122_v9 }
 0x276   : > { %4579 = vmatprep.subr.bf16.mxu0 %v5123_v29  ;;  %4606 = vmatprep.subr.bf16.mxu1 %v5123_v29 }
 0x277   : > { %3621 = vmatprep.mubr.bf16.mxu1 %v3172_v62 }
 0x278   : > { %3622 = vmatmul.mubr.bf16.gmra.mxu1 %v3171_v51 }
 0x279   : > { %4580 = vmatpush3.bf16.msra.mxu0 %v5123_v29  ;;  %4614 = vmatpush3.bf16.msra.mxu1 %v5123_v29 }
 0x27a   : > { %4581 = vmatprep.subr.bf16.mxu0 %v5124_v19  ;;  %4607 = vmatprep.subr.bf16.mxu1 %v5124_v19 }
 0x27d   : > { %4582 = vmatpush3.bf16.msra.mxu0 %v5124_v19  ;;  %4615 = vmatpush3.bf16.msra.mxu1 %v5124_v19 }
 0x27e   : > { %4583 = vmatprep.subr.bf16.mxu0 %v5125_v24  ;;  %4608 = vmatprep.subr.bf16.mxu1 %v5125_v24 }
 0x280   : > { %v4441_v59 = vpop.f32.mrf.mxu0 }
 0x281   : > { %4584 = vmatpush3.bf16.msra.mxu0 %v5125_v24  ;;  %4616 = vmatpush3.bf16.msra.mxu1 %v5125_v24 }
 0x282   : > { %v4442_v34 = vpop.f32.mrf.mxu0 }
 0x283   : > { %v4443_v0 = vadd.f32 %v4442_v34, %v4441_v59 }
 0x284   : > { %v4444_v30 = vpop.f32.mrf.mxu0 }
 0x285   : > { %v3471_v37 = vadd.f32 %v4443_v0, %v6290_v25 }
 0x286   : > { %v4445_v45 = vpop.f32.mrf.mxu0 }
 0x287   : > { %v4446_v3 = vadd.f32 %v4445_v45, %v4444_v30 }
 0x288   : > { %v4447_v49 = vpop.f32.mrf.mxu0 }
 0x289   : > { %v3474_v11 = vadd.f32 %v4446_v3, %v6290_v25 }
 0x28a   : > { %v4448_v27 = vpop.f32.mrf.mxu0 }
 0x28b   : > { %v4449_v2 = vadd.f32 %v4448_v27, %v4447_v49 }
 0x28c   : > { %v4450_v18 = vpop.f32.mrf.mxu0 }
 0x28d   : > { %v3479_v39 = vadd.f32 %v4449_v2, %v6290_v25 }
 0x28e   : > { %v4451_v47 = vpop.f32.mrf.mxu0 }
 0x28f   : > { %v4452_v1 = vadd.f32 %v4451_v47, %v4450_v18 }
 0x290   : > { %v4453_v50 = vpop.f32.mrf.mxu0 }
 0x291   : > { %v3482_v32 = vadd.f32 %v4452_v1, %v6290_v25 }
 0x292   : > { %v4454_v36 = vpop.f32.mrf.mxu0 }
 0x293   : > { %v4455_v40 = vadd.f32 %v4454_v36, %v4453_v50 }
 0x294   : > { %v4456_v5 = vpop.f32.mrf.mxu0 }
 0x295   : > { %v3487_v51 = vadd.f32 %v4455_v40, %v6290_v25 }
 0x296   : > { %v4457_v58 = vpop.f32.mrf.mxu0 }
 0x297   : > { %v4458_v62 = vadd.f32 %v4457_v58, %v4456_v5 }
 0x298   : > { %v4459_v61 = vpop.f32.mrf.mxu0 }
 0x299   : > { %v3490_v30 = vadd.f32 %v4458_v62, %v6290_v25 }
 0x29a   : > { %v4460_v33 = vpop.f32.mrf.mxu0 }
 0x29b   : > { %v4461_v45 = vadd.f32 %v4460_v33, %v4459_v61 }
 0x29c   : > { %v6281_v57 = vpop.f32.mrf.mxu0 }
 0x29d   : > { %v3495_v5 = vadd.f32 %v4461_v45, %v6290_v25 }
 0x29e   : > { %v6283_v15 = vpop.f32.mrf.mxu0 }
 0x29f   : > { %v4464_v58 = vadd.f32 %v6283_v15, %v6281_v57 }
 0x2a0   : > { %v6285_v41 = vpop.f32.mrf.mxu0 }
 0x2a2   : > { %v6292_v38 = vpop.f32.mrf.mxu0 }
 0x2a4   : > { %v6295_v7 = vpop.f32.mrf.mxu0 }
 0x2a6   : > { %v6298_v31 = vpop.f32.mrf.mxu0 }
 0x2a8   : > { %v6301_v12 = vpop.f32.mrf.mxu0 }
 0x2aa   : > { %v4472_v13 = vpop.f32.mrf.mxu0 }
 0x2ac   : > { %v4474_v9 = vpop.f32.mrf.mxu0 }
 0x2ae   : > { %v4475_v18 = vpop.f32.mrf.mxu0 }
 0x300   : > { %v4505_v54 = vpop.f32.mrf.mxu1 }
 0x302   : > { %v4506_v14 = vpop.f32.mrf.mxu1 }
 0x303   : > { %v4507_v21 = vadd.f32 %v4506_v14, %v4505_v54 }
 0x304   : > { %v4508_v42 = vpop.f32.mrf.mxu1 }
 0x305   : > { %v3568_v17 = vadd.f32 %v4507_v21, %v3471_v37  ;;  %v4477_v37 = vpop.f32.mrf.mxu0 }
 0x306   : > { %v4509_v22 = vpop.f32.mrf.mxu1 }
 0x307   : > { %v4510_v46 = vadd.f32 %v4509_v22, %v4508_v42  ;;  %v3630_v26 = vmul.f32 0.01, %v3568_v17  ;;  %v4467_v22 = vadd.f32 %v6292_v38, %v6285_v41  ;;  %v4478_v2 = vpop.f32.mrf.mxu0 }
 0x308   : > { %v4511_v63 = vpop.f32.mrf.mxu1 }
 0x309   : > { %v3571_v4 = vadd.f32 %v4510_v46, %v3474_v11  ;;  %v3646_v10 = vmax.f32 %v3568_v17, %v3630_v26  ;;  %v3498_v17 = vadd.f32 %v4464_v58, %v6290_v25  ;;  %v3503_v15 = vadd.f32 %v4467_v22, %v6290_v25  ;;  %v4480_v1 = vpop.f32.mrf.mxu0 }
 0x30a   : > { %v4512_v48 = vpop.f32.mrf.mxu1 }
 0x30b   : > { %v3631_v52 = vmul.f32 0.01, %v3571_v4  ;;  %v4513_v44 = vadd.f32 %v4512_v48, %v4511_v63 }
 0x30c   : > { %v4514_v60 = vpop.f32.mrf.mxu1 }
 0x30d   : > { %v3647_v6 = vmax.f32 %v3571_v4, %v3631_v52  ;;  %v3576_v8 = vadd.f32 %v4513_v44, %v3479_v39  ;;  %v4470_v52 = vadd.f32 %v6298_v31, %v6295_v7 }
 0x30e   : > { %v4515_v56 = vpop.f32.mrf.mxu1 }
 0x30f   : > { %v3662_v35 = vpack.c.bf16 %v3647_v6, %v3646_v10  ;;  %v4516_v20 = vadd.f32 %v4515_v56, %v4514_v60  ;;  %v3632_v16 = vmul.f32 0.01, %v3576_v8  ;;  %v3506_v60 = vadd.f32 %v4470_v52, %v6290_v25 }
 0x310   : > { %v4517_v43 = vpop.f32.mrf.mxu1 }
 0x311   : > { %4585 = vmatprep.mubr.bf16.mxu0 %v3662_v35  ;;  %v3579_v53 = vadd.f32 %v4516_v20, %v3482_v32  ;;  %v3648_v19 = vmax.f32 %v3576_v8, %v3632_v16  ;;  %v4473_v8 = vadd.f32 %v4472_v13, %v6301_v12  ;;  %v4481_v32 = vpop.f32.mrf.mxu0  ;;  %v4476_v16 = vadd.f32 %v4475_v18, %v4474_v9 }
 0x312   : > { %v4518_v55 = vpop.f32.mrf.mxu1  ;;  %v4479_v13 = vadd.f32 %v4478_v2, %v4477_v37  ;;  %v4482_v18 = vadd.f32 %v4481_v32, %v4480_v1 }
 0x313   : > { %v3633_v23 = vmul.f32 0.01, %v3579_v53  ;;  %v4519_v28 = vadd.f32 %v4518_v55, %v4517_v43  ;;  %v3511_v31 = vadd.f32 %v4473_v8, %v6290_v25  ;;  %v3514_v12 = vadd.f32 %v4476_v16, %v6290_v25 }
 0x314   : > { %v4520_v29 = vpop.f32.mrf.mxu1  ;;  %v3519_v9 = vadd.f32 %v4479_v13, %v6290_v25  ;;  %v3522_v37 = vadd.f32 %v4482_v18, %v6290_v25 }
 0x315   : > { %v3649_v24 = vmax.f32 %v3579_v53, %v3633_v23  ;;  %v3584_v59 = vadd.f32 %v4519_v28, %v3487_v51  ;;  %v4483_v51 = vpop.f32.mrf.mxu0 }
 0x316   : > { %v4521_v34 = vpop.f32.mrf.mxu1 }
 0x317   : > { %v3663_v49 = vpack.c.bf16 %v3649_v24, %v3648_v19  ;;  %v4522_v27 = vadd.f32 %v4521_v34, %v4520_v29  ;;  %v3634_v50 = vmul.f32 0.01, %v3584_v59  ;;  %v4484_v34 = vpop.f32.mrf.mxu0 }
 0x318   : > { %v4523_v47 = vpop.f32.mrf.mxu1 }
 0x319   : > { %v3587_v36 = vadd.f32 %v4522_v27, %v3490_v30  ;;  %4586 = vmatmul.mubr.bf16.vlgmr.msra.gmra.mxu0 %v3663_v49  ;;  %v3650_v21 = vmax.f32 %v3584_v59, %v3634_v50 }
 0x31a   : > { %v4524_v0 = vpop.f32.mrf.mxu1 }
 0x31b   : > { %v3635_v54 = vmul.f32 0.01, %v3587_v36  ;;  %v4525_v14 = vadd.f32 %v4524_v0, %v4523_v47 }
 0x31c   : > { %v4526_v3 = vpop.f32.mrf.mxu1 }
 0x31d   : > { %v3651_v42 = vmax.f32 %v3587_v36, %v3635_v54  ;;  %v3592_v61 = vadd.f32 %v4525_v14, %v3495_v5  ;;  %v4486_v36 = vpop.f32.mrf.mxu0 }
 0x31e   : > { %v4527_v33 = vpop.f32.mrf.mxu1 }
 0x31f   : > { %v4528_v11 = vadd.f32 %v4527_v33, %v4526_v3  ;;  %v3664_v46 = vpack.c.bf16 %v3651_v42, %v3650_v21  ;;  %v3636_v4 = vmul.f32 0.01, %v3592_v61  ;;  %v4485_v3 = vadd.f32 %v4484_v34, %v4483_v51 }
 0x320   : > { %v4529_v26 = vpop.f32.mrf.mxu1 }
 0x321   : > { %v3595_v63 = vadd.f32 %v4528_v11, %v3498_v17  ;;  %4589 = vmatprep.mubr.bf16.mxu0 %v3664_v46  ;;  %v3652_v10 = vmax.f32 %v3592_v61, %v3636_v4  ;;  %v4487_v61 = vpop.f32.mrf.mxu0  ;;  %v3527_v46 = vadd.f32 %v4485_v3, %v6290_v25 }
 0x322   : > { %v4530_v57 = vpop.f32.mrf.mxu1  ;;  %v4488_v2 = vadd.f32 %v4487_v61, %v4486_v36 }
 0x323   : > { %v3637_v48 = vmul.f32 0.01, %v3595_v63  ;;  %v4531_v39 = vadd.f32 %v4530_v57, %v4529_v26 }
 0x324   : > { %v4532_v44 = vpop.f32.mrf.mxu1 }
 0x325   : > { %v3653_v6 = vmax.f32 %v3595_v63, %v3637_v48  ;;  %v3600_v41 = vadd.f32 %v4531_v39, %v3503_v15  ;;  %v3530_v39 = vadd.f32 %v4488_v2, %v6290_v25 }
 0x326   : > { %v4533_v38 = vpop.f32.mrf.mxu1 }
 0x327   : > { %v3665_v56 = vpack.c.bf16 %v3653_v6, %v3652_v10  ;;  %v4534_v35 = vadd.f32 %v4533_v38, %v4532_v44  ;;  %v3638_v20 = vmul.f32 0.01, %v3600_v41 }
 0x328   : > { %v4535_v40 = vpop.f32.mrf.mxu1 }
 0x329   : > { %v3603_v43 = vadd.f32 %v4534_v35, %v3506_v60  ;;  %4590 = vmatmul.mubr.bf16.gmra.mxu0 %v3665_v56  ;;  %v3654_v23 = vmax.f32 %v3600_v41, %v3638_v20  ;;  %v4412_v56 = vld [vmem:[%s6468_s6] ss:$0 sm:$0xff] }
 0x32a   : > { %v4536_v7 = vpop.f32.mrf.mxu1 }
 0x32b   : > { %v3639_v53 = vmul.f32 0.01, %v3603_v43  ;;  %v4537_v55 = vadd.f32 %v4536_v7, %v4535_v40 }
 0x32c   : > { %v4538_v62 = vpop.f32.mrf.mxu1 }
 0x32d   : > { %v3655_v28 = vmax.f32 %v3603_v43, %v3639_v53  ;;  %v3608_v29 = vadd.f32 %v4537_v55, %v3511_v31 }
 0x32e   : > { %v4539_v19 = vpop.f32.mrf.mxu1 }
 0x32f   : > { %v4540_v24 = vadd.f32 %v4539_v19, %v4538_v62  ;;  %v3666_v59 = vpack.c.bf16 %v3655_v28, %v3654_v23  ;;  %v3640_v45 = vmul.f32 0.01, %v3608_v29 }
 0x330   : > { %v4541_v30 = vpop.f32.mrf.mxu1 }
 0x331   : > { %v3611_v49 = vadd.f32 %v4540_v24, %v3514_v12  ;;  %4593 = vmatprep.mubr.bf16.mxu1 %v3666_v59  ;;  %v3656_v5 = vmax.f32 %v3608_v29, %v3640_v45 }
 0x332   : > { %v4542_v27 = vpop.f32.mrf.mxu1 }
 0x333   : > { %v3641_v47 = vmul.f32 0.01, %v3611_v49  ;;  %v4543_v50 = vadd.f32 %v4542_v27, %v4541_v30 }
 0x334   : > { %v4544_v0 = vpop.f32.mrf.mxu1 }
 0x335   : > { %v3657_v58 = vmax.f32 %v3611_v49, %v3641_v47  ;;  %v3616_v54 = vadd.f32 %v4543_v50, %v3519_v9 }
 0x336   : > { %v4545_v14 = vpop.f32.mrf.mxu1 }
 0x337   : > { %v3667_v21 = vpack.c.bf16 %v3657_v58, %v3656_v5  ;;  %v4546_v42 = vadd.f32 %v4545_v14, %v4544_v0  ;;  %v3642_v17 = vmul.f32 0.01, %v3616_v54 }
 0x338   : > { %v4547_v33 = vpop.f32.mrf.mxu1 }
 0x339   : > { %v3619_v22 = vadd.f32 %v4546_v42, %v3522_v37  ;;  %4594 = vmatmul.mubr.bf16.vlgmr.msra.gmra.mxu1 %v3667_v21  ;;  %v3658_v57 = vmax.f32 %v3616_v54, %v3642_v17 }
 0x33a   : > { %v4548_v11 = vpop.f32.mrf.mxu1 }
 0x33b   : > { %v3643_v26 = vmul.f32 0.01, %v3619_v22  ;;  %v4549_v4 = vadd.f32 %v4548_v11, %v4547_v33 }
 0x33c   : > { %v4550_v63 = vpop.f32.mrf.mxu1 }
 0x33d   : > { %v3659_v15 = vmax.f32 %v3619_v22, %v3643_v26  ;;  %v3624_v52 = vadd.f32 %v4549_v4, %v3527_v46 }
 0x33e   : > { %v4551_v48 = vpop.f32.mrf.mxu1 }
 0x33f   : > { %v4552_v1 = vadd.f32 %v4551_v48, %v4550_v63  ;;  %v3668_v44 = vpack.c.bf16 %v3659_v15, %v3658_v57  ;;  %v3644_v10 = vmul.f32 0.01, %v3624_v52 }
 0x341   : > { %v3627_v6 = vadd.f32 %v4552_v1, %v3530_v39  ;;  %4597 = vmatprep.mubr.bf16.mxu1 %v3668_v44  ;;  %v3660_v38 = vmax.f32 %v3624_v52, %v3644_v10 }
 0x343   : > { %v3645_v41 = vmul.f32 0.01, %v3627_v6 }
 0x345   : > { %v3661_v60 = vmax.f32 %v3627_v6, %v3645_v41 }
 0x347   : > { %v3669_v8 = vpack.c.bf16 %v3661_v60, %v3660_v38 }
 0x349   : > { %4598 = vmatmul.mubr.bf16.gmra.mxu1 %v3669_v8 }
 0x3d9   : > { %v4587_v35 = vpop.f32.mrf.mxu0 }
 0x3da   : > { %v3784_v32 = vadd.f32 %v4587_v35, %v4412_v56 }
 0x3db   : > { %v3775_v40 = vpop.f32.mrf.mxu0 }
 0x3dc   : > { %v3776_v20 = vadd.f32 %v4412_v56, %v3775_v40  ;;  %3842 = vmax.xlane.f32.xlu1 %v3784_v32 }
 0x3dd   : > { %v4588_v25 = vpop.f32.mrf.mxu0 }
 0x3de   : > { %v3787_v43 = vadd.f32 %v4588_v25, %v4412_v56  ;;  %3838 = vmax.xlane.f32.xlu0 %v3776_v20 }
 0x3df   : > { %v3778_v7 = vpop.f32.mrf.mxu0 }
 0x3e0   : > { %v3779_v31 = vadd.f32 %v4412_v56, %v3778_v7  ;;  %3844 = vmax.xlane.f32.xlu1 %v3787_v43 }
 0x3e2   : > { %3840 = vmax.xlane.f32.xlu0 %v3779_v31 }
 0x3e9   : > { %v4591_v16 = vpop.f32.mrf.mxu0 }
 0x3ea   : > { %v3800_v53 = vadd.f32 %v4591_v16, %v4412_v56 }
 0x3eb   : > { %v3791_v55 = vpop.f32.mrf.mxu0 }
 0x3ec   : > { %3850 = vmax.xlane.f32.xlu0 %v3800_v53  ;;  %v3792_v62 = vadd.f32 %v4412_v56, %v3791_v55 }
 0x3ed   : > { %v4592_v51 = vpop.f32.mrf.mxu0 }
 0x3ee   : > { %v3803_v23 = vadd.f32 %v4592_v51, %v4412_v56 }
 0x3ef   : > { %v3794_v28 = vpop.f32.mrf.mxu0 }
 0x3f0   : > { %3852 = vmax.xlane.f32.xlu1 %v3803_v23  ;;  %3846 = vmax.xlane.f32.xlu0 %v3792_v62  ;;  %v6326_v29 = vadd.f32 %v4412_v56, %v3794_v28 }
 0x3f4   : > { %3848 = vmax.xlane.f32.xlu1 %v6326_v29 }
 0x3f9   : > { %v4595_v19 = vpop.f32.mrf.mxu1 }
 0x3fa   : > { %v6329_v12 = vadd.f32 %v4595_v19, %v4412_v56 }
 0x3fb   : > { %v3807_v13 = vpop.f32.mrf.mxu1 }
 0x3fc   : > { %3858 = vmax.xlane.f32.xlu0 %v6329_v12  ;;  %v6332_v59 = vadd.f32 %v4412_v56, %v3807_v13 }
 0x3fd   : > { %v4596_v24 = vpop.f32.mrf.mxu1 }
 0x3fe   : > { %v6334_v34 = vadd.f32 %v4596_v24, %v4412_v56 }
 0x3ff   : > { %v3810_v30 = vpop.f32.mrf.mxu1 }
 0x400   : > { %3860 = vmax.xlane.f32.xlu1 %v6334_v34  ;;  %3854 = vmax.xlane.f32.xlu0 %v6332_v59  ;;  %v6338_v45 = vadd.f32 %v4412_v56, %v3810_v30 }
 0x404   : > { %3856 = vmax.xlane.f32.xlu1 %v6338_v45 }
 0x409   : > { %v4599_v49 = vpop.f32.mrf.mxu1 }
 0x40a   : > { %v6344_v50 = vadd.f32 %v4599_v49, %v4412_v56 }
 0x40b   : > { %v3823_v27 = vpop.f32.mrf.mxu1 }
 0x40c   : > { %v6341_v9 = vadd.f32 %v4412_v56, %v3823_v27 }
 0x40d   : > { %v4600_v18 = vpop.f32.mrf.mxu1 }
 0x40e   : > { %3862 = vmax.xlane.f32.xlu0 %v6341_v9  ;;  %v6350_v0 = vadd.f32 %v4600_v18, %v4412_v56 }
 0x40f   : > { %v3826_v47 = vpop.f32.mrf.mxu1 }
 0x410   : > { %v6346_v36 = vadd.f32 %v4412_v56, %v3826_v47 }
 0x412   : > { %3864 = vmax.xlane.f32.xlu1 %v6346_v36  ;;  %3866 = vmax.xlane.f32.xlu0 %v6344_v50 }
 0x416   : > { %3868 = vmax.xlane.f32.xlu1 %v6350_v0 }
 0x465   : > { %v3843_v5 = vpop.xlane.xlu1 %3842 }
 0x466   : > { %v3872_v58 = vsub.f32 %v3784_v32, %v3843_v5 }
 0x467   : > { %v3839_v54 = vpop.xlane.xlu0 %3838 }
 0x468   : > { %v3890_v14 = vmul.f32 1.442695, %v3872_v58  ;;  %v3870_v37 = vsub.f32 %v3776_v20, %v3839_v54 }
 0x469   : > { %v3845_v3 = vpop.xlane.xlu1 %3844 }
 0x46a   : > { %5126 = vpow2.f32 %v3890_v14  ;;  %v3886_v21 = vmul.f32 1.442695, %v3870_v37  ;;  %v3873_v42 = vsub.f32 %v3787_v43, %v3845_v3 }
 0x46b   : > { %v3841_v61 = vpop.xlane.xlu0 %3840 }
 0x46c   : > { %v3892_v33 = vmul.f32 1.442695, %v3873_v42  ;;  %v3871_v17 = vsub.f32 %v3779_v31, %v3841_v61  ;;  %5128 = vpow2.f32 %v3886_v21 }
 0x46e   : > { %5130 = vpow2.f32 %v3892_v33  ;;  %v3888_v22 = vmul.f32 1.442695, %v3871_v17 }
 0x470   : > { %5132 = vpow2.f32 %v3888_v22 }
 0x475   : > { %v3851_v11 = vpop.xlane.xlu0 %3850 }
 0x476   : > { %v3876_v46 = vsub.f32 %v3800_v53, %v3851_v11 }
 0x477   : > { %v6353_v2 = vpop.eup %5126 }
 0x478   : > { %v3898_v26 = vmul.f32 1.442695, %v3876_v46  ;;  %3922 = vadd.xlane.f32.xlu0 %v6353_v2 }
 0x479   : > { %v3853_v4 = vpop.xlane.xlu1 %3852  ;;  %v3847_v63 = vpop.xlane.xlu0 %3846 }
 0x47a   : > { %v6356_v57 = vpop.eup %5128  ;;  %5134 = vpow2.f32 %v3898_v26  ;;  %v3877_v15 = vsub.f32 %v3803_v23, %v3853_v4  ;;  %v3874_v52 = vsub.f32 %v3792_v62, %v3847_v63 }
 0x47b   : > { %v6358_v48 = vpop.eup %5130 }
 0x47c   : > { %v3900_v39 = vmul.f32 1.442695, %v3877_v15  ;;  %v3894_v1 = vmul.f32 1.442695, %v3874_v52  ;;  %3924 = vadd.xlane.f32.xlu1 %v6358_v48  ;;  %3918 = vadd.xlane.f32.xlu0 %v6356_v57 }
 0x47d   : > { %v3849_v44 = vpop.xlane.xlu1 %3848  ;;  %v6363_v6 = vpop.eup %5132 }
 0x47e   : > { %5136 = vpow2.f32 %v3900_v39  ;;  %v3875_v10 = vsub.f32 %v6326_v29, %v3849_v44 }
 0x47f   : > { %5138 = vpow2.f32 %v3894_v1 }
 0x480   : > { %v3896_v41 = vmul.f32 1.442695, %v3875_v10  ;;  %3920 = vadd.xlane.f32.xlu1 %v6363_v6 }
 0x482   : > { %5140 = vpow2.f32 %v3896_v41 }
 0x485   : > { %v3859_v38 = vpop.xlane.xlu0 %3858 }
 0x486   : > { %v3880_v60 = vsub.f32 %v6329_v12, %v3859_v38 }
 0x487   : > { %v6367_v8 = vpop.eup %5134 }
 0x488   : > { %v3906_v56 = vmul.f32 1.442695, %v3880_v60  ;;  %3930 = vadd.xlane.f32.xlu0 %v6367_v8 }
 0x489   : > { %v3861_v35 = vpop.xlane.xlu1 %3860  ;;  %v3855_v32 = vpop.xlane.xlu0 %3854 }
 0x48a   : > { %5142 = vpow2.f32 %v3906_v56  ;;  %v3881_v40 = vsub.f32 %v6334_v34, %v3861_v35  ;;  %v3878_v20 = vsub.f32 %v6332_v59, %v3855_v32 }
 0x48b   : > { %v6372_v25 = vpop.eup %5136 }
 0x48c   : > { %v6374_v43 = vpop.eup %5138  ;;  %v3908_v7 = vmul.f32 1.442695, %v3881_v40  ;;  %v3902_v31 = vmul.f32 1.442695, %v3878_v20  ;;  %3932 = vadd.xlane.f32.xlu1 %v6372_v25 }
 0x48d   : > { %3926 = vadd.xlane.f32.xlu0 %v6374_v43  ;;  %v3857_v16 = vpop.xlane.xlu1 %3856 }
 0x48e   : > { %5144 = vpow2.f32 %v3908_v7  ;;  %v3879_v53 = vsub.f32 %v6338_v45, %v3857_v16 }
 0x48f   : > { %v6379_v55 = vpop.eup %5140  ;;  %5146 = vpow2.f32 %v3902_v31 }
 0x490   : > { %v3904_v51 = vmul.f32 1.442695, %v3879_v53  ;;  %3928 = vadd.xlane.f32.xlu1 %v6379_v55 }
 0x492   : > { %5148 = vpow2.f32 %v3904_v51 }
 0x497   : > { %v6382_v62 = vpop.eup %5142  ;;  %v3863_v23 = vpop.xlane.xlu0 %3862 }
 0x498   : > { %v3882_v28 = vsub.f32 %v6341_v9, %v3863_v23  ;;  %3938 = vadd.xlane.f32.xlu0 %v6382_v62 }
 0x49a   : > { %v3910_v29 = vmul.f32 1.442695, %v3882_v28 }
 0x49b   : > { %v6386_v19 = vpop.eup %5144  ;;  %v3865_v12 = vpop.xlane.xlu1 %3864 }
 0x49c   : > { %v3867_v13 = vpop.xlane.xlu0 %3866  ;;  %v6388_v24 = vpop.eup %5146  ;;  %5150 = vpow2.f32 %v3910_v29  ;;  %v3883_v59 = vsub.f32 %v6346_v36, %v3865_v12  ;;  %3940 = vadd.xlane.f32.xlu1 %v6386_v19 }
 0x49d   : > { %v3884_v34 = vsub.f32 %v6344_v50, %v3867_v13  ;;  %3934 = vadd.xlane.f32.xlu0 %v6388_v24 }
 0x49e   : > { %v3912_v30 = vmul.f32 1.442695, %v3883_v59 }
 0x49f   : > { %v3914_v45 = vmul.f32 1.442695, %v3884_v34  ;;  %v6394_v49 = vpop.eup %5148  ;;  %v3869_v27 = vpop.xlane.xlu1 %3868 }
 0x4a0   : > { %5152 = vpow2.f32 %v3912_v30  ;;  %v3885_v9 = vsub.f32 %v6350_v0, %v3869_v27  ;;  %3936 = vadd.xlane.f32.xlu1 %v6394_v49 }
 0x4a1   : > { %5154 = vpow2.f32 %v3914_v45 }
 0x4a2   : > { %v3916_v18 = vmul.f32 1.442695, %v3885_v9 }
 0x4a4   : > { %5156 = vpow2.f32 %v3916_v18 }
 0x4a9   : > { %v6398_v47 = vpop.eup %5150 }
 0x4aa   : > { %3942 = vadd.xlane.f32.xlu0 %v6398_v47 }
 0x4ad   : > { %v6401_v50 = vpop.eup %5152 }
 0x4ae   : > { %v6403_v36 = vpop.eup %5154  ;;  %3944 = vadd.xlane.f32.xlu1 %v6401_v50 }
 0x4af   : > { %3946 = vadd.xlane.f32.xlu0 %v6403_v36 }
 0x4b1   : > { %v6407_v5 = vpop.eup %5156 }
 0x4b2   : > { %3948 = vadd.xlane.f32.xlu1 %v6407_v5 }
 0x501   : > { %v3923_v0 = vpop.xlane.xlu0 %3922 }
 0x502   : > { %5158 = vrcp.f32 %v3923_v0 }
 0x505   : > { %v3925_v58 = vpop.xlane.xlu1 %3924  ;;  %v3919_v54 = vpop.xlane.xlu0 %3918 }
 0x506   : > { %5160 = vrcp.f32 %v3925_v58 }
 0x507   : > { %5162 = vrcp.f32 %v3919_v54 }
 0x509   : > { %v3921_v14 = vpop.xlane.xlu1 %3920 }
 0x50a   : > { %5164 = vrcp.f32 %v3921_v14 }
 0x50f   : > { %v5159_v37 = vpop.eup %5158 }
 0x510   : > { %v3955_v3 = vmul.f32 %v5159_v37, %v6353_v2 }
 0x511   : > { %v3931_v21 = vpop.xlane.xlu0 %3930 }
 0x512   : > { %3984 = vst [vmem:[%s6415_s24 + $0x10] sm:$0xff] %v3955_v3  ;;  %5166 = vrcp.f32 %v3931_v21 }
 0x513   : > { %v5161_v42 = vpop.eup %5160 }
 0x514   : > { %v5163_v61 = vpop.eup %5162  ;;  %v3957_v33 = vmul.f32 %v5161_v42, %v6358_v48 }
 0x515   : > { %v3951_v17 = vmul.f32 %v5163_v61, %v6356_v57  ;;  %v3933_v22 = vpop.xlane.xlu1 %3932 }
 0x516   : > { %3985 = vst [vmem:[%s6415_s24 + $0x18] sm:$0xff] %v3957_v33  ;;  %5168 = vrcp.f32 %v3933_v22  ;;  %v3927_v11 = vpop.xlane.xlu0 %3926 }
 0x517   : > { %v5165_v46 = vpop.eup %5164  ;;  %3982 = vst [vmem:[%s6415_s24] sm:$0xff] %v3951_v17  ;;  %5170 = vrcp.f32 %v3927_v11 }
 0x518   : > { %v3953_v2 = vmul.f32 %v5165_v46, %v6363_v6 }
 0x519   : > { %v3929_v26 = vpop.xlane.xlu1 %3928 }
 0x51a   : > { %3983 = vst [vmem:[%s6415_s24 + $0x8] sm:$0xff] %v3953_v2  ;;  %5172 = vrcp.f32 %v3929_v26 }
 0x51f   : > { %v5167_v4 = vpop.eup %5166 }
 0x520   : > { %v3963_v63 = vmul.f32 %v5167_v4, %v6367_v8 }
 0x521   : > { %v3939_v15 = vpop.xlane.xlu0 %3938 }
 0x522   : > { %3988 = vst [vmem:[%s6415_s24 + $0x30] sm:$0xff] %v3963_v63  ;;  %5174 = vrcp.f32 %v3939_v15 }
 0x523   : > { %v5169_v57 = vpop.eup %5168 }
 0x524   : > { %v5171_v52 = vpop.eup %5170  ;;  %v3965_v48 = vmul.f32 %v5169_v57, %v6372_v25 }
 0x525   : > { %v3959_v39 = vmul.f32 %v5171_v52, %v6374_v43  ;;  %v3941_v1 = vpop.xlane.xlu1 %3940 }
 0x526   : > { %3989 = vst [vmem:[%s6415_s24 + $0x38] sm:$0xff] %v3965_v48  ;;  %5176 = vrcp.f32 %v3941_v1  ;;  %v3935_v44 = vpop.xlane.xlu0 %3934 }
 0x527   : > { %v5173_v10 = vpop.eup %5172  ;;  %3986 = vst [vmem:[%s6415_s24 + $0x20] sm:$0xff] %v3959_v39  ;;  %5178 = vrcp.f32 %v3935_v44 }
 0x528   : > { %v3961_v6 = vmul.f32 %v5173_v10, %v6379_v55 }
 0x529   : > { %v3937_v41 = vpop.xlane.xlu1 %3936 }
 0x52a   : > { %3987 = vst [vmem:[%s6415_s24 + $0x28] sm:$0xff] %v3961_v6  ;;  %5180 = vrcp.f32 %v3937_v41 }
 0x52f   : > { %v5175_v38 = vpop.eup %5174 }
 0x530   : > { %v3971_v60 = vmul.f32 %v5175_v38, %v6382_v62 }
 0x532   : > { %3992 = vst [vmem:[%s6415_s24 + $0x50] sm:$0xff] %v3971_v60 }
 0x533   : > { %v5177_v8 = vpop.eup %5176  ;;  %v3943_v56 = vpop.xlane.xlu0 %3942 }
 0x534   : > { %v5179_v35 = vpop.eup %5178  ;;  %v3973_v32 = vmul.f32 %v5177_v8, %v6386_v19  ;;  %5182 = vrcp.f32 %v3943_v56 }
 0x535   : > { %v3967_v40 = vmul.f32 %v5179_v35, %v6388_v24 }
 0x536   : > { %3993 = vst [vmem:[%s6415_s24 + $0x58] sm:$0xff] %v3973_v32 }
 0x537   : > { %v5181_v20 = vpop.eup %5180  ;;  %3990 = vst [vmem:[%s6415_s24 + $0x40] sm:$0xff] %v3967_v40  ;;  %v3945_v25 = vpop.xlane.xlu1 %3944 }
 0x538   : > { %v3969_v43 = vmul.f32 %v5181_v20, %v6394_v49  ;;  %5184 = vrcp.f32 %v3945_v25  ;;  %v3947_v7 = vpop.xlane.xlu0 %3946 }
 0x539   : > { %5186 = vrcp.f32 %v3947_v7 }
 0x53a   : > { %3991 = vst [vmem:[%s6415_s24 + $0x48] sm:$0xff] %v3969_v43 }
 0x53b   : > { %v3949_v31 = vpop.xlane.xlu1 %3948 }
 0x53c   : > { %5188 = vrcp.f32 %v3949_v31 }
 0x541   : > { %v5183_v16 = vpop.eup %5182 }
 0x542   : > { %v3975_v53 = vmul.f32 %v5183_v16, %v6398_v47 }
 0x544   : > { %3994 = vst [vmem:[%s6415_s24 + $0x60] sm:$0xff] %v3975_v53 }
 0x545   : > { %v5185_v55 = vpop.eup %5184 }
 0x546   : > { %v5187_v51 = vpop.eup %5186  ;;  %v3977_v62 = vmul.f32 %v5185_v55, %v6401_v50 }
 0x547   : > { %v3979_v23 = vmul.f32 %v5187_v51, %v6403_v36 }
 0x548   : > { %3995 = vst [vmem:[%s6415_s24 + $0x68] sm:$0xff] %v3977_v62 }
 0x549   : > { %v5189_v28 = vpop.eup %5188  ;;  %3996 = vst [vmem:[%s6415_s24 + $0x70] sm:$0xff] %v3979_v23 }
 0x54a   : > { %v3981_v29 = vmul.f32 %v5189_v28, %v6407_v5 }
 0x54c   : > { %3997 = vst [vmem:[%s6415_s24 + $0x78] sm:$0xff] %v3981_v29 }
 0x54d PF: > { %p19_p11 = scmp.ge.s32.totalorder %s5503_s19, 4   ;;  %s6538_s24 = smov %s5356_s25 }
 0x54e   : > { %s6539_s25 = smov %s5360_s26  ;;  %s6540_s26 = smov %s5512_s23 }
 0x54f   : > { %s6541_s27 = smov %s5503_s19  ;;  %21 = sbr.rel (!%p19_p11) target bundleno = 5 (0x5), region = 104 }
 0x554   :  { %4020 = vsyncpa [#allocation3], 1 }
 0x555   :  { %4022 = vsyncpa [#allocation3 + $0x1], 1 }
 0x556   :  { %4023 = vsyncpa [#allocation5], 1 }
 0x557   :  { %4024 = vsyncpa [#allocation8], 1 }

</bundles_post_ra>
